<compile_context>
chip_gen: v7x
topology: tpu7x:2x2x1
jax: 0.10.0
libtpu: 0.0.40
codegen_flags: <defaults>
</compile_context>

<pallas_src>
import functools

import numpy as np

import jax
import jax.numpy as jnp
from jax.experimental import pallas as pl
from jax.experimental.pallas import tpu as pltpu

LEAKY_SLOPE = 0.2
IN_EPS = 1e-5


def _const_spec(a):
    """Full-array block, same block every grid step (weights / gather matrices)."""
    nd = a.ndim
    return pl.BlockSpec(a.shape, lambda i, _nd=nd: (0,) * _nd)


# ---------------------------------------------------------------------------
# Host-side (XLA) helpers run once per forward / once at parameter prep.
# ---------------------------------------------------------------------------
def _im2col_k4s2p1(x_nhwc):
    """Raw input im2col for layer 1 only: (N,H,W,C) -> (N, (H/2)*(W/2), 16*C).

    K ordering is (kh, kw, cin), matching the packed layer-1 weight.
    This touches only the raw image (~12 KB/sample), not activations.
    """
    n, h, w, c = x_nhwc.shape
    ho, wo = h // 2, w // 2
    xp = jnp.pad(x_nhwc, ((0, 0), (1, 1), (1, 1), (0, 0)))
    cols = []
    for kh in range(4):
        for kw in range(4):
            cols.append(xp[:, kh:kh + 2 * ho:2, kw:kw + 2 * wo:2, :])
    patch = jnp.stack(cols, axis=3)                # (N, ho, wo, 16, C)
    return patch.reshape(n, ho * wo, 16 * c)


def _make_gather_matrix(h, w):
    """0/1 matrix S (16*m_pad, h*w) encoding pad=1 + stride-2 + 4x4 im2col.

    Row k*m_pad + a*wo + b selects input pixel (2a+kh-1, 2b+kw-1) (zero row for
    padding positions), k = kh*4 + kw.  m_pad rounds the per-tap row count up to a
    multiple of 8 so every in-kernel row-slice of the gathered stack is sublane
    aligned; padded rows are all-zero and sliced away before the norm.
    """
    ho, wo = h // 2, w // 2
    m_out = ho * wo
    m_pad = ((m_out + 7) // 8) * 8
    S = np.zeros((16 * m_pad, h * w), np.float32)
    for kh in range(4):
        for kw in range(4):
            k = kh * 4 + kw
            for a in range(ho):
                r = 2 * a + kh - 1
                if not (0 <= r < h):
                    continue
                for b in range(wo):
                    s = 2 * b + kw - 1
                    if not (0 <= s < w):
                        continue
                    S[k * m_pad + a * wo + b, r * w + s] = 1.0
    return jnp.asarray(S)


# ---------------------------------------------------------------------------
# The single fused kernel: one grid step == one batch sample, everything in VMEM.
# ---------------------------------------------------------------------------
def _encoder_kernel(*refs, n_conv_rest, n_post, conv_m_outs):
    it = iter(refs)
    patch1_ref = next(it)
    eps_ref = next(it)
    w1_ref = next(it)
    b1_ref = next(it)
    conv_refs = [(next(it), next(it), next(it)) for _ in range(n_conv_rest)]
    post_refs = [(next(it), next(it)) for _ in range(n_post)]
    wmu_ref = next(it)
    bmu_ref = next(it)
    wsig_ref = next(it)
    bsig_ref = next(it)
    mu_ref = next(it)
    sig_ref = next(it)
    z_ref = next(it)

    def leaky(v):
        return jnp.where(v > 0, v, LEAKY_SLOPE * v)

    def inorm(v):
        # InstanceNorm2d(affine=False): per-channel stats over spatial rows,
        # biased variance, eps = 1e-5 (PyTorch defaults).
        m = jnp.mean(v, axis=0, keepdims=True)
        var = jnp.mean(jnp.square(v - m), axis=0, keepdims=True)
        return (v - m) * jax.lax.rsqrt(var + IN_EPS)

    # --- conv block 1: single K-concatenated matmul (K = 16*Cin) over the
    #     wrapper-built im2col patch, then bias + LeakyReLU + InstanceNorm.
    y = jnp.dot(patch1_ref[...], w1_ref[...], preferred_element_type=jnp.float32)
    y = inorm(leaky(y + b1_ref[...]))

    # --- conv blocks 2..4: pad + space-to-depth + im2col done as ONE exact 0/1
    #     gather matmul on the MXU, then 16 per-tap channel matmuls accumulated
    #     in f32 (all slices are sublane-aligned by construction).
    for li, (s_ref, w_ref, b_ref) in enumerate(conv_refs):
        m_out = conv_m_outs[li]
        m_pad = s_ref.shape[0] // 16
        stack = jnp.dot(s_ref[...], y, preferred_element_type=jnp.float32)
        acc = jnp.dot(stack[0:m_pad, :], w_ref[0],
                      preferred_element_type=jnp.float32)
        for k in range(1, 16):
            acc = acc + jnp.dot(stack[k * m_pad:(k + 1) * m_pad, :], w_ref[k],
                                preferred_element_type=jnp.float32)
        y = inorm(leaky(acc[:m_out, :] + b_ref[...]))

    # --- 1x1 conv + LeakyReLU stack (stays in VMEM).
    for (p_ref, pb_ref) in post_refs:
        y = leaky(jnp.dot(y, p_ref[...], preferred_element_type=jnp.float32)
                  + pb_ref[...])

    # --- fused tail: mu / sig linears with the NCHW flatten folded into
    #     per-spatial-row weight blocks, then z = mu + eps * exp(0.5 * sig).
    mu = bmu_ref[...]
    sig = bsig_ref[...]
    for s in range(wmu_ref.shape[0]):
        row = y[s:s + 1, :]
        mu = mu + jnp.dot(row, wmu_ref[s], preferred_element_type=jnp.float32)
        sig = sig + jnp.dot(row, wsig_ref[s], preferred_element_type=jnp.float32)
    mu_ref[...] = mu
    sig_ref[...] = sig
    z_ref[...] = mu + eps_ref[...] * jnp.exp(0.5 * sig)


# ---------------------------------------------------------------------------
# Parameters
# ---------------------------------------------------------------------------
def init_params(key, conv_filt, hidden, input_size, input_channels):
    """Raw (PyTorch-layout-equivalent) parameters."""
    conv_filts = [32, 64, conv_filt, conv_filt]
    ks = iter(jax.random.split(key, 2 * (len(conv_filts) + len(hidden) + 2)))

    raw = {"convs": [], "post": []}
    cin, size = input_channels, input_size
    for filt in conv_filts:
        w = jax.random.normal(next(ks), (4, 4, cin, filt), jnp.float32) * 0.05   # HWIO
        b = jax.random.normal(next(ks), (filt,), jnp.float32) * 0.01
        raw["convs"].append((w, b))
        cin, size = filt, size // 2
    final_size = size
    assert final_size > 1, f"Final size ({final_size}) < 1. Use bigger images."

    for hdim in hidden:
        w = jax.random.normal(next(ks), (cin, hdim), jnp.float32) * 0.05
        b = jax.random.normal(next(ks), (hdim,), jnp.float32) * 0.01
        raw["post"].append((w, b))
        cin = hdim

    d = hidden[-1] * final_size * final_size
    for name in ("lin_mu", "lin_sig"):
        # (D_in, D_out) with input rows in PyTorch CHW-flatten order.
        w = jax.random.normal(next(ks), (d, d), jnp.float32) * 0.05
        b = jax.random.normal(next(ks), (d,), jnp.float32) * 0.01
        raw[name] = (w, b)
    return raw, final_size


def prepare_params(raw, input_size, final_size, hidden):
    """Repack raw params into kernel layouts (done once, at init time)."""
    prep = {}

    # Layer 1: fold the 4x4 kernel into a single (16*Cin, Cout) matrix (K-concat).
    w4, b = raw["convs"][0]
    _, _, cin, cout = w4.shape
    prep["w1"] = w4.reshape(16 * cin, cout)
    prep["b1"] = b.reshape(1, cout)

    # Layers 2..4: exact 0/1 gather matrices + per-tap (16, Cin, Cout) weights.
    convs = []
    size = input_size // 2
    for (w4, b) in raw["convs"][1:]:
        _, _, cin, cout = w4.shape
        S = _make_gather_matrix(size, size)
        convs.append((S, w4.reshape(16, cin, cout), b.reshape(1, cout)))
        size //= 2
    prep["convs"] = convs

    prep["post"] = [(w, b.reshape(1, -1)) for (w, b) in raw["post"]]

    # Fold the NCHW nn.Flatten permutation into per-spatial-row weight blocks so the
    # kernel needs no runtime activation transpose/flatten.
    c, fs = hidden[-1], final_size
    d = c * fs * fs
    for out_name, in_name in (("mu", "lin_mu"), ("sig", "lin_sig")):
        w, bb = raw[in_name]
        prep["w" + out_name] = w.reshape(c, fs * fs, d).transpose(1, 0, 2)  # (fs*fs, c, D)
        prep["b" + out_name] = bb.reshape(1, d)
    return prep


# ---------------------------------------------------------------------------
# Forward passes
# ---------------------------------------------------------------------------
def encoder_forward(x_nchw, params, eps):
    """Pallas forward.  x_nchw: (N, C, H, W).  Returns mu, sig, z of shape (N, D)."""
    x = jnp.transpose(x_nchw, (0, 2, 3, 1)).astype(jnp.float32)   # NCHW -> NHWC once
    patch1 = _im2col_k4s2p1(x)                                    # (N, M1, 16*Cin)
    n, m1, k1 = patch1.shape
    d = params["bmu"].shape[-1]
    n_post = len(params["post"])
    n_conv_rest = len(params["convs"])
    conv_m_outs = tuple(m1 // (4 ** (i + 1)) for i in range(n_conv_rest))

    args = [patch1, eps.reshape(n, 1, d).astype(jnp.float32),
            params["w1"], params["b1"]]
    in_specs = [
        pl.BlockSpec((None, m1, k1), lambda i: (i, 0, 0)),
        pl.BlockSpec((None, 1, d), lambda i: (i, 0, 0)),
        _const_spec(params["w1"]), _const_spec(params["b1"]),
    ]
    for (S, W, b) in params["convs"]:
        args += [S, W, b]
        in_specs += [_const_spec(S), _const_spec(W), _const_spec(b)]
    for (P, pb) in params["post"]:
        args += [P, pb]
        in_specs += [_const_spec(P), _const_spec(pb)]
    args += [params["wmu"], params["bmu"], params["wsig"], params["bsig"]]
    in_specs += [_const_spec(params["wmu"]), _const_spec(params["bmu"]),
                 _const_spec(params["wsig"]), _const_spec(params["bsig"])]

    kern = functools.partial(_encoder_kernel,
                             n_conv_rest=n_conv_rest,
                             n_post=n_post,
                             conv_m_outs=conv_m_outs)
    out_sd = jax.ShapeDtypeStruct((n, 1, d), jnp.float32)
    out_spec = pl.BlockSpec((None, 1, d), lambda i: (i, 0, 0))

    mu, sig, z = pl.pallas_call(
        kern,
        grid=(n,),
        in_specs=in_specs,
        out_specs=(out_spec, out_spec, out_spec),
        out_shape=(out_sd, out_sd, out_sd),
        compiler_params=pltpu.CompilerParams(
            dimension_semantics=("parallel",),     # megacore-shard batch on v7x
        ),
    )(*args)
    return mu.reshape(n, d), sig.reshape(n, d), z.reshape(n, d)


def encoder_reference(x_nchw, raw):
    """Pure-JAX reference with literal PyTorch semantics (for correctness check)."""
    x = jnp.transpose(x_nchw, (0, 2, 3, 1)).astype(jnp.float32)
    for (w4, b) in raw["convs"]:
        y = jax.lax.conv_general_dilated(
            x, w4, window_strides=(2, 2), padding=((1, 1), (1, 1)),
            dimension_numbers=("NHWC", "HWIO", "NHWC")) + b
        y = jnp.where(y > 0, y, LEAKY_SLOPE * y)
        mean = jnp.mean(y, axis=(1, 2), keepdims=True)
        var = jnp.mean((y - mean) ** 2, axis=(1, 2), keepdims=True)
        x = (y - mean) / jnp.sqrt(var + IN_EPS)
    for (w, b) in raw["post"]:
        y = jnp.einsum("nhwc,cd->nhwd", x, w) + b
        x = jnp.where(y > 0, y, LEAKY_SLOPE * y)
    n, h, w_, c = x.shape
    flat = jnp.transpose(x, (0, 3, 1, 2)).reshape(n, c * h * w_)   # PyTorch CHW flatten
    mu = flat @ raw["lin_mu"][0] + raw["lin_mu"][1]
    sig = flat @ raw["lin_sig"][0] + raw["lin_sig"][1]
    return mu, sig


# ---------------------------------------------------------------------------
if __name__ == "__main__":
    conv_filt = 16
    hidden = (32, 16)
    input_channels = 3
    input_size = 32          # 4 stride-2 convs -> final_size = 2 (must stay > 1)
    batch = 4                # >=4 so each v7x TensorCore gets >=2 pipeline steps

    root = jax.random.PRNGKey(0)
    k_param, k_x, k_eps = jax.random.split(root, 3)

    raw, final_size = init_params(k_param, conv_filt, hidden, input_size, input_channels)
    params = prepare_params(raw, input_size, final_size, hidden)

    d = hidden[-1] * final_size * final_size
    x = jax.random.normal(k_x, (batch, input_channels, input_size, input_size), jnp.float32)
    # TODO(synk): eps is supplied externally (torch.randn_like's RNG stream is not reproducible).
    eps = jax.random.normal(k_eps, (batch, d), jnp.float32)

    fwd = jax.jit(encoder_forward)
    mu, sig, z = fwd(x, params, eps)
    jax.block_until_ready((mu, sig, z))

    assert mu.shape == (batch, d) and sig.shape == (batch, d) and z.shape == (batch, d)

    # Correctness check against the pure-JAX PyTorch-semantics reference.
    mu_r, sig_r = encoder_reference(x, raw)
    z_r = mu_r + eps * jnp.exp(0.5 * sig_r)
    for got, want in ((mu, mu_r), (sig, sig_r), (z, z_r)):
        assert jnp.allclose(got, want, atol=2e-3, rtol=2e-3), \
            float(jnp.max(jnp.abs(got - want)))

    print("KERNEL_OK")
</pallas_src>

<mosaic_0001>
module attributes {stable_mosaic.version = 11 : i64} {
  func.func @_encoder_kernel(%arg0: i32, %arg1: memref<1x256x48xf32, #tpu.memory_space<vmem>>, %arg2: memref<1x1x64xf32, #tpu.memory_space<vmem>>, %arg3: memref<48x32xf32, #tpu.memory_space<vmem>>, %arg4: memref<1x32xf32, #tpu.memory_space<vmem>>, %arg5: memref<1024x256xf32, #tpu.memory_space<vmem>>, %arg6: memref<16x32x64xf32, #tpu.memory_space<vmem>>, %arg7: memref<1x64xf32, #tpu.memory_space<vmem>>, %arg8: memref<256x64xf32, #tpu.memory_space<vmem>>, %arg9: memref<16x64x16xf32, #tpu.memory_space<vmem>>, %arg10: memref<1x16xf32, #tpu.memory_space<vmem>>, %arg11: memref<128x16xf32, #tpu.memory_space<vmem>>, %arg12: memref<16x16x16xf32, #tpu.memory_space<vmem>>, %arg13: memref<1x16xf32, #tpu.memory_space<vmem>>, %arg14: memref<16x32xf32, #tpu.memory_space<vmem>>, %arg15: memref<1x32xf32, #tpu.memory_space<vmem>>, %arg16: memref<32x16xf32, #tpu.memory_space<vmem>>, %arg17: memref<1x16xf32, #tpu.memory_space<vmem>>, %arg18: memref<4x16x64xf32, #tpu.memory_space<vmem>>, %arg19: memref<1x64xf32, #tpu.memory_space<vmem>>, %arg20: memref<4x16x64xf32, #tpu.memory_space<vmem>>, %arg21: memref<1x64xf32, #tpu.memory_space<vmem>>, %arg22: memref<1x1x64xf32, #tpu.memory_space<vmem>>, %arg23: memref<1x1x64xf32, #tpu.memory_space<vmem>>, %arg24: memref<1x1x64xf32, #tpu.memory_space<vmem>>) attributes {dimension_semantics = [#tpu.dimension_semantics<parallel>], iteration_bounds = array<i64: 4>, scalar_prefetch = 0 : i64, scratch_operands = 0 : i64, tpu.core_type = #tpu.core_type<tc>, window_params = [{transform_indices = @transform_0, window_bounds = array<i64: 1, 256, 48>}, {transform_indices = @transform_1, window_bounds = array<i64: 1, 1, 64>}, {pipeline_mode = #tpu.pipeline_mode<synchronous>, transform_indices = @transform_2, window_bounds = array<i64: 48, 32>}, {pipeline_mode = #tpu.pipeline_mode<synchronous>, transform_indices = @transform_3, window_bounds = array<i64: 1, 32>}, {pipeline_mode = #tpu.pipeline_mode<synchronous>, transform_indices = @transform_4, window_bounds = array<i64: 1024, 256>}, {pipeline_mode = #tpu.pipeline_mode<synchronous>, transform_indices = @transform_5, window_bounds = array<i64: 16, 32, 64>}, {pipeline_mode = #tpu.pipeline_mode<synchronous>, transform_indices = @transform_6, window_bounds = array<i64: 1, 64>}, {pipeline_mode = #tpu.pipeline_mode<synchronous>, transform_indices = @transform_7, window_bounds = array<i64: 256, 64>}, {pipeline_mode = #tpu.pipeline_mode<synchronous>, transform_indices = @transform_8, window_bounds = array<i64: 16, 64, 16>}, {pipeline_mode = #tpu.pipeline_mode<synchronous>, transform_indices = @transform_9, window_bounds = array<i64: 1, 16>}, {pipeline_mode = #tpu.pipeline_mode<synchronous>, transform_indices = @transform_10, window_bounds = array<i64: 128, 16>}, {pipeline_mode = #tpu.pipeline_mode<synchronous>, transform_indices = @transform_11, window_bounds = array<i64: 16, 16, 16>}, {pipeline_mode = #tpu.pipeline_mode<synchronous>, transform_indices = @transform_12, window_bounds = array<i64: 1, 16>}, {pipeline_mode = #tpu.pipeline_mode<synchronous>, transform_indices = @transform_13, window_bounds = array<i64: 16, 32>}, {pipeline_mode = #tpu.pipeline_mode<synchronous>, transform_indices = @transform_14, window_bounds = array<i64: 1, 32>}, {pipeline_mode = #tpu.pipeline_mode<synchronous>, transform_indices = @transform_15, window_bounds = array<i64: 32, 16>}, {pipeline_mode = #tpu.pipeline_mode<synchronous>, transform_indices = @transform_16, window_bounds = array<i64: 1, 16>}, {pipeline_mode = #tpu.pipeline_mode<synchronous>, transform_indices = @transform_17, window_bounds = array<i64: 4, 16, 64>}, {pipeline_mode = #tpu.pipeline_mode<synchronous>, transform_indices = @transform_18, window_bounds = array<i64: 1, 64>}, {pipeline_mode = #tpu.pipeline_mode<synchronous>, transform_indices = @transform_19, window_bounds = array<i64: 4, 16, 64>}, {pipeline_mode = #tpu.pipeline_mode<synchronous>, transform_indices = @transform_20, window_bounds = array<i64: 1, 64>}, {transform_indices = @transform_21, window_bounds = array<i64: 1, 1, 64>}, {transform_indices = @transform_22, window_bounds = array<i64: 1, 1, 64>}, {transform_indices = @transform_23, window_bounds = array<i64: 1, 1, 64>}]} {
    %c0 = arith.constant 0 : index
    %c0_0 = arith.constant 0 : index
    %c0_1 = arith.constant 0 : index
    %0 = vector.load %arg1[%c0, %c0_0, %c0_1] : memref<1x256x48xf32, #tpu.memory_space<vmem>>, vector<1x256x48xf32>
    %1 = vector.shape_cast %0 : vector<1x256x48xf32> to vector<256x48xf32>
    %c0_2 = arith.constant 0 : index
    %c0_3 = arith.constant 0 : index
    %2 = vector.load %arg3[%c0_2, %c0_3] : memref<48x32xf32, #tpu.memory_space<vmem>>, vector<48x32xf32>
    %cst = arith.constant dense<0.000000e+00> : vector<256x32xf32>
    %3 = tpu.matmul %1, %2, %cst {dimension_numbers = #tpu.dot_dimension_numbers<[1], [0], [0], [1], [0, 0, 1, 1], [], []>} : vector<256x48xf32>, vector<48x32xf32>, vector<256x32xf32> -> vector<256x32xf32>
    %c0_4 = arith.constant 0 : index
    %c0_5 = arith.constant 0 : index
    %4 = vector.load %arg4[%c0_4, %c0_5] : memref<1x32xf32, #tpu.memory_space<vmem>>, vector<1x32xf32>
    %5 = vector.broadcast %4 : vector<1x32xf32> to vector<256x32xf32>
    %6 = arith.addf %3, %5 : vector<256x32xf32>
    %cst_6 = arith.constant 0.000000e+00 : f32
    %7 = vector.broadcast %cst_6 : f32 to vector<256x32xf32>
    %8 = arith.cmpf ogt, %6, %7 : vector<256x32xf32>
    %cst_7 = arith.constant 2.000000e-01 : f32
    %9 = vector.broadcast %cst_7 : f32 to vector<256x32xf32>
    %10 = arith.mulf %9, %6 : vector<256x32xf32>
    %11 = arith.select %8, %6, %10 : vector<256x32xi1>, vector<256x32xf32>
    %cst_8 = arith.constant dense<0.000000e+00> : vector<32xf32>
    %12 = vector.multi_reduction <add>, %11, %cst_8 [0] : vector<256x32xf32> to vector<32xf32>
    %13 = vector.shape_cast %12 : vector<32xf32> to vector<1x32xf32>
    %cst_9 = arith.constant 2.560000e+02 : f32
    %14 = vector.broadcast %cst_9 : f32 to vector<1x32xf32>
    %15 = arith.divf %13, %14 : vector<1x32xf32>
    %16 = vector.broadcast %15 : vector<1x32xf32> to vector<256x32xf32>
    %17 = arith.subf %11, %16 : vector<256x32xf32>
    %18 = arith.mulf %17, %17 : vector<256x32xf32>
    %cst_10 = arith.constant dense<0.000000e+00> : vector<32xf32>
    %19 = vector.multi_reduction <add>, %18, %cst_10 [0] : vector<256x32xf32> to vector<32xf32>
    %20 = vector.shape_cast %19 : vector<32xf32> to vector<1x32xf32>
    %cst_11 = arith.constant 2.560000e+02 : f32
    %21 = vector.broadcast %cst_11 : f32 to vector<1x32xf32>
    %22 = arith.divf %20, %21 : vector<1x32xf32>
    %23 = vector.broadcast %15 : vector<1x32xf32> to vector<256x32xf32>
    %24 = arith.subf %11, %23 : vector<256x32xf32>
    %cst_12 = arith.constant 9.99999974E-6 : f32
    %25 = vector.broadcast %cst_12 : f32 to vector<1x32xf32>
    %26 = arith.addf %22, %25 : vector<1x32xf32>
    %27 = math.rsqrt %26 : vector<1x32xf32>
    %28 = vector.broadcast %27 : vector<1x32xf32> to vector<256x32xf32>
    %29 = arith.mulf %24, %28 : vector<256x32xf32>
    %c0_13 = arith.constant 0 : index
    %c0_14 = arith.constant 0 : index
    %30 = vector.load %arg5[%c0_13, %c0_14] : memref<1024x256xf32, #tpu.memory_space<vmem>>, vector<1024x256xf32>
    %cst_15 = arith.constant dense<0.000000e+00> : vector<1024x32xf32>
    %31 = tpu.matmul %30, %29, %cst_15 {dimension_numbers = #tpu.dot_dimension_numbers<[1], [0], [0], [1], [0, 0, 1, 1], [], []>} : vector<1024x256xf32>, vector<256x32xf32>, vector<1024x32xf32> -> vector<1024x32xf32>
    %32 = vector.extract_strided_slice %31 {offsets = [0, 0], sizes = [64, 32], strides = [1, 1]} : vector<1024x32xf32> to vector<64x32xf32>
    %c0_16 = arith.constant 0 : index
    %c0_17 = arith.constant 0 : index
    %c0_18 = arith.constant 0 : index
    %33 = vector.load %arg6[%c0_16, %c0_17, %c0_18] : memref<16x32x64xf32, #tpu.memory_space<vmem>>, vector<1x32x64xf32>
    %34 = vector.shape_cast %33 : vector<1x32x64xf32> to vector<32x64xf32>
    %cst_19 = arith.constant dense<0.000000e+00> : vector<64x64xf32>
    %35 = tpu.matmul %32, %34, %cst_19 {dimension_numbers = #tpu.dot_dimension_numbers<[1], [0], [0], [1], [0, 0, 1, 1], [], []>} : vector<64x32xf32>, vector<32x64xf32>, vector<64x64xf32> -> vector<64x64xf32>
    %36 = vector.extract_strided_slice %31 {offsets = [64, 0], sizes = [64, 32], strides = [1, 1]} : vector<1024x32xf32> to vector<64x32xf32>
    %c1 = arith.constant 1 : index
    %c0_20 = arith.constant 0 : index
    %c0_21 = arith.constant 0 : index
    %37 = vector.load %arg6[%c1, %c0_20, %c0_21] : memref<16x32x64xf32, #tpu.memory_space<vmem>>, vector<1x32x64xf32>
    %38 = vector.shape_cast %37 : vector<1x32x64xf32> to vector<32x64xf32>
    %cst_22 = arith.constant dense<0.000000e+00> : vector<64x64xf32>
    %39 = tpu.matmul %36, %38, %cst_22 {dimension_numbers = #tpu.dot_dimension_numbers<[1], [0], [0], [1], [0, 0, 1, 1], [], []>} : vector<64x32xf32>, vector<32x64xf32>, vector<64x64xf32> -> vector<64x64xf32>
    %40 = arith.addf %35, %39 : vector<64x64xf32>
    %41 = vector.extract_strided_slice %31 {offsets = [128, 0], sizes = [64, 32], strides = [1, 1]} : vector<1024x32xf32> to vector<64x32xf32>
    %c2 = arith.constant 2 : index
    %c0_23 = arith.constant 0 : index
    %c0_24 = arith.constant 0 : index
    %42 = vector.load %arg6[%c2, %c0_23, %c0_24] : memref<16x32x64xf32, #tpu.memory_space<vmem>>, vector<1x32x64xf32>
    %43 = vector.shape_cast %42 : vector<1x32x64xf32> to vector<32x64xf32>
    %cst_25 = arith.constant dense<0.000000e+00> : vector<64x64xf32>
    %44 = tpu.matmul %41, %43, %cst_25 {dimension_numbers = #tpu.dot_dimension_numbers<[1], [0], [0], [1], [0, 0, 1, 1], [], []>} : vector<64x32xf32>, vector<32x64xf32>, vector<64x64xf32> -> vector<64x64xf32>
    %45 = arith.addf %40, %44 : vector<64x64xf32>
    %46 = vector.extract_strided_slice %31 {offsets = [192, 0], sizes = [64, 32], strides = [1, 1]} : vector<1024x32xf32> to vector<64x32xf32>
    %c3 = arith.constant 3 : index
    %c0_26 = arith.constant 0 : index
    %c0_27 = arith.constant 0 : index
    %47 = vector.load %arg6[%c3, %c0_26, %c0_27] : memref<16x32x64xf32, #tpu.memory_space<vmem>>, vector<1x32x64xf32>
    %48 = vector.shape_cast %47 : vector<1x32x64xf32> to vector<32x64xf32>
    %cst_28 = arith.constant dense<0.000000e+00> : vector<64x64xf32>
    %49 = tpu.matmul %46, %48, %cst_28 {dimension_numbers = #tpu.dot_dimension_numbers<[1], [0], [0], [1], [0, 0, 1, 1], [], []>} : vector<64x32xf32>, vector<32x64xf32>, vector<64x64xf32> -> vector<64x64xf32>
    %50 = arith.addf %45, %49 : vector<64x64xf32>
    %51 = vector.extract_strided_slice %31 {offsets = [256, 0], sizes = [64, 32], strides = [1, 1]} : vector<1024x32xf32> to vector<64x32xf32>
    %c4 = arith.constant 4 : index
    %c0_29 = arith.constant 0 : index
    %c0_30 = arith.constant 0 : index
    %52 = vector.load %arg6[%c4, %c0_29, %c0_30] : memref<16x32x64xf32, #tpu.memory_space<vmem>>, vector<1x32x64xf32>
    %53 = vector.shape_cast %52 : vector<1x32x64xf32> to vector<32x64xf32>
    %cst_31 = arith.constant dense<0.000000e+00> : vector<64x64xf32>
    %54 = tpu.matmul %51, %53, %cst_31 {dimension_numbers = #tpu.dot_dimension_numbers<[1], [0], [0], [1], [0, 0, 1, 1], [], []>} : vector<64x32xf32>, vector<32x64xf32>, vector<64x64xf32> -> vector<64x64xf32>
    %55 = arith.addf %50, %54 : vector<64x64xf32>
    %56 = vector.extract_strided_slice %31 {offsets = [320, 0], sizes = [64, 32], strides = [1, 1]} : vector<1024x32xf32> to vector<64x32xf32>
    %c5 = arith.constant 5 : index
    %c0_32 = arith.constant 0 : index
    %c0_33 = arith.constant 0 : index
    %57 = vector.load %arg6[%c5, %c0_32, %c0_33] : memref<16x32x64xf32, #tpu.memory_space<vmem>>, vector<1x32x64xf32>
    %58 = vector.shape_cast %57 : vector<1x32x64xf32> to vector<32x64xf32>
    %cst_34 = arith.constant dense<0.000000e+00> : vector<64x64xf32>
    %59 = tpu.matmul %56, %58, %cst_34 {dimension_numbers = #tpu.dot_dimension_numbers<[1], [0], [0], [1], [0, 0, 1, 1], [], []>} : vector<64x32xf32>, vector<32x64xf32>, vector<64x64xf32> -> vector<64x64xf32>
    %60 = arith.addf %55, %59 : vector<64x64xf32>
    %61 = vector.extract_strided_slice %31 {offsets = [384, 0], sizes = [64, 32], strides = [1, 1]} : vector<1024x32xf32> to vector<64x32xf32>
    %c6 = arith.constant 6 : index
    %c0_35 = arith.constant 0 : index
    %c0_36 = arith.constant 0 : index
    %62 = vector.load %arg6[%c6, %c0_35, %c0_36] : memref<16x32x64xf32, #tpu.memory_space<vmem>>, vector<1x32x64xf32>
    %63 = vector.shape_cast %62 : vector<1x32x64xf32> to vector<32x64xf32>
    %cst_37 = arith.constant dense<0.000000e+00> : vector<64x64xf32>
    %64 = tpu.matmul %61, %63, %cst_37 {dimension_numbers = #tpu.dot_dimension_numbers<[1], [0], [0], [1], [0, 0, 1, 1], [], []>} : vector<64x32xf32>, vector<32x64xf32>, vector<64x64xf32> -> vector<64x64xf32>
    %65 = arith.addf %60, %64 : vector<64x64xf32>
    %66 = vector.extract_strided_slice %31 {offsets = [448, 0], sizes = [64, 32], strides = [1, 1]} : vector<1024x32xf32> to vector<64x32xf32>
    %c7 = arith.constant 7 : index
    %c0_38 = arith.constant 0 : index
    %c0_39 = arith.constant 0 : index
    %67 = vector.load %arg6[%c7, %c0_38, %c0_39] : memref<16x32x64xf32, #tpu.memory_space<vmem>>, vector<1x32x64xf32>
    %68 = vector.shape_cast %67 : vector<1x32x64xf32> to vector<32x64xf32>
    %cst_40 = arith.constant dense<0.000000e+00> : vector<64x64xf32>
    %69 = tpu.matmul %66, %68, %cst_40 {dimension_numbers = #tpu.dot_dimension_numbers<[1], [0], [0], [1], [0, 0, 1, 1], [], []>} : vector<64x32xf32>, vector<32x64xf32>, vector<64x64xf32> -> vector<64x64xf32>
    %70 = arith.addf %65, %69 : vector<64x64xf32>
    %71 = vector.extract_strided_slice %31 {offsets = [512, 0], sizes = [64, 32], strides = [1, 1]} : vector<1024x32xf32> to vector<64x32xf32>
    %c8 = arith.constant 8 : index
    %c0_41 = arith.constant 0 : index
    %c0_42 = arith.constant 0 : index
    %72 = vector.load %arg6[%c8, %c0_41, %c0_42] : memref<16x32x64xf32, #tpu.memory_space<vmem>>, vector<1x32x64xf32>
    %73 = vector.shape_cast %72 : vector<1x32x64xf32> to vector<32x64xf32>
    %cst_43 = arith.constant dense<0.000000e+00> : vector<64x64xf32>
    %74 = tpu.matmul %71, %73, %cst_43 {dimension_numbers = #tpu.dot_dimension_numbers<[1], [0], [0], [1], [0, 0, 1, 1], [], []>} : vector<64x32xf32>, vector<32x64xf32>, vector<64x64xf32> -> vector<64x64xf32>
    %75 = arith.addf %70, %74 : vector<64x64xf32>
    %76 = vector.extract_strided_slice %31 {offsets = [576, 0], sizes = [64, 32], strides = [1, 1]} : vector<1024x32xf32> to vector<64x32xf32>
    %c9 = arith.constant 9 : index
    %c0_44 = arith.constant 0 : index
    %c0_45 = arith.constant 0 : index
    %77 = vector.load %arg6[%c9, %c0_44, %c0_45] : memref<16x32x64xf32, #tpu.memory_space<vmem>>, vector<1x32x64xf32>
    %78 = vector.shape_cast %77 : vector<1x32x64xf32> to vector<32x64xf32>
    %cst_46 = arith.constant dense<0.000000e+00> : vector<64x64xf32>
    %79 = tpu.matmul %76, %78, %cst_46 {dimension_numbers = #tpu.dot_dimension_numbers<[1], [0], [0], [1], [0, 0, 1, 1], [], []>} : vector<64x32xf32>, vector<32x64xf32>, vector<64x64xf32> -> vector<64x64xf32>
    %80 = arith.addf %75, %79 : vector<64x64xf32>
    %81 = vector.extract_strided_slice %31 {offsets = [640, 0], sizes = [64, 32], strides = [1, 1]} : vector<1024x32xf32> to vector<64x32xf32>
    %c10 = arith.constant 10 : index
    %c0_47 = arith.constant 0 : index
    %c0_48 = arith.constant 0 : index
    %82 = vector.load %arg6[%c10, %c0_47, %c0_48] : memref<16x32x64xf32, #tpu.memory_space<vmem>>, vector<1x32x64xf32>
    %83 = vector.shape_cast %82 : vector<1x32x64xf32> to vector<32x64xf32>
    %cst_49 = arith.constant dense<0.000000e+00> : vector<64x64xf32>
    %84 = tpu.matmul %81, %83, %cst_49 {dimension_numbers = #tpu.dot_dimension_numbers<[1], [0], [0], [1], [0, 0, 1, 1], [], []>} : vector<64x32xf32>, vector<32x64xf32>, vector<64x64xf32> -> vector<64x64xf32>
    %85 = arith.addf %80, %84 : vector<64x64xf32>
    %86 = vector.extract_strided_slice %31 {offsets = [704, 0], sizes = [64, 32], strides = [1, 1]} : vector<1024x32xf32> to vector<64x32xf32>
    %c11 = arith.constant 11 : index
    %c0_50 = arith.constant 0 : index
    %c0_51 = arith.constant 0 : index
    %87 = vector.load %arg6[%c11, %c0_50, %c0_51] : memref<16x32x64xf32, #tpu.memory_space<vmem>>, vector<1x32x64xf32>
    %88 = vector.shape_cast %87 : vector<1x32x64xf32> to vector<32x64xf32>
    %cst_52 = arith.constant dense<0.000000e+00> : vector<64x64xf32>
    %89 = tpu.matmul %86, %88, %cst_52 {dimension_numbers = #tpu.dot_dimension_numbers<[1], [0], [0], [1], [0, 0, 1, 1], [], []>} : vector<64x32xf32>, vector<32x64xf32>, vector<64x64xf32> -> vector<64x64xf32>
    %90 = arith.addf %85, %89 : vector<64x64xf32>
    %91 = vector.extract_strided_slice %31 {offsets = [768, 0], sizes = [64, 32], strides = [1, 1]} : vector<1024x32xf32> to vector<64x32xf32>
    %c12 = arith.constant 12 : index
    %c0_53 = arith.constant 0 : index
    %c0_54 = arith.constant 0 : index
    %92 = vector.load %arg6[%c12, %c0_53, %c0_54] : memref<16x32x64xf32, #tpu.memory_space<vmem>>, vector<1x32x64xf32>
    %93 = vector.shape_cast %92 : vector<1x32x64xf32> to vector<32x64xf32>
    %cst_55 = arith.constant dense<0.000000e+00> : vector<64x64xf32>
    %94 = tpu.matmul %91, %93, %cst_55 {dimension_numbers = #tpu.dot_dimension_numbers<[1], [0], [0], [1], [0, 0, 1, 1], [], []>} : vector<64x32xf32>, vector<32x64xf32>, vector<64x64xf32> -> vector<64x64xf32>
    %95 = arith.addf %90, %94 : vector<64x64xf32>
    %96 = vector.extract_strided_slice %31 {offsets = [832, 0], sizes = [64, 32], strides = [1, 1]} : vector<1024x32xf32> to vector<64x32xf32>
    %c13 = arith.constant 13 : index
    %c0_56 = arith.constant 0 : index
    %c0_57 = arith.constant 0 : index
    %97 = vector.load %arg6[%c13, %c0_56, %c0_57] : memref<16x32x64xf32, #tpu.memory_space<vmem>>, vector<1x32x64xf32>
    %98 = vector.shape_cast %97 : vector<1x32x64xf32> to vector<32x64xf32>
    %cst_58 = arith.constant dense<0.000000e+00> : vector<64x64xf32>
    %99 = tpu.matmul %96, %98, %cst_58 {dimension_numbers = #tpu.dot_dimension_numbers<[1], [0], [0], [1], [0, 0, 1, 1], [], []>} : vector<64x32xf32>, vector<32x64xf32>, vector<64x64xf32> -> vector<64x64xf32>
    %100 = arith.addf %95, %99 : vector<64x64xf32>
    %101 = vector.extract_strided_slice %31 {offsets = [896, 0], sizes = [64, 32], strides = [1, 1]} : vector<1024x32xf32> to vector<64x32xf32>
    %c14 = arith.constant 14 : index
    %c0_59 = arith.constant 0 : index
    %c0_60 = arith.constant 0 : index
    %102 = vector.load %arg6[%c14, %c0_59, %c0_60] : memref<16x32x64xf32, #tpu.memory_space<vmem>>, vector<1x32x64xf32>
    %103 = vector.shape_cast %102 : vector<1x32x64xf32> to vector<32x64xf32>
    %cst_61 = arith.constant dense<0.000000e+00> : vector<64x64xf32>
    %104 = tpu.matmul %101, %103, %cst_61 {dimension_numbers = #tpu.dot_dimension_numbers<[1], [0], [0], [1], [0, 0, 1, 1], [], []>} : vector<64x32xf32>, vector<32x64xf32>, vector<64x64xf32> -> vector<64x64xf32>
    %105 = arith.addf %100, %104 : vector<64x64xf32>
    %106 = vector.extract_strided_slice %31 {offsets = [960, 0], sizes = [64, 32], strides = [1, 1]} : vector<1024x32xf32> to vector<64x32xf32>
    %c15 = arith.constant 15 : index
    %c0_62 = arith.constant 0 : index
    %c0_63 = arith.constant 0 : index
    %107 = vector.load %arg6[%c15, %c0_62, %c0_63] : memref<16x32x64xf32, #tpu.memory_space<vmem>>, vector<1x32x64xf32>
    %108 = vector.shape_cast %107 : vector<1x32x64xf32> to vector<32x64xf32>
    %cst_64 = arith.constant dense<0.000000e+00> : vector<64x64xf32>
    %109 = tpu.matmul %106, %108, %cst_64 {dimension_numbers = #tpu.dot_dimension_numbers<[1], [0], [0], [1], [0, 0, 1, 1], [], []>} : vector<64x32xf32>, vector<32x64xf32>, vector<64x64xf32> -> vector<64x64xf32>
    %110 = arith.addf %105, %109 : vector<64x64xf32>
    %c0_65 = arith.constant 0 : index
    %c0_66 = arith.constant 0 : index
    %111 = vector.load %arg7[%c0_65, %c0_66] : memref<1x64xf32, #tpu.memory_space<vmem>>, vector<1x64xf32>
    %112 = vector.broadcast %111 : vector<1x64xf32> to vector<64x64xf32>
    %113 = arith.addf %110, %112 : vector<64x64xf32>
    %cst_67 = arith.constant 0.000000e+00 : f32
    %114 = vector.broadcast %cst_67 : f32 to vector<64x64xf32>
    %115 = arith.cmpf ogt, %113, %114 : vector<64x64xf32>
    %cst_68 = arith.constant 2.000000e-01 : f32
    %116 = vector.broadcast %cst_68 : f32 to vector<64x64xf32>
    %117 = arith.mulf %116, %113 : vector<64x64xf32>
    %118 = arith.select %115, %113, %117 : vector<64x64xi1>, vector<64x64xf32>
    %cst_69 = arith.constant dense<0.000000e+00> : vector<64xf32>
    %119 = vector.multi_reduction <add>, %118, %cst_69 [0] : vector<64x64xf32> to vector<64xf32>
    %120 = vector.shape_cast %119 : vector<64xf32> to vector<1x64xf32>
    %cst_70 = arith.constant 6.400000e+01 : f32
    %121 = vector.broadcast %cst_70 : f32 to vector<1x64xf32>
    %122 = arith.divf %120, %121 : vector<1x64xf32>
    %123 = vector.broadcast %122 : vector<1x64xf32> to vector<64x64xf32>
    %124 = arith.subf %118, %123 : vector<64x64xf32>
    %125 = arith.mulf %124, %124 : vector<64x64xf32>
    %cst_71 = arith.constant dense<0.000000e+00> : vector<64xf32>
    %126 = vector.multi_reduction <add>, %125, %cst_71 [0] : vector<64x64xf32> to vector<64xf32>
    %127 = vector.shape_cast %126 : vector<64xf32> to vector<1x64xf32>
    %cst_72 = arith.constant 6.400000e+01 : f32
    %128 = vector.broadcast %cst_72 : f32 to vector<1x64xf32>
    %129 = arith.divf %127, %128 : vector<1x64xf32>
    %130 = vector.broadcast %122 : vector<1x64xf32> to vector<64x64xf32>
    %131 = arith.subf %118, %130 : vector<64x64xf32>
    %cst_73 = arith.constant 9.99999974E-6 : f32
    %132 = vector.broadcast %cst_73 : f32 to vector<1x64xf32>
    %133 = arith.addf %129, %132 : vector<1x64xf32>
    %134 = math.rsqrt %133 : vector<1x64xf32>
    %135 = vector.broadcast %134 : vector<1x64xf32> to vector<64x64xf32>
    %136 = arith.mulf %131, %135 : vector<64x64xf32>
    %c0_74 = arith.constant 0 : index
    %c0_75 = arith.constant 0 : index
    %137 = vector.load %arg8[%c0_74, %c0_75] : memref<256x64xf32, #tpu.memory_space<vmem>>, vector<256x64xf32>
    %cst_76 = arith.constant dense<0.000000e+00> : vector<256x64xf32>
    %138 = tpu.matmul %137, %136, %cst_76 {dimension_numbers = #tpu.dot_dimension_numbers<[1], [0], [0], [1], [0, 0, 1, 1], [], []>} : vector<256x64xf32>, vector<64x64xf32>, vector<256x64xf32> -> vector<256x64xf32>
    %139 = vector.extract_strided_slice %138 {offsets = [0, 0], sizes = [16, 64], strides = [1, 1]} : vector<256x64xf32> to vector<16x64xf32>
    %c0_77 = arith.constant 0 : index
    %c0_78 = arith.constant 0 : index
    %c0_79 = arith.constant 0 : index
    %140 = vector.load %arg9[%c0_77, %c0_78, %c0_79] : memref<16x64x16xf32, #tpu.memory_space<vmem>>, vector<1x64x16xf32>
    %141 = vector.shape_cast %140 : vector<1x64x16xf32> to vector<64x16xf32>
    %cst_80 = arith.constant dense<0.000000e+00> : vector<16x16xf32>
    %142 = tpu.matmul %139, %141, %cst_80 {dimension_numbers = #tpu.dot_dimension_numbers<[1], [0], [0], [1], [0, 0, 1, 1], [], []>} : vector<16x64xf32>, vector<64x16xf32>, vector<16x16xf32> -> vector<16x16xf32>
    %143 = vector.extract_strided_slice %138 {offsets = [16, 0], sizes = [16, 64], strides = [1, 1]} : vector<256x64xf32> to vector<16x64xf32>
    %c1_81 = arith.constant 1 : index
    %c0_82 = arith.constant 0 : index
    %c0_83 = arith.constant 0 : index
    %144 = vector.load %arg9[%c1_81, %c0_82, %c0_83] : memref<16x64x16xf32, #tpu.memory_space<vmem>>, vector<1x64x16xf32>
    %145 = vector.shape_cast %144 : vector<1x64x16xf32> to vector<64x16xf32>
    %cst_84 = arith.constant dense<0.000000e+00> : vector<16x16xf32>
    %146 = tpu.matmul %143, %145, %cst_84 {dimension_numbers = #tpu.dot_dimension_numbers<[1], [0], [0], [1], [0, 0, 1, 1], [], []>} : vector<16x64xf32>, vector<64x16xf32>, vector<16x16xf32> -> vector<16x16xf32>
    %147 = arith.addf %142, %146 : vector<16x16xf32>
    %148 = vector.extract_strided_slice %138 {offsets = [32, 0], sizes = [16, 64], strides = [1, 1]} : vector<256x64xf32> to vector<16x64xf32>
    %c2_85 = arith.constant 2 : index
    %c0_86 = arith.constant 0 : index
    %c0_87 = arith.constant 0 : index
    %149 = vector.load %arg9[%c2_85, %c0_86, %c0_87] : memref<16x64x16xf32, #tpu.memory_space<vmem>>, vector<1x64x16xf32>
    %150 = vector.shape_cast %149 : vector<1x64x16xf32> to vector<64x16xf32>
    %cst_88 = arith.constant dense<0.000000e+00> : vector<16x16xf32>
    %151 = tpu.matmul %148, %150, %cst_88 {dimension_numbers = #tpu.dot_dimension_numbers<[1], [0], [0], [1], [0, 0, 1, 1], [], []>} : vector<16x64xf32>, vector<64x16xf32>, vector<16x16xf32> -> vector<16x16xf32>
    %152 = arith.addf %147, %151 : vector<16x16xf32>
    %153 = vector.extract_strided_slice %138 {offsets = [48, 0], sizes = [16, 64], strides = [1, 1]} : vector<256x64xf32> to vector<16x64xf32>
    %c3_89 = arith.constant 3 : index
    %c0_90 = arith.constant 0 : index
    %c0_91 = arith.constant 0 : index
    %154 = vector.load %arg9[%c3_89, %c0_90, %c0_91] : memref<16x64x16xf32, #tpu.memory_space<vmem>>, vector<1x64x16xf32>
    %155 = vector.shape_cast %154 : vector<1x64x16xf32> to vector<64x16xf32>
    %cst_92 = arith.constant dense<0.000000e+00> : vector<16x16xf32>
    %156 = tpu.matmul %153, %155, %cst_92 {dimension_numbers = #tpu.dot_dimension_numbers<[1], [0], [0], [1], [0, 0, 1, 1], [], []>} : vector<16x64xf32>, vector<64x16xf32>, vector<16x16xf32> -> vector<16x16xf32>
    %157 = arith.addf %152, %156 : vector<16x16xf32>
    %158 = vector.extract_strided_slice %138 {offsets = [64, 0], sizes = [16, 64], strides = [1, 1]} : vector<256x64xf32> to vector<16x64xf32>
    %c4_93 = arith.constant 4 : index
    %c0_94 = arith.constant 0 : index
    %c0_95 = arith.constant 0 : index
    %159 = vector.load %arg9[%c4_93, %c0_94, %c0_95] : memref<16x64x16xf32, #tpu.memory_space<vmem>>, vector<1x64x16xf32>
    %160 = vector.shape_cast %159 : vector<1x64x16xf32> to vector<64x16xf32>
    %cst_96 = arith.constant dense<0.000000e+00> : vector<16x16xf32>
    %161 = tpu.matmul %158, %160, %cst_96 {dimension_numbers = #tpu.dot_dimension_numbers<[1], [0], [0], [1], [0, 0, 1, 1], [], []>} : vector<16x64xf32>, vector<64x16xf32>, vector<16x16xf32> -> vector<16x16xf32>
    %162 = arith.addf %157, %161 : vector<16x16xf32>
    %163 = vector.extract_strided_slice %138 {offsets = [80, 0], sizes = [16, 64], strides = [1, 1]} : vector<256x64xf32> to vector<16x64xf32>
    %c5_97 = arith.constant 5 : index
    %c0_98 = arith.constant 0 : index
    %c0_99 = arith.constant 0 : index
    %164 = vector.load %arg9[%c5_97, %c0_98, %c0_99] : memref<16x64x16xf32, #tpu.memory_space<vmem>>, vector<1x64x16xf32>
    %165 = vector.shape_cast %164 : vector<1x64x16xf32> to vector<64x16xf32>
    %cst_100 = arith.constant dense<0.000000e+00> : vector<16x16xf32>
    %166 = tpu.matmul %163, %165, %cst_100 {dimension_numbers = #tpu.dot_dimension_numbers<[1], [0], [0], [1], [0, 0, 1, 1], [], []>} : vector<16x64xf32>, vector<64x16xf32>, vector<16x16xf32> -> vector<16x16xf32>
    %167 = arith.addf %162, %166 : vector<16x16xf32>
    %168 = vector.extract_strided_slice %138 {offsets = [96, 0], sizes = [16, 64], strides = [1, 1]} : vector<256x64xf32> to vector<16x64xf32>
    %c6_101 = arith.constant 6 : index
    %c0_102 = arith.constant 0 : index
    %c0_103 = arith.constant 0 : index
    %169 = vector.load %arg9[%c6_101, %c0_102, %c0_103] : memref<16x64x16xf32, #tpu.memory_space<vmem>>, vector<1x64x16xf32>
    %170 = vector.shape_cast %169 : vector<1x64x16xf32> to vector<64x16xf32>
    %cst_104 = arith.constant dense<0.000000e+00> : vector<16x16xf32>
    %171 = tpu.matmul %168, %170, %cst_104 {dimension_numbers = #tpu.dot_dimension_numbers<[1], [0], [0], [1], [0, 0, 1, 1], [], []>} : vector<16x64xf32>, vector<64x16xf32>, vector<16x16xf32> -> vector<16x16xf32>
    %172 = arith.addf %167, %171 : vector<16x16xf32>
    %173 = vector.extract_strided_slice %138 {offsets = [112, 0], sizes = [16, 64], strides = [1, 1]} : vector<256x64xf32> to vector<16x64xf32>
    %c7_105 = arith.constant 7 : index
    %c0_106 = arith.constant 0 : index
    %c0_107 = arith.constant 0 : index
    %174 = vector.load %arg9[%c7_105, %c0_106, %c0_107] : memref<16x64x16xf32, #tpu.memory_space<vmem>>, vector<1x64x16xf32>
    %175 = vector.shape_cast %174 : vector<1x64x16xf32> to vector<64x16xf32>
    %cst_108 = arith.constant dense<0.000000e+00> : vector<16x16xf32>
    %176 = tpu.matmul %173, %175, %cst_108 {dimension_numbers = #tpu.dot_dimension_numbers<[1], [0], [0], [1], [0, 0, 1, 1], [], []>} : vector<16x64xf32>, vector<64x16xf32>, vector<16x16xf32> -> vector<16x16xf32>
    %177 = arith.addf %172, %176 : vector<16x16xf32>
    %178 = vector.extract_strided_slice %138 {offsets = [128, 0], sizes = [16, 64], strides = [1, 1]} : vector<256x64xf32> to vector<16x64xf32>
    %c8_109 = arith.constant 8 : index
    %c0_110 = arith.constant 0 : index
    %c0_111 = arith.constant 0 : index
    %179 = vector.load %arg9[%c8_109, %c0_110, %c0_111] : memref<16x64x16xf32, #tpu.memory_space<vmem>>, vector<1x64x16xf32>
    %180 = vector.shape_cast %179 : vector<1x64x16xf32> to vector<64x16xf32>
    %cst_112 = arith.constant dense<0.000000e+00> : vector<16x16xf32>
    %181 = tpu.matmul %178, %180, %cst_112 {dimension_numbers = #tpu.dot_dimension_numbers<[1], [0], [0], [1], [0, 0, 1, 1], [], []>} : vector<16x64xf32>, vector<64x16xf32>, vector<16x16xf32> -> vector<16x16xf32>
    %182 = arith.addf %177, %181 : vector<16x16xf32>
    %183 = vector.extract_strided_slice %138 {offsets = [144, 0], sizes = [16, 64], strides = [1, 1]} : vector<256x64xf32> to vector<16x64xf32>
    %c9_113 = arith.constant 9 : index
    %c0_114 = arith.constant 0 : index
    %c0_115 = arith.constant 0 : index
    %184 = vector.load %arg9[%c9_113, %c0_114, %c0_115] : memref<16x64x16xf32, #tpu.memory_space<vmem>>, vector<1x64x16xf32>
    %185 = vector.shape_cast %184 : vector<1x64x16xf32> to vector<64x16xf32>
    %cst_116 = arith.constant dense<0.000000e+00> : vector<16x16xf32>
    %186 = tpu.matmul %183, %185, %cst_116 {dimension_numbers = #tpu.dot_dimension_numbers<[1], [0], [0], [1], [0, 0, 1, 1], [], []>} : vector<16x64xf32>, vector<64x16xf32>, vector<16x16xf32> -> vector<16x16xf32>
    %187 = arith.addf %182, %186 : vector<16x16xf32>
    %188 = vector.extract_strided_slice %138 {offsets = [160, 0], sizes = [16, 64], strides = [1, 1]} : vector<256x64xf32> to vector<16x64xf32>
    %c10_117 = arith.constant 10 : index
    %c0_118 = arith.constant 0 : index
    %c0_119 = arith.constant 0 : index
    %189 = vector.load %arg9[%c10_117, %c0_118, %c0_119] : memref<16x64x16xf32, #tpu.memory_space<vmem>>, vector<1x64x16xf32>
    %190 = vector.shape_cast %189 : vector<1x64x16xf32> to vector<64x16xf32>
    %cst_120 = arith.constant dense<0.000000e+00> : vector<16x16xf32>
    %191 = tpu.matmul %188, %190, %cst_120 {dimension_numbers = #tpu.dot_dimension_numbers<[1], [0], [0], [1], [0, 0, 1, 1], [], []>} : vector<16x64xf32>, vector<64x16xf32>, vector<16x16xf32> -> vector<16x16xf32>
    %192 = arith.addf %187, %191 : vector<16x16xf32>
    %193 = vector.extract_strided_slice %138 {offsets = [176, 0], sizes = [16, 64], strides = [1, 1]} : vector<256x64xf32> to vector<16x64xf32>
    %c11_121 = arith.constant 11 : index
    %c0_122 = arith.constant 0 : index
    %c0_123 = arith.constant 0 : index
    %194 = vector.load %arg9[%c11_121, %c0_122, %c0_123] : memref<16x64x16xf32, #tpu.memory_space<vmem>>, vector<1x64x16xf32>
    %195 = vector.shape_cast %194 : vector<1x64x16xf32> to vector<64x16xf32>
    %cst_124 = arith.constant dense<0.000000e+00> : vector<16x16xf32>
    %196 = tpu.matmul %193, %195, %cst_124 {dimension_numbers = #tpu.dot_dimension_numbers<[1], [0], [0], [1], [0, 0, 1, 1], [], []>} : vector<16x64xf32>, vector<64x16xf32>, vector<16x16xf32> -> vector<16x16xf32>
    %197 = arith.addf %192, %196 : vector<16x16xf32>
    %198 = vector.extract_strided_slice %138 {offsets = [192, 0], sizes = [16, 64], strides = [1, 1]} : vector<256x64xf32> to vector<16x64xf32>
    %c12_125 = arith.constant 12 : index
    %c0_126 = arith.constant 0 : index
    %c0_127 = arith.constant 0 : index
    %199 = vector.load %arg9[%c12_125, %c0_126, %c0_127] : memref<16x64x16xf32, #tpu.memory_space<vmem>>, vector<1x64x16xf32>
    %200 = vector.shape_cast %199 : vector<1x64x16xf32> to vector<64x16xf32>
    %cst_128 = arith.constant dense<0.000000e+00> : vector<16x16xf32>
    %201 = tpu.matmul %198, %200, %cst_128 {dimension_numbers = #tpu.dot_dimension_numbers<[1], [0], [0], [1], [0, 0, 1, 1], [], []>} : vector<16x64xf32>, vector<64x16xf32>, vector<16x16xf32> -> vector<16x16xf32>
    %202 = arith.addf %197, %201 : vector<16x16xf32>
    %203 = vector.extract_strided_slice %138 {offsets = [208, 0], sizes = [16, 64], strides = [1, 1]} : vector<256x64xf32> to vector<16x64xf32>
    %c13_129 = arith.constant 13 : index
    %c0_130 = arith.constant 0 : index
    %c0_131 = arith.constant 0 : index
    %204 = vector.load %arg9[%c13_129, %c0_130, %c0_131] : memref<16x64x16xf32, #tpu.memory_space<vmem>>, vector<1x64x16xf32>
    %205 = vector.shape_cast %204 : vector<1x64x16xf32> to vector<64x16xf32>
    %cst_132 = arith.constant dense<0.000000e+00> : vector<16x16xf32>
    %206 = tpu.matmul %203, %205, %cst_132 {dimension_numbers = #tpu.dot_dimension_numbers<[1], [0], [0], [1], [0, 0, 1, 1], [], []>} : vector<16x64xf32>, vector<64x16xf32>, vector<16x16xf32> -> vector<16x16xf32>
    %207 = arith.addf %202, %206 : vector<16x16xf32>
    %208 = vector.extract_strided_slice %138 {offsets = [224, 0], sizes = [16, 64], strides = [1, 1]} : vector<256x64xf32> to vector<16x64xf32>
    %c14_133 = arith.constant 14 : index
    %c0_134 = arith.constant 0 : index
    %c0_135 = arith.constant 0 : index
    %209 = vector.load %arg9[%c14_133, %c0_134, %c0_135] : memref<16x64x16xf32, #tpu.memory_space<vmem>>, vector<1x64x16xf32>
    %210 = vector.shape_cast %209 : vector<1x64x16xf32> to vector<64x16xf32>
    %cst_136 = arith.constant dense<0.000000e+00> : vector<16x16xf32>
    %211 = tpu.matmul %208, %210, %cst_136 {dimension_numbers = #tpu.dot_dimension_numbers<[1], [0], [0], [1], [0, 0, 1, 1], [], []>} : vector<16x64xf32>, vector<64x16xf32>, vector<16x16xf32> -> vector<16x16xf32>
    %212 = arith.addf %207, %211 : vector<16x16xf32>
    %213 = vector.extract_strided_slice %138 {offsets = [240, 0], sizes = [16, 64], strides = [1, 1]} : vector<256x64xf32> to vector<16x64xf32>
    %c15_137 = arith.constant 15 : index
    %c0_138 = arith.constant 0 : index
    %c0_139 = arith.constant 0 : index
    %214 = vector.load %arg9[%c15_137, %c0_138, %c0_139] : memref<16x64x16xf32, #tpu.memory_space<vmem>>, vector<1x64x16xf32>
    %215 = vector.shape_cast %214 : vector<1x64x16xf32> to vector<64x16xf32>
    %cst_140 = arith.constant dense<0.000000e+00> : vector<16x16xf32>
    %216 = tpu.matmul %213, %215, %cst_140 {dimension_numbers = #tpu.dot_dimension_numbers<[1], [0], [0], [1], [0, 0, 1, 1], [], []>} : vector<16x64xf32>, vector<64x16xf32>, vector<16x16xf32> -> vector<16x16xf32>
    %217 = arith.addf %212, %216 : vector<16x16xf32>
    %c0_141 = arith.constant 0 : index
    %c0_142 = arith.constant 0 : index
    %218 = vector.load %arg10[%c0_141, %c0_142] : memref<1x16xf32, #tpu.memory_space<vmem>>, vector<1x16xf32>
    %219 = vector.broadcast %218 : vector<1x16xf32> to vector<16x16xf32>
    %220 = arith.addf %217, %219 : vector<16x16xf32>
    %cst_143 = arith.constant 0.000000e+00 : f32
    %221 = vector.broadcast %cst_143 : f32 to vector<16x16xf32>
    %222 = arith.cmpf ogt, %220, %221 : vector<16x16xf32>
    %cst_144 = arith.constant 2.000000e-01 : f32
    %223 = vector.broadcast %cst_144 : f32 to vector<16x16xf32>
    %224 = arith.mulf %223, %220 : vector<16x16xf32>
    %225 = arith.select %222, %220, %224 : vector<16x16xi1>, vector<16x16xf32>
    %cst_145 = arith.constant dense<0.000000e+00> : vector<16xf32>
    %226 = vector.multi_reduction <add>, %225, %cst_145 [0] : vector<16x16xf32> to vector<16xf32>
    %227 = vector.shape_cast %226 : vector<16xf32> to vector<1x16xf32>
    %cst_146 = arith.constant 1.600000e+01 : f32
    %228 = vector.broadcast %cst_146 : f32 to vector<1x16xf32>
    %229 = arith.divf %227, %228 : vector<1x16xf32>
    %230 = vector.broadcast %229 : vector<1x16xf32> to vector<16x16xf32>
    %231 = arith.subf %225, %230 : vector<16x16xf32>
    %232 = arith.mulf %231, %231 : vector<16x16xf32>
    %cst_147 = arith.constant dense<0.000000e+00> : vector<16xf32>
    %233 = vector.multi_reduction <add>, %232, %cst_147 [0] : vector<16x16xf32> to vector<16xf32>
    %234 = vector.shape_cast %233 : vector<16xf32> to vector<1x16xf32>
    %cst_148 = arith.constant 1.600000e+01 : f32
    %235 = vector.broadcast %cst_148 : f32 to vector<1x16xf32>
    %236 = arith.divf %234, %235 : vector<1x16xf32>
    %237 = vector.broadcast %229 : vector<1x16xf32> to vector<16x16xf32>
    %238 = arith.subf %225, %237 : vector<16x16xf32>
    %cst_149 = arith.constant 9.99999974E-6 : f32
    %239 = vector.broadcast %cst_149 : f32 to vector<1x16xf32>
    %240 = arith.addf %236, %239 : vector<1x16xf32>
    %241 = math.rsqrt %240 : vector<1x16xf32>
    %242 = vector.broadcast %241 : vector<1x16xf32> to vector<16x16xf32>
    %243 = arith.mulf %238, %242 : vector<16x16xf32>
    %c0_150 = arith.constant 0 : index
    %c0_151 = arith.constant 0 : index
    %244 = vector.load %arg11[%c0_150, %c0_151] : memref<128x16xf32, #tpu.memory_space<vmem>>, vector<128x16xf32>
    %cst_152 = arith.constant dense<0.000000e+00> : vector<128x16xf32>
    %245 = tpu.matmul %244, %243, %cst_152 {dimension_numbers = #tpu.dot_dimension_numbers<[1], [0], [0], [1], [0, 0, 1, 1], [], []>} : vector<128x16xf32>, vector<16x16xf32>, vector<128x16xf32> -> vector<128x16xf32>
    %246 = vector.extract_strided_slice %245 {offsets = [0, 0], sizes = [8, 16], strides = [1, 1]} : vector<128x16xf32> to vector<8x16xf32>
    %c0_153 = arith.constant 0 : index
    %c0_154 = arith.constant 0 : index
    %c0_155 = arith.constant 0 : index
    %247 = vector.load %arg12[%c0_153, %c0_154, %c0_155] : memref<16x16x16xf32, #tpu.memory_space<vmem>>, vector<1x16x16xf32>
    %248 = vector.shape_cast %247 : vector<1x16x16xf32> to vector<16x16xf32>
    %cst_156 = arith.constant dense<0.000000e+00> : vector<8x16xf32>
    %249 = tpu.matmul %246, %248, %cst_156 {dimension_numbers = #tpu.dot_dimension_numbers<[1], [0], [0], [1], [0, 0, 1, 1], [], []>} : vector<8x16xf32>, vector<16x16xf32>, vector<8x16xf32> -> vector<8x16xf32>
    %250 = vector.extract_strided_slice %245 {offsets = [8, 0], sizes = [8, 16], strides = [1, 1]} : vector<128x16xf32> to vector<8x16xf32>
    %c1_157 = arith.constant 1 : index
    %c0_158 = arith.constant 0 : index
    %c0_159 = arith.constant 0 : index
    %251 = vector.load %arg12[%c1_157, %c0_158, %c0_159] : memref<16x16x16xf32, #tpu.memory_space<vmem>>, vector<1x16x16xf32>
    %252 = vector.shape_cast %251 : vector<1x16x16xf32> to vector<16x16xf32>
    %cst_160 = arith.constant dense<0.000000e+00> : vector<8x16xf32>
    %253 = tpu.matmul %250, %252, %cst_160 {dimension_numbers = #tpu.dot_dimension_numbers<[1], [0], [0], [1], [0, 0, 1, 1], [], []>} : vector<8x16xf32>, vector<16x16xf32>, vector<8x16xf32> -> vector<8x16xf32>
    %254 = arith.addf %249, %253 : vector<8x16xf32>
    %255 = vector.extract_strided_slice %245 {offsets = [16, 0], sizes = [8, 16], strides = [1, 1]} : vector<128x16xf32> to vector<8x16xf32>
    %c2_161 = arith.constant 2 : index
    %c0_162 = arith.constant 0 : index
    %c0_163 = arith.constant 0 : index
    %256 = vector.load %arg12[%c2_161, %c0_162, %c0_163] : memref<16x16x16xf32, #tpu.memory_space<vmem>>, vector<1x16x16xf32>
    %257 = vector.shape_cast %256 : vector<1x16x16xf32> to vector<16x16xf32>
    %cst_164 = arith.constant dense<0.000000e+00> : vector<8x16xf32>
    %258 = tpu.matmul %255, %257, %cst_164 {dimension_numbers = #tpu.dot_dimension_numbers<[1], [0], [0], [1], [0, 0, 1, 1], [], []>} : vector<8x16xf32>, vector<16x16xf32>, vector<8x16xf32> -> vector<8x16xf32>
    %259 = arith.addf %254, %258 : vector<8x16xf32>
    %260 = vector.extract_strided_slice %245 {offsets = [24, 0], sizes = [8, 16], strides = [1, 1]} : vector<128x16xf32> to vector<8x16xf32>
    %c3_165 = arith.constant 3 : index
    %c0_166 = arith.constant 0 : index
    %c0_167 = arith.constant 0 : index
    %261 = vector.load %arg12[%c3_165, %c0_166, %c0_167] : memref<16x16x16xf32, #tpu.memory_space<vmem>>, vector<1x16x16xf32>
    %262 = vector.shape_cast %261 : vector<1x16x16xf32> to vector<16x16xf32>
    %cst_168 = arith.constant dense<0.000000e+00> : vector<8x16xf32>
    %263 = tpu.matmul %260, %262, %cst_168 {dimension_numbers = #tpu.dot_dimension_numbers<[1], [0], [0], [1], [0, 0, 1, 1], [], []>} : vector<8x16xf32>, vector<16x16xf32>, vector<8x16xf32> -> vector<8x16xf32>
    %264 = arith.addf %259, %263 : vector<8x16xf32>
    %265 = vector.extract_strided_slice %245 {offsets = [32, 0], sizes = [8, 16], strides = [1, 1]} : vector<128x16xf32> to vector<8x16xf32>
    %c4_169 = arith.constant 4 : index
    %c0_170 = arith.constant 0 : index
    %c0_171 = arith.constant 0 : index
    %266 = vector.load %arg12[%c4_169, %c0_170, %c0_171] : memref<16x16x16xf32, #tpu.memory_space<vmem>>, vector<1x16x16xf32>
    %267 = vector.shape_cast %266 : vector<1x16x16xf32> to vector<16x16xf32>
    %cst_172 = arith.constant dense<0.000000e+00> : vector<8x16xf32>
    %268 = tpu.matmul %265, %267, %cst_172 {dimension_numbers = #tpu.dot_dimension_numbers<[1], [0], [0], [1], [0, 0, 1, 1], [], []>} : vector<8x16xf32>, vector<16x16xf32>, vector<8x16xf32> -> vector<8x16xf32>
    %269 = arith.addf %264, %268 : vector<8x16xf32>
    %270 = vector.extract_strided_slice %245 {offsets = [40, 0], sizes = [8, 16], strides = [1, 1]} : vector<128x16xf32> to vector<8x16xf32>
    %c5_173 = arith.constant 5 : index
    %c0_174 = arith.constant 0 : index
    %c0_175 = arith.constant 0 : index
    %271 = vector.load %arg12[%c5_173, %c0_174, %c0_175] : memref<16x16x16xf32, #tpu.memory_space<vmem>>, vector<1x16x16xf32>
    %272 = vector.shape_cast %271 : vector<1x16x16xf32> to vector<16x16xf32>
    %cst_176 = arith.constant dense<0.000000e+00> : vector<8x16xf32>
    %273 = tpu.matmul %270, %272, %cst_176 {dimension_numbers = #tpu.dot_dimension_numbers<[1], [0], [0], [1], [0, 0, 1, 1], [], []>} : vector<8x16xf32>, vector<16x16xf32>, vector<8x16xf32> -> vector<8x16xf32>
    %274 = arith.addf %269, %273 : vector<8x16xf32>
    %275 = vector.extract_strided_slice %245 {offsets = [48, 0], sizes = [8, 16], strides = [1, 1]} : vector<128x16xf32> to vector<8x16xf32>
    %c6_177 = arith.constant 6 : index
    %c0_178 = arith.constant 0 : index
    %c0_179 = arith.constant 0 : index
    %276 = vector.load %arg12[%c6_177, %c0_178, %c0_179] : memref<16x16x16xf32, #tpu.memory_space<vmem>>, vector<1x16x16xf32>
    %277 = vector.shape_cast %276 : vector<1x16x16xf32> to vector<16x16xf32>
    %cst_180 = arith.constant dense<0.000000e+00> : vector<8x16xf32>
    %278 = tpu.matmul %275, %277, %cst_180 {dimension_numbers = #tpu.dot_dimension_numbers<[1], [0], [0], [1], [0, 0, 1, 1], [], []>} : vector<8x16xf32>, vector<16x16xf32>, vector<8x16xf32> -> vector<8x16xf32>
    %279 = arith.addf %274, %278 : vector<8x16xf32>
    %280 = vector.extract_strided_slice %245 {offsets = [56, 0], sizes = [8, 16], strides = [1, 1]} : vector<128x16xf32> to vector<8x16xf32>
    %c7_181 = arith.constant 7 : index
    %c0_182 = arith.constant 0 : index
    %c0_183 = arith.constant 0 : index
    %281 = vector.load %arg12[%c7_181, %c0_182, %c0_183] : memref<16x16x16xf32, #tpu.memory_space<vmem>>, vector<1x16x16xf32>
    %282 = vector.shape_cast %281 : vector<1x16x16xf32> to vector<16x16xf32>
    %cst_184 = arith.constant dense<0.000000e+00> : vector<8x16xf32>
    %283 = tpu.matmul %280, %282, %cst_184 {dimension_numbers = #tpu.dot_dimension_numbers<[1], [0], [0], [1], [0, 0, 1, 1], [], []>} : vector<8x16xf32>, vector<16x16xf32>, vector<8x16xf32> -> vector<8x16xf32>
    %284 = arith.addf %279, %283 : vector<8x16xf32>
    %285 = vector.extract_strided_slice %245 {offsets = [64, 0], sizes = [8, 16], strides = [1, 1]} : vector<128x16xf32> to vector<8x16xf32>
    %c8_185 = arith.constant 8 : index
    %c0_186 = arith.constant 0 : index
    %c0_187 = arith.constant 0 : index
    %286 = vector.load %arg12[%c8_185, %c0_186, %c0_187] : memref<16x16x16xf32, #tpu.memory_space<vmem>>, vector<1x16x16xf32>
    %287 = vector.shape_cast %286 : vector<1x16x16xf32> to vector<16x16xf32>
    %cst_188 = arith.constant dense<0.000000e+00> : vector<8x16xf32>
    %288 = tpu.matmul %285, %287, %cst_188 {dimension_numbers = #tpu.dot_dimension_numbers<[1], [0], [0], [1], [0, 0, 1, 1], [], []>} : vector<8x16xf32>, vector<16x16xf32>, vector<8x16xf32> -> vector<8x16xf32>
    %289 = arith.addf %284, %288 : vector<8x16xf32>
    %290 = vector.extract_strided_slice %245 {offsets = [72, 0], sizes = [8, 16], strides = [1, 1]} : vector<128x16xf32> to vector<8x16xf32>
    %c9_189 = arith.constant 9 : index
    %c0_190 = arith.constant 0 : index
    %c0_191 = arith.constant 0 : index
    %291 = vector.load %arg12[%c9_189, %c0_190, %c0_191] : memref<16x16x16xf32, #tpu.memory_space<vmem>>, vector<1x16x16xf32>
    %292 = vector.shape_cast %291 : vector<1x16x16xf32> to vector<16x16xf32>
    %cst_192 = arith.constant dense<0.000000e+00> : vector<8x16xf32>
    %293 = tpu.matmul %290, %292, %cst_192 {dimension_numbers = #tpu.dot_dimension_numbers<[1], [0], [0], [1], [0, 0, 1, 1], [], []>} : vector<8x16xf32>, vector<16x16xf32>, vector<8x16xf32> -> vector<8x16xf32>
    %294 = arith.addf %289, %293 : vector<8x16xf32>
    %295 = vector.extract_strided_slice %245 {offsets = [80, 0], sizes = [8, 16], strides = [1, 1]} : vector<128x16xf32> to vector<8x16xf32>
    %c10_193 = arith.constant 10 : index
    %c0_194 = arith.constant 0 : index
    %c0_195 = arith.constant 0 : index
    %296 = vector.load %arg12[%c10_193, %c0_194, %c0_195] : memref<16x16x16xf32, #tpu.memory_space<vmem>>, vector<1x16x16xf32>
    %297 = vector.shape_cast %296 : vector<1x16x16xf32> to vector<16x16xf32>
    %cst_196 = arith.constant dense<0.000000e+00> : vector<8x16xf32>
    %298 = tpu.matmul %295, %297, %cst_196 {dimension_numbers = #tpu.dot_dimension_numbers<[1], [0], [0], [1], [0, 0, 1, 1], [], []>} : vector<8x16xf32>, vector<16x16xf32>, vector<8x16xf32> -> vector<8x16xf32>
    %299 = arith.addf %294, %298 : vector<8x16xf32>
    %300 = vector.extract_strided_slice %245 {offsets = [88, 0], sizes = [8, 16], strides = [1, 1]} : vector<128x16xf32> to vector<8x16xf32>
    %c11_197 = arith.constant 11 : index
    %c0_198 = arith.constant 0 : index
    %c0_199 = arith.constant 0 : index
    %301 = vector.load %arg12[%c11_197, %c0_198, %c0_199] : memref<16x16x16xf32, #tpu.memory_space<vmem>>, vector<1x16x16xf32>
    %302 = vector.shape_cast %301 : vector<1x16x16xf32> to vector<16x16xf32>
    %cst_200 = arith.constant dense<0.000000e+00> : vector<8x16xf32>
    %303 = tpu.matmul %300, %302, %cst_200 {dimension_numbers = #tpu.dot_dimension_numbers<[1], [0], [0], [1], [0, 0, 1, 1], [], []>} : vector<8x16xf32>, vector<16x16xf32>, vector<8x16xf32> -> vector<8x16xf32>
    %304 = arith.addf %299, %303 : vector<8x16xf32>
    %305 = vector.extract_strided_slice %245 {offsets = [96, 0], sizes = [8, 16], strides = [1, 1]} : vector<128x16xf32> to vector<8x16xf32>
    %c12_201 = arith.constant 12 : index
    %c0_202 = arith.constant 0 : index
    %c0_203 = arith.constant 0 : index
    %306 = vector.load %arg12[%c12_201, %c0_202, %c0_203] : memref<16x16x16xf32, #tpu.memory_space<vmem>>, vector<1x16x16xf32>
    %307 = vector.shape_cast %306 : vector<1x16x16xf32> to vector<16x16xf32>
    %cst_204 = arith.constant dense<0.000000e+00> : vector<8x16xf32>
    %308 = tpu.matmul %305, %307, %cst_204 {dimension_numbers = #tpu.dot_dimension_numbers<[1], [0], [0], [1], [0, 0, 1, 1], [], []>} : vector<8x16xf32>, vector<16x16xf32>, vector<8x16xf32> -> vector<8x16xf32>
    %309 = arith.addf %304, %308 : vector<8x16xf32>
    %310 = vector.extract_strided_slice %245 {offsets = [104, 0], sizes = [8, 16], strides = [1, 1]} : vector<128x16xf32> to vector<8x16xf32>
    %c13_205 = arith.constant 13 : index
    %c0_206 = arith.constant 0 : index
    %c0_207 = arith.constant 0 : index
    %311 = vector.load %arg12[%c13_205, %c0_206, %c0_207] : memref<16x16x16xf32, #tpu.memory_space<vmem>>, vector<1x16x16xf32>
    %312 = vector.shape_cast %311 : vector<1x16x16xf32> to vector<16x16xf32>
    %cst_208 = arith.constant dense<0.000000e+00> : vector<8x16xf32>
    %313 = tpu.matmul %310, %312, %cst_208 {dimension_numbers = #tpu.dot_dimension_numbers<[1], [0], [0], [1], [0, 0, 1, 1], [], []>} : vector<8x16xf32>, vector<16x16xf32>, vector<8x16xf32> -> vector<8x16xf32>
    %314 = arith.addf %309, %313 : vector<8x16xf32>
    %315 = vector.extract_strided_slice %245 {offsets = [112, 0], sizes = [8, 16], strides = [1, 1]} : vector<128x16xf32> to vector<8x16xf32>
    %c14_209 = arith.constant 14 : index
    %c0_210 = arith.constant 0 : index
    %c0_211 = arith.constant 0 : index
    %316 = vector.load %arg12[%c14_209, %c0_210, %c0_211] : memref<16x16x16xf32, #tpu.memory_space<vmem>>, vector<1x16x16xf32>
    %317 = vector.shape_cast %316 : vector<1x16x16xf32> to vector<16x16xf32>
    %cst_212 = arith.constant dense<0.000000e+00> : vector<8x16xf32>
    %318 = tpu.matmul %315, %317, %cst_212 {dimension_numbers = #tpu.dot_dimension_numbers<[1], [0], [0], [1], [0, 0, 1, 1], [], []>} : vector<8x16xf32>, vector<16x16xf32>, vector<8x16xf32> -> vector<8x16xf32>
    %319 = arith.addf %314, %318 : vector<8x16xf32>
    %320 = vector.extract_strided_slice %245 {offsets = [120, 0], sizes = [8, 16], strides = [1, 1]} : vector<128x16xf32> to vector<8x16xf32>
    %c15_213 = arith.constant 15 : index
    %c0_214 = arith.constant 0 : index
    %c0_215 = arith.constant 0 : index
    %321 = vector.load %arg12[%c15_213, %c0_214, %c0_215] : memref<16x16x16xf32, #tpu.memory_space<vmem>>, vector<1x16x16xf32>
    %322 = vector.shape_cast %321 : vector<1x16x16xf32> to vector<16x16xf32>
    %cst_216 = arith.constant dense<0.000000e+00> : vector<8x16xf32>
    %323 = tpu.matmul %320, %322, %cst_216 {dimension_numbers = #tpu.dot_dimension_numbers<[1], [0], [0], [1], [0, 0, 1, 1], [], []>} : vector<8x16xf32>, vector<16x16xf32>, vector<8x16xf32> -> vector<8x16xf32>
    %324 = arith.addf %319, %323 : vector<8x16xf32>
    %325 = vector.extract_strided_slice %324 {offsets = [0, 0], sizes = [4, 16], strides = [1, 1]} : vector<8x16xf32> to vector<4x16xf32>
    %c0_217 = arith.constant 0 : index
    %c0_218 = arith.constant 0 : index
    %326 = vector.load %arg13[%c0_217, %c0_218] : memref<1x16xf32, #tpu.memory_space<vmem>>, vector<1x16xf32>
    %327 = vector.broadcast %326 : vector<1x16xf32> to vector<4x16xf32>
    %328 = arith.addf %325, %327 : vector<4x16xf32>
    %cst_219 = arith.constant 0.000000e+00 : f32
    %329 = vector.broadcast %cst_219 : f32 to vector<4x16xf32>
    %330 = arith.cmpf ogt, %328, %329 : vector<4x16xf32>
    %cst_220 = arith.constant 2.000000e-01 : f32
    %331 = vector.broadcast %cst_220 : f32 to vector<4x16xf32>
    %332 = arith.mulf %331, %328 : vector<4x16xf32>
    %333 = arith.select %330, %328, %332 : vector<4x16xi1>, vector<4x16xf32>
    %cst_221 = arith.constant dense<0.000000e+00> : vector<16xf32>
    %334 = vector.multi_reduction <add>, %333, %cst_221 [0] : vector<4x16xf32> to vector<16xf32>
    %335 = vector.shape_cast %334 : vector<16xf32> to vector<1x16xf32>
    %cst_222 = arith.constant 4.000000e+00 : f32
    %336 = vector.broadcast %cst_222 : f32 to vector<1x16xf32>
    %337 = arith.divf %335, %336 : vector<1x16xf32>
    %338 = vector.broadcast %337 : vector<1x16xf32> to vector<4x16xf32>
    %339 = arith.subf %333, %338 : vector<4x16xf32>
    %340 = arith.mulf %339, %339 : vector<4x16xf32>
    %cst_223 = arith.constant dense<0.000000e+00> : vector<16xf32>
    %341 = vector.multi_reduction <add>, %340, %cst_223 [0] : vector<4x16xf32> to vector<16xf32>
    %342 = vector.shape_cast %341 : vector<16xf32> to vector<1x16xf32>
    %cst_224 = arith.constant 4.000000e+00 : f32
    %343 = vector.broadcast %cst_224 : f32 to vector<1x16xf32>
    %344 = arith.divf %342, %343 : vector<1x16xf32>
    %345 = vector.broadcast %337 : vector<1x16xf32> to vector<4x16xf32>
    %346 = arith.subf %333, %345 : vector<4x16xf32>
    %cst_225 = arith.constant 9.99999974E-6 : f32
    %347 = vector.broadcast %cst_225 : f32 to vector<1x16xf32>
    %348 = arith.addf %344, %347 : vector<1x16xf32>
    %349 = math.rsqrt %348 : vector<1x16xf32>
    %350 = vector.broadcast %349 : vector<1x16xf32> to vector<4x16xf32>
    %351 = arith.mulf %346, %350 : vector<4x16xf32>
    %c0_226 = arith.constant 0 : index
    %c0_227 = arith.constant 0 : index
    %352 = vector.load %arg14[%c0_226, %c0_227] : memref<16x32xf32, #tpu.memory_space<vmem>>, vector<16x32xf32>
    %cst_228 = arith.constant dense<0.000000e+00> : vector<4x32xf32>
    %353 = tpu.matmul %351, %352, %cst_228 {dimension_numbers = #tpu.dot_dimension_numbers<[1], [0], [0], [1], [0, 0, 1, 1], [], []>} : vector<4x16xf32>, vector<16x32xf32>, vector<4x32xf32> -> vector<4x32xf32>
    %c0_229 = arith.constant 0 : index
    %c0_230 = arith.constant 0 : index
    %354 = vector.load %arg15[%c0_229, %c0_230] : memref<1x32xf32, #tpu.memory_space<vmem>>, vector<1x32xf32>
    %355 = vector.broadcast %354 : vector<1x32xf32> to vector<4x32xf32>
    %356 = arith.addf %353, %355 : vector<4x32xf32>
    %cst_231 = arith.constant 0.000000e+00 : f32
    %357 = vector.broadcast %cst_231 : f32 to vector<4x32xf32>
    %358 = arith.cmpf ogt, %356, %357 : vector<4x32xf32>
    %cst_232 = arith.constant 2.000000e-01 : f32
    %359 = vector.broadcast %cst_232 : f32 to vector<4x32xf32>
    %360 = arith.mulf %359, %356 : vector<4x32xf32>
    %361 = arith.select %358, %356, %360 : vector<4x32xi1>, vector<4x32xf32>
    %c0_233 = arith.constant 0 : index
    %c0_234 = arith.constant 0 : index
    %362 = vector.load %arg16[%c0_233, %c0_234] : memref<32x16xf32, #tpu.memory_space<vmem>>, vector<32x16xf32>
    %cst_235 = arith.constant dense<0.000000e+00> : vector<4x16xf32>
    %363 = tpu.matmul %361, %362, %cst_235 {dimension_numbers = #tpu.dot_dimension_numbers<[1], [0], [0], [1], [0, 0, 1, 1], [], []>} : vector<4x32xf32>, vector<32x16xf32>, vector<4x16xf32> -> vector<4x16xf32>
    %c0_236 = arith.constant 0 : index
    %c0_237 = arith.constant 0 : index
    %364 = vector.load %arg17[%c0_236, %c0_237] : memref<1x16xf32, #tpu.memory_space<vmem>>, vector<1x16xf32>
    %365 = vector.broadcast %364 : vector<1x16xf32> to vector<4x16xf32>
    %366 = arith.addf %363, %365 : vector<4x16xf32>
    %cst_238 = arith.constant 0.000000e+00 : f32
    %367 = vector.broadcast %cst_238 : f32 to vector<4x16xf32>
    %368 = arith.cmpf ogt, %366, %367 : vector<4x16xf32>
    %cst_239 = arith.constant 2.000000e-01 : f32
    %369 = vector.broadcast %cst_239 : f32 to vector<4x16xf32>
    %370 = arith.mulf %369, %366 : vector<4x16xf32>
    %371 = arith.select %368, %366, %370 : vector<4x16xi1>, vector<4x16xf32>
    %c0_240 = arith.constant 0 : index
    %c0_241 = arith.constant 0 : index
    %372 = vector.load %arg19[%c0_240, %c0_241] : memref<1x64xf32, #tpu.memory_space<vmem>>, vector<1x64xf32>
    %c0_242 = arith.constant 0 : index
    %c0_243 = arith.constant 0 : index
    %373 = vector.load %arg21[%c0_242, %c0_243] : memref<1x64xf32, #tpu.memory_space<vmem>>, vector<1x64xf32>
    %374 = vector.extract_strided_slice %371 {offsets = [0, 0], sizes = [1, 16], strides = [1, 1]} : vector<4x16xf32> to vector<1x16xf32>
    %c0_244 = arith.constant 0 : index
    %c0_245 = arith.constant 0 : index
    %c0_246 = arith.constant 0 : index
    %375 = vector.load %arg18[%c0_244, %c0_245, %c0_246] : memref<4x16x64xf32, #tpu.memory_space<vmem>>, vector<1x16x64xf32>
    %376 = vector.shape_cast %375 : vector<1x16x64xf32> to vector<16x64xf32>
    %cst_247 = arith.constant dense<0.000000e+00> : vector<1x64xf32>
    %377 = tpu.matmul %374, %376, %cst_247 {dimension_numbers = #tpu.dot_dimension_numbers<[1], [0], [0], [1], [0, 0, 1, 1], [], []>} : vector<1x16xf32>, vector<16x64xf32>, vector<1x64xf32> -> vector<1x64xf32>
    %378 = arith.addf %372, %377 : vector<1x64xf32>
    %c0_248 = arith.constant 0 : index
    %c0_249 = arith.constant 0 : index
    %c0_250 = arith.constant 0 : index
    %379 = vector.load %arg20[%c0_248, %c0_249, %c0_250] : memref<4x16x64xf32, #tpu.memory_space<vmem>>, vector<1x16x64xf32>
    %380 = vector.shape_cast %379 : vector<1x16x64xf32> to vector<16x64xf32>
    %cst_251 = arith.constant dense<0.000000e+00> : vector<1x64xf32>
    %381 = tpu.matmul %374, %380, %cst_251 {dimension_numbers = #tpu.dot_dimension_numbers<[1], [0], [0], [1], [0, 0, 1, 1], [], []>} : vector<1x16xf32>, vector<16x64xf32>, vector<1x64xf32> -> vector<1x64xf32>
    %382 = arith.addf %373, %381 : vector<1x64xf32>
    %383 = vector.extract_strided_slice %371 {offsets = [1, 0], sizes = [1, 16], strides = [1, 1]} : vector<4x16xf32> to vector<1x16xf32>
    %c1_252 = arith.constant 1 : index
    %c0_253 = arith.constant 0 : index
    %c0_254 = arith.constant 0 : index
    %384 = vector.load %arg18[%c1_252, %c0_253, %c0_254] : memref<4x16x64xf32, #tpu.memory_space<vmem>>, vector<1x16x64xf32>
    %385 = vector.shape_cast %384 : vector<1x16x64xf32> to vector<16x64xf32>
    %cst_255 = arith.constant dense<0.000000e+00> : vector<1x64xf32>
    %386 = tpu.matmul %383, %385, %cst_255 {dimension_numbers = #tpu.dot_dimension_numbers<[1], [0], [0], [1], [0, 0, 1, 1], [], []>} : vector<1x16xf32>, vector<16x64xf32>, vector<1x64xf32> -> vector<1x64xf32>
    %387 = arith.addf %378, %386 : vector<1x64xf32>
    %c1_256 = arith.constant 1 : index
    %c0_257 = arith.constant 0 : index
    %c0_258 = arith.constant 0 : index
    %388 = vector.load %arg20[%c1_256, %c0_257, %c0_258] : memref<4x16x64xf32, #tpu.memory_space<vmem>>, vector<1x16x64xf32>
    %389 = vector.shape_cast %388 : vector<1x16x64xf32> to vector<16x64xf32>
    %cst_259 = arith.constant dense<0.000000e+00> : vector<1x64xf32>
    %390 = tpu.matmul %383, %389, %cst_259 {dimension_numbers = #tpu.dot_dimension_numbers<[1], [0], [0], [1], [0, 0, 1, 1], [], []>} : vector<1x16xf32>, vector<16x64xf32>, vector<1x64xf32> -> vector<1x64xf32>
    %391 = arith.addf %382, %390 : vector<1x64xf32>
    %392 = vector.extract_strided_slice %371 {offsets = [2, 0], sizes = [1, 16], strides = [1, 1]} : vector<4x16xf32> to vector<1x16xf32>
    %c2_260 = arith.constant 2 : index
    %c0_261 = arith.constant 0 : index
    %c0_262 = arith.constant 0 : index
    %393 = vector.load %arg18[%c2_260, %c0_261, %c0_262] : memref<4x16x64xf32, #tpu.memory_space<vmem>>, vector<1x16x64xf32>
    %394 = vector.shape_cast %393 : vector<1x16x64xf32> to vector<16x64xf32>
    %cst_263 = arith.constant dense<0.000000e+00> : vector<1x64xf32>
    %395 = tpu.matmul %392, %394, %cst_263 {dimension_numbers = #tpu.dot_dimension_numbers<[1], [0], [0], [1], [0, 0, 1, 1], [], []>} : vector<1x16xf32>, vector<16x64xf32>, vector<1x64xf32> -> vector<1x64xf32>
    %396 = arith.addf %387, %395 : vector<1x64xf32>
    %c2_264 = arith.constant 2 : index
    %c0_265 = arith.constant 0 : index
    %c0_266 = arith.constant 0 : index
    %397 = vector.load %arg20[%c2_264, %c0_265, %c0_266] : memref<4x16x64xf32, #tpu.memory_space<vmem>>, vector<1x16x64xf32>
    %398 = vector.shape_cast %397 : vector<1x16x64xf32> to vector<16x64xf32>
    %cst_267 = arith.constant dense<0.000000e+00> : vector<1x64xf32>
    %399 = tpu.matmul %392, %398, %cst_267 {dimension_numbers = #tpu.dot_dimension_numbers<[1], [0], [0], [1], [0, 0, 1, 1], [], []>} : vector<1x16xf32>, vector<16x64xf32>, vector<1x64xf32> -> vector<1x64xf32>
    %400 = arith.addf %391, %399 : vector<1x64xf32>
    %401 = vector.extract_strided_slice %371 {offsets = [3, 0], sizes = [1, 16], strides = [1, 1]} : vector<4x16xf32> to vector<1x16xf32>
    %c3_268 = arith.constant 3 : index
    %c0_269 = arith.constant 0 : index
    %c0_270 = arith.constant 0 : index
    %402 = vector.load %arg18[%c3_268, %c0_269, %c0_270] : memref<4x16x64xf32, #tpu.memory_space<vmem>>, vector<1x16x64xf32>
    %403 = vector.shape_cast %402 : vector<1x16x64xf32> to vector<16x64xf32>
    %cst_271 = arith.constant dense<0.000000e+00> : vector<1x64xf32>
    %404 = tpu.matmul %401, %403, %cst_271 {dimension_numbers = #tpu.dot_dimension_numbers<[1], [0], [0], [1], [0, 0, 1, 1], [], []>} : vector<1x16xf32>, vector<16x64xf32>, vector<1x64xf32> -> vector<1x64xf32>
    %405 = arith.addf %396, %404 : vector<1x64xf32>
    %c3_272 = arith.constant 3 : index
    %c0_273 = arith.constant 0 : index
    %c0_274 = arith.constant 0 : index
    %406 = vector.load %arg20[%c3_272, %c0_273, %c0_274] : memref<4x16x64xf32, #tpu.memory_space<vmem>>, vector<1x16x64xf32>
    %407 = vector.shape_cast %406 : vector<1x16x64xf32> to vector<16x64xf32>
    %cst_275 = arith.constant dense<0.000000e+00> : vector<1x64xf32>
    %408 = tpu.matmul %401, %407, %cst_275 {dimension_numbers = #tpu.dot_dimension_numbers<[1], [0], [0], [1], [0, 0, 1, 1], [], []>} : vector<1x16xf32>, vector<16x64xf32>, vector<1x64xf32> -> vector<1x64xf32>
    %409 = arith.addf %400, %408 : vector<1x64xf32>
    %c0_276 = arith.constant 0 : index
    %c0_277 = arith.constant 0 : index
    %c0_278 = arith.constant 0 : index
    %410 = vector.load %arg22[%c0_276, %c0_277, %c0_278] : memref<1x1x64xf32, #tpu.memory_space<vmem>>, vector<1x1x64xf32>
    %411 = vector.shape_cast %410 : vector<1x1x64xf32> to vector<1x64xf32>
    %412 = vector.shape_cast %405 : vector<1x64xf32> to vector<1x1x64xf32>
    tpu.vector_store %arg22[%c0_276, %c0_277, %c0_278], %412 {strides = array<i32>} : memref<1x1x64xf32, #tpu.memory_space<vmem>>, vector<1x1x64xf32>,
    %c0_279 = arith.constant 0 : index
    %c0_280 = arith.constant 0 : index
    %c0_281 = arith.constant 0 : index
    %413 = vector.load %arg23[%c0_279, %c0_280, %c0_281] : memref<1x1x64xf32, #tpu.memory_space<vmem>>, vector<1x1x64xf32>
    %414 = vector.shape_cast %413 : vector<1x1x64xf32> to vector<1x64xf32>
    %415 = vector.shape_cast %409 : vector<1x64xf32> to vector<1x1x64xf32>
    tpu.vector_store %arg23[%c0_279, %c0_280, %c0_281], %415 {strides = array<i32>} : memref<1x1x64xf32, #tpu.memory_space<vmem>>, vector<1x1x64xf32>,
    %c0_282 = arith.constant 0 : index
    %c0_283 = arith.constant 0 : index
    %c0_284 = arith.constant 0 : index
    %416 = vector.load %arg2[%c0_282, %c0_283, %c0_284] : memref<1x1x64xf32, #tpu.memory_space<vmem>>, vector<1x1x64xf32>
    %417 = vector.shape_cast %416 : vector<1x1x64xf32> to vector<1x64xf32>
    %cst_285 = arith.constant 5.000000e-01 : f32
    %418 = vector.broadcast %cst_285 : f32 to vector<1x64xf32>
    %419 = arith.mulf %418, %409 : vector<1x64xf32>
    %420 = math.exp %419 : vector<1x64xf32>
    %421 = arith.mulf %417, %420 : vector<1x64xf32>
    %422 = arith.addf %405, %421 : vector<1x64xf32>
    %c0_286 = arith.constant 0 : index
    %c0_287 = arith.constant 0 : index
    %c0_288 = arith.constant 0 : index
    %423 = vector.load %arg24[%c0_286, %c0_287, %c0_288] : memref<1x1x64xf32, #tpu.memory_space<vmem>>, vector<1x1x64xf32>
    %424 = vector.shape_cast %423 : vector<1x1x64xf32> to vector<1x64xf32>
    %425 = vector.shape_cast %422 : vector<1x64xf32> to vector<1x1x64xf32>
    tpu.vector_store %arg24[%c0_286, %c0_287, %c0_288], %425 {strides = array<i32>} : memref<1x1x64xf32, #tpu.memory_space<vmem>>, vector<1x1x64xf32>,
    return
  }
  func.func @transform_0(%arg0: i32) -> (i32, i32, i32) {
    %c0_i32 = arith.constant 0 : i32
    %c0_i32_0 = arith.constant 0 : i32
    %c0_i32_1 = arith.constant 0 : i32
    return %arg0, %c0_i32, %c0_i32_0 : i32, i32, i32
  }
  func.func @transform_1(%arg0: i32) -> (i32, i32, i32) {
    %c0_i32 = arith.constant 0 : i32
    %c0_i32_0 = arith.constant 0 : i32
    %c0_i32_1 = arith.constant 0 : i32
    return %arg0, %c0_i32, %c0_i32_0 : i32, i32, i32
  }
  func.func @transform_2(%arg0: i32) -> (i32, i32) {
    %c0_i32 = arith.constant 0 : i32
    %c0_i32_0 = arith.constant 0 : i32
    %c0_i32_1 = arith.constant 0 : i32
    return %c0_i32, %c0_i32_0 : i32, i32
  }
  func.func @transform_3(%arg0: i32) -> (i32, i32) {
    %c0_i32 = arith.constant 0 : i32
    %c0_i32_0 = arith.constant 0 : i32
    %c0_i32_1 = arith.constant 0 : i32
    return %c0_i32, %c0_i32_0 : i32, i32
  }
  func.func @transform_4(%arg0: i32) -> (i32, i32) {
    %c0_i32 = arith.constant 0 : i32
    %c0_i32_0 = arith.constant 0 : i32
    %c0_i32_1 = arith.constant 0 : i32
    return %c0_i32, %c0_i32_0 : i32, i32
  }
  func.func @transform_5(%arg0: i32) -> (i32, i32, i32) {
    %c0_i32 = arith.constant 0 : i32
    %c0_i32_0 = arith.constant 0 : i32
    %c0_i32_1 = arith.constant 0 : i32
    %c0_i32_2 = arith.constant 0 : i32
    return %c0_i32, %c0_i32_0, %c0_i32_1 : i32, i32, i32
  }
  func.func @transform_6(%arg0: i32) -> (i32, i32) {
    %c0_i32 = arith.constant 0 : i32
    %c0_i32_0 = arith.constant 0 : i32
    %c0_i32_1 = arith.constant 0 : i32
    return %c0_i32, %c0_i32_0 : i32, i32
  }
  func.func @transform_7(%arg0: i32) -> (i32, i32) {
    %c0_i32 = arith.constant 0 : i32
    %c0_i32_0 = arith.constant 0 : i32
    %c0_i32_1 = arith.constant 0 : i32
    return %c0_i32, %c0_i32_0 : i32, i32
  }
  func.func @transform_8(%arg0: i32) -> (i32, i32, i32) {
    %c0_i32 = arith.constant 0 : i32
    %c0_i32_0 = arith.constant 0 : i32
    %c0_i32_1 = arith.constant 0 : i32
    %c0_i32_2 = arith.constant 0 : i32
    return %c0_i32, %c0_i32_0, %c0_i32_1 : i32, i32, i32
  }
  func.func @transform_9(%arg0: i32) -> (i32, i32) {
    %c0_i32 = arith.constant 0 : i32
    %c0_i32_0 = arith.constant 0 : i32
    %c0_i32_1 = arith.constant 0 : i32
    return %c0_i32, %c0_i32_0 : i32, i32
  }
  func.func @transform_10(%arg0: i32) -> (i32, i32) {
    %c0_i32 = arith.constant 0 : i32
    %c0_i32_0 = arith.constant 0 : i32
    %c0_i32_1 = arith.constant 0 : i32
    return %c0_i32, %c0_i32_0 : i32, i32
  }
  func.func @transform_11(%arg0: i32) -> (i32, i32, i32) {
    %c0_i32 = arith.constant 0 : i32
    %c0_i32_0 = arith.constant 0 : i32
    %c0_i32_1 = arith.constant 0 : i32
    %c0_i32_2 = arith.constant 0 : i32
    return %c0_i32, %c0_i32_0, %c0_i32_1 : i32, i32, i32
  }
  func.func @transform_12(%arg0: i32) -> (i32, i32) {
    %c0_i32 = arith.constant 0 : i32
    %c0_i32_0 = arith.constant 0 : i32
    %c0_i32_1 = arith.constant 0 : i32
    return %c0_i32, %c0_i32_0 : i32, i32
  }
  func.func @transform_13(%arg0: i32) -> (i32, i32) {
    %c0_i32 = arith.constant 0 : i32
    %c0_i32_0 = arith.constant 0 : i32
    %c0_i32_1 = arith.constant 0 : i32
    return %c0_i32, %c0_i32_0 : i32, i32
  }
  func.func @transform_14(%arg0: i32) -> (i32, i32) {
    %c0_i32 = arith.constant 0 : i32
    %c0_i32_0 = arith.constant 0 : i32
    %c0_i32_1 = arith.constant 0 : i32
    return %c0_i32, %c0_i32_0 : i32, i32
  }
  func.func @transform_15(%arg0: i32) -> (i32, i32) {
    %c0_i32 = arith.constant 0 : i32
    %c0_i32_0 = arith.constant 0 : i32
    %c0_i32_1 = arith.constant 0 : i32
    return %c0_i32, %c0_i32_0 : i32, i32
  }
  func.func @transform_16(%arg0: i32) -> (i32, i32) {
    %c0_i32 = arith.constant 0 : i32
    %c0_i32_0 = arith.constant 0 : i32
    %c0_i32_1 = arith.constant 0 : i32
    return %c0_i32, %c0_i32_0 : i32, i32
  }
  func.func @transform_17(%arg0: i32) -> (i32, i32, i32) {
    %c0_i32 = arith.constant 0 : i32
    %c0_i32_0 = arith.constant 0 : i32
    %c0_i32_1 = arith.constant 0 : i32
    %c0_i32_2 = arith.constant 0 : i32
    return %c0_i32, %c0_i32_0, %c0_i32_1 : i32, i32, i32
  }
  func.func @transform_18(%arg0: i32) -> (i32, i32) {
    %c0_i32 = arith.constant 0 : i32
    %c0_i32_0 = arith.constant 0 : i32
    %c0_i32_1 = arith.constant 0 : i32
    return %c0_i32, %c0_i32_0 : i32, i32
  }
  func.func @transform_19(%arg0: i32) -> (i32, i32, i32) {
    %c0_i32 = arith.constant 0 : i32
    %c0_i32_0 = arith.constant 0 : i32
    %c0_i32_1 = arith.constant 0 : i32
    %c0_i32_2 = arith.constant 0 : i32
    return %c0_i32, %c0_i32_0, %c0_i32_1 : i32, i32, i32
  }
  func.func @transform_20(%arg0: i32) -> (i32, i32) {
    %c0_i32 = arith.constant 0 : i32
    %c0_i32_0 = arith.constant 0 : i32
    %c0_i32_1 = arith.constant 0 : i32
    return %c0_i32, %c0_i32_0 : i32, i32
  }
  func.func @transform_21(%arg0: i32) -> (i32, i32, i32) {
    %c0_i32 = arith.constant 0 : i32
    %c0_i32_0 = arith.constant 0 : i32
    %c0_i32_1 = arith.constant 0 : i32
    return %arg0, %c0_i32, %c0_i32_0 : i32, i32, i32
  }
  func.func @transform_22(%arg0: i32) -> (i32, i32, i32) {
    %c0_i32 = arith.constant 0 : i32
    %c0_i32_0 = arith.constant 0 : i32
    %c0_i32_1 = arith.constant 0 : i32
    return %arg0, %c0_i32, %c0_i32_0 : i32, i32, i32
  }
  func.func @transform_23(%arg0: i32) -> (i32, i32, i32) {
    %c0_i32 = arith.constant 0 : i32
    %c0_i32_0 = arith.constant 0 : i32
    %c0_i32_1 = arith.constant 0 : i32
    return %arg0, %c0_i32, %c0_i32_0 : i32, i32, i32
  }
}

</mosaic_0001>

<bundles_post_ra>
// kernel: encoder_forward.1
= control target key start
LH: loop header
LB: loop body
LE: loop exit
PB: predicated region body
PF: predicated region fallthrough
CT: control target
= control target key end

     0   :  { %s14879_s0 = inlined_call_operand.vmem [shape: f32[4,256,48], index: 0, kind: input, shape index: {}]   ;;  %s14880_s1 = inlined_call_operand.vmem [shape: f32[4,1,64], index: 1, kind: input, shape index: {}]   ;;  %s14881_s2 = inlined_call_operand.vmem [shape: f32[48,32], index: 2, kind: input, shape index: {}]   ;;  %s14882_s3 = inlined_call_operand.vmem [shape: f32[1,32], index: 3, kind: input, shape index: {}]   ;;  %s14883_s4 = inlined_call_operand.vmem [shape: f32[1024,256], index: 4, kind: input, shape index: {}]   ;;  %s14884_s5 = inlined_call_operand.vmem [shape: f32[16,32,64], index: 5, kind: input, shape index: {}]   ;;  %s14885_s6 = inlined_call_operand.vmem [shape: f32[1,64], index: 6, kind: input, shape index: {}]   ;;  %s14886_s7 = inlined_call_operand.vmem [shape: f32[256,64], index: 7, kind: input, shape index: {}]   ;;  %s14887_s8 = inlined_call_operand.vmem [shape: f32[16,64,16], index: 8, kind: input, shape index: {}]   ;;  %s14888_s9 = inlined_call_operand.vmem [shape: f32[1,16], index: 9, kind: input, shape index: {}]   ;;  %s14889_s10 = inlined_call_operand.vmem [shape: f32[128,16], index: 10, kind: input, shape index: {}]   ;;  %s14890_s11 = inlined_call_operand.vmem [shape: f32[16,16,16], index: 11, kind: input, shape index: {}]   ;;  %s14891_s12 = inlined_call_operand.vmem [shape: f32[1,16], index: 12, kind: input, shape index: {}]   ;;  %s14892_s13 = inlined_call_operand.vmem [shape: f32[16,32], index: 13, kind: input, shape index: {}]   ;;  %s14893_s14 = inlined_call_operand.vmem [shape: f32[1,32], index: 14, kind: input, shape index: {}]   ;;  %s14894_s15 = inlined_call_operand.vmem [shape: f32[32,16], index: 15, kind: input, shape index: {}]   ;;  %s14895_s16 = inlined_call_operand.vmem [shape: f32[1,16], index: 16, kind: input, shape index: {}]   ;;  %s14896_s17 = inlined_call_operand.vmem [shape: f32[4,16,64], index: 17, kind: input, shape index: {}]   ;;  %s14897_s18 = inlined_call_operand.vmem [shape: f32[1,64], index: 18, kind: input, shape index: {}]   ;;  %s14898_s19 = inlined_call_operand.vmem [shape: f32[4,16,64], index: 19, kind: input, shape index: {}]   ;;  %s14899_s20 = inlined_call_operand.vmem [shape: f32[1,64], index: 20, kind: input, shape index: {}]   ;;  %s14900_s21 = inlined_call_operand.hbm [shape: f32[4,1,64], index: 21, kind: output, shape index: {0}]   ;;  %s14901_s22 = inlined_call_operand.hbm [shape: f32[4,1,64], index: 22, kind: output, shape index: {1}]   ;;  %s14902_s23 = inlined_call_operand.hbm [shape: f32[4,1,64], index: 23, kind: output, shape index: {2}]  }
   0x1   :  { %14919 = sst [smem:[#allocation15_spill]] %s14879_s0 }
   0x2   :  { %14920 = sst [smem:[#allocation16_spill]] %s14880_s1 }
   0x3   :  { %14921 = sst [smem:[#allocation17_spill]] %s14881_s2 }
   0x4   :  { %14922 = sst [smem:[#allocation18_spill]] %s14882_s3 }
   0x5   :  { %14923 = sst [smem:[#allocation19_spill]] %s14883_s4 }
   0x6   :  { %14924 = sst [smem:[#allocation20_spill]] %s14884_s5 }
   0x7   :  { %14925 = sst [smem:[#allocation21_spill]] %s14885_s6 }
   0x8   :  { %14926 = sst [smem:[#allocation22_spill]] %s14886_s7 }
   0x9   :  { %14927 = sst [smem:[#allocation23_spill]] %s14887_s8 }
   0xa   :  { %14928 = sst [smem:[#allocation24_spill]] %s14888_s9 }
   0xb   :  { %14929 = sst [smem:[#allocation25_spill]] %s14889_s10 }
   0xc   :  { %14930 = sst [smem:[#allocation26_spill]] %s14890_s11 }
   0xd   :  { %14931 = sst [smem:[#allocation27_spill]] %s14891_s12 }
   0xe   :  { %14932 = sst [smem:[#allocation28_spill]] %s14902_s23 }
   0xf   :  { %29 = vsyncpa [#allocation3], 0 }
  0x10   :  { %31 = vsyncpa [#allocation3 + $0x1], 0 }
  0x11   :  { %32 = vsyncpa [#allocation5], 0 }
  0x12   :  { %34 = vsyncpa [#allocation5 + $0x1], 0  ;;  %s12074_s4 = smov 0   ;;  %s12076_s30 = smov 0  }
  0x13   :  { %s12078_s24 = smov 0   ;;  %s12080_s25 = smov 0  }
  0x14 LB: > { %14933 = sst [smem:[#allocation9_spill]] %s11934_s4  ;;  %s12095_s5 = sadd.s32 4294967295, %s11946_s25   ;;  %s11946_s25 = sphi %s12080_s25, %s14963_s25   ;;  %s11942_s24 = sphi %s12078_s24, %s14965_s24   ;;  %s11938_s30 = sphi %s12076_s30, %s14967_s30   ;;  %s11934_s4 = sphi %s12074_s4, %s14966_s4  }
  0x15   : > { %14934 = sst [smem:[#allocation10_spill]] %s11942_s24  ;;  %s14907_s1 = sadd.s32 4294967294, %s11946_s25  }
  0x16   : > { %14935 = sst [smem:[#allocation11_spill]] %s11946_s25  ;;  %s12099_s26 = sadd.s32 1, %s11946_s25  }
  0x17   : > { %14936 = sst [smem:[#allocation12_spill]] %s12099_s26  ;;  %s498_s2 = sadd.s32 1, %s11942_s24 }
  0x18   : > { %s495_s6 = ssub.s32 %s11946_s25, %s12099_s26  ;;  %p508_p0 = scmp.ne.s32.totalorder %s11942_s24, %s11938_s30 }
  0x19   : > { %p496_p1 = scmp.eq.s32.totalorder %s495_s6, 0  ;;  %p509_p2 = scmp.eq.s32.totalorder %s12095_s5, 3 }
  0x1a   : > { %p514_p3 = scmp.ne.s32.totalorder %s11938_s30, %s11934_s4  ;;  %p515_p4 = scmp.eq.s32.totalorder %s14907_s1, 3 }
  0x1b   : > { %s12112_s27 = scalar_select %p496_p1, %s11942_s24, %s498_s2  }
  0x1c   : > { %p12114_p5 = por %p509_p2, %p508_p0  ;;  %p12118_p6 = por %p515_p4, %p514_p3 }
  0x1d   : > { %14937 = sst [smem:[#allocation13_spill]] %s12112_s27  ;;  %p9058_p7 = scmp.ge.s32.totalorder %s11946_s25, 1 }
  0x1e   : > { %s14939_s28 = scalar_select %p12118_p6, 1, 0 }
  0x1f   : > { %p656_p8 = scmp.lt.s32.totalorder %s11946_s25, 5 }
  0x20   : > { %14940 = sst [smem:[#allocation14_spill]] %s14939_s28 }
  0x21   : > { %p657_p9 = pnand %p9058_p7, %p656_p8 }
  0x22   : > { %s14941_s0 = sld [smem:[#allocation17_spill]] (!%p657_p9)  ;;  %p730_p10 = scmp.lt.s32.totalorder (!%p657_p9), %s12095_s5, 3  ;;  %vm783_vm0 = vcmask (!%p657_p9), 392192   ;;  %vm1201_vm2 = vcmask (!%p657_p9), 261120  }
  0x23   : > { %660 = sbr.rel (%p657_p9) target bundleno = 3542 (0xdd6), region = 104  ;;  %s14942_s27 = sld [smem:[#allocation15_spill]] (!%p657_p9) }
  0x24   : > { %s14943_s29 = sld [smem:[#allocation18_spill]] (!%p657_p9)  ;;  %s14944_s24 = sld [smem:[#allocation19_spill]] (!%p657_p9) }
  0x25   : > { %s14946_s23 = sld [smem:[#allocation20_spill]] (!%p657_p9)  ;;  %s14948_s28 = sld [smem:[#allocation21_spill]] (!%p657_p9) }
  0x26   : > { %s14949_s8 = sld [smem:[#allocation23_spill]] (!%p657_p9)  ;;  %s14950_s10 = sld [smem:[#allocation25_spill]] (!%p657_p9) }
  0x27   : > { %s14951_s9 = sld [smem:[#allocation24_spill]] (!%p657_p9)  ;;  %s14952_s11 = sld [smem:[#allocation26_spill]] (!%p657_p9) }
  0x28   : > { %v770_v0 = vld [vmem:[%s14941_s0] sm:$0xff] (!%p657_p9)  ;;  %v771_v1 = vld [vmem:[%s14941_s0 + $0x8] sm:$0xff] (!%p657_p9)  ;;  %v772_v2 = vld [vmem:[%s14941_s0 + $0x10] sm:$0xff] (!%p657_p9)  ;;  %s14953_s12 = sld [smem:[#allocation27_spill]] (!%p657_p9) }
  0x29   : > { %v11051_v3 = vpack.c.bf16 (!%p657_p9), %v771_v1, %v770_v0  ;;  %v773_v4 = vld [vmem:[%s14941_s0 + $0x18] sm:$0xff] (!%p657_p9)  ;;  %v774_v6 = vld [vmem:[%s14941_s0 + $0x20] sm:$0xff] (!%p657_p9)  ;;  %v775_v7 = vld [vmem:[%s14941_s0 + $0x28] sm:$0xff] (!%p657_p9) }
  0x2a   : > { %v11055_v5 = vpack.c.bf16 %v773_v4, %v772_v2  ;;  %s12144_s2 = scalar_select %p730_p10, %s12095_s5, 3  ;;  %v11059_v8 = vpack.c.bf16 %v775_v7, %v774_v6  ;;  %v12219_v41 = vld [vmem:[%s14943_s29] ss:$0 sm:$0xff] }
  0x2b   : > { %11052 = vmatprep.subr.bf16.mxu1 %v11051_v3  ;;  %s14945_s26 = smov %s14944_s24 }
  0x2c   : > { %11054 = vmatpush3.bf16.msra.mxu1 %v11051_v3  ;;  %s9560_s1 = sshll.u32 %s12144_s2, 8 }
  0x2d   : > { %11056 = vmatprep.subr.bf16.mxu1 %v11055_v5  ;;  %s12150_s6 = scalar_lea.vmem %s14942_s27, %s9560_s1  ;;  %s14947_s27 = sld [smem:[#allocation22_spill]] }
  0x2e   : > { %v738_v9 = vld [vmem:[%s12150_s6] sm:$0xff]  ;;  %v739_v10 = vld [vmem:[%s12150_s6 + $0x8] sm:$0xff]  ;;  %v740_v11 = vld [vmem:[%s12150_s6 + $0x10] sm:$0xff] }
  0x2f   : > { %10101 = vmatprep.mubr.msk.f32.mxu1 %vm783_vm0, %v738_v9  ;;  %v741_v12 = vld [vmem:[%s12150_s6 + $0x18] sm:$0xff]  ;;  %v742_v13 = vld [vmem:[%s12150_s6 + $0x20] sm:$0xff]  ;;  %v743_v14 = vld [vmem:[%s12150_s6 + $0x28] sm:$0xff] }
  0x30   : > { %11058 = vmatpush3.bf16.msra.mxu1 %v11055_v5  ;;  %v744_v15 = vld [vmem:[%s12150_s6 + $0x30] sm:$0xff]  ;;  %v745_v16 = vld [vmem:[%s12150_s6 + $0x38] sm:$0xff]  ;;  %v746_v17 = vld [vmem:[%s12150_s6 + $0x40] sm:$0xff] }
  0x31   : > { %11060 = vmatprep.subr.bf16.mxu1 %v11059_v8  ;;  %v747_v18 = vld [vmem:[%s12150_s6 + $0x48] sm:$0xff]  ;;  %v748_v19 = vld [vmem:[%s12150_s6 + $0x50] sm:$0xff]  ;;  %v749_v20 = vld [vmem:[%s12150_s6 + $0x58] sm:$0xff] }
  0x32   : > { %v750_v21 = vld [vmem:[%s12150_s6 + $0x60] sm:$0xff]  ;;  %v751_v22 = vld [vmem:[%s12150_s6 + $0x68] sm:$0xff]  ;;  %v752_v23 = vld [vmem:[%s12150_s6 + $0x70] sm:$0xff] }
  0x33   : > { %v753_v24 = vld [vmem:[%s12150_s6 + $0x78] sm:$0xff]  ;;  %v754_v25 = vld [vmem:[%s12150_s6 + $0x80] sm:$0xff]  ;;  %v755_v26 = vld [vmem:[%s12150_s6 + $0x88] sm:$0xff] }
  0x34   : > { %11062 = vmatpush3.bf16.msra.mxu1 %v11059_v8  ;;  %v756_v27 = vld [vmem:[%s12150_s6 + $0x90] sm:$0xff]  ;;  %v757_v28 = vld [vmem:[%s12150_s6 + $0x98] sm:$0xff]  ;;  %v758_v29 = vld [vmem:[%s12150_s6 + $0xa0] sm:$0xff] }
  0x35   : > { %v759_v30 = vld [vmem:[%s12150_s6 + $0xa8] sm:$0xff]  ;;  %v760_v31 = vld [vmem:[%s12150_s6 + $0xb0] sm:$0xff]  ;;  %v761_v32 = vld [vmem:[%s12150_s6 + $0xb8] sm:$0xff] }
  0x36   : > { %v762_v33 = vld [vmem:[%s12150_s6 + $0xc0] sm:$0xff]  ;;  %v763_v34 = vld [vmem:[%s12150_s6 + $0xc8] sm:$0xff]  ;;  %v764_v35 = vld [vmem:[%s12150_s6 + $0xd0] sm:$0xff] }
  0x37   : > { %10102 = vmatmul.mubr.msk.f32.vlgmr.msra.gmra.mrb[0].mxu1 %vm783_vm0, %v739_v10  ;;  %v765_v36 = vld [vmem:[%s12150_s6 + $0xd8] sm:$0xff]  ;;  %v766_v37 = vld [vmem:[%s12150_s6 + $0xe0] sm:$0xff]  ;;  %v767_v38 = vld [vmem:[%s12150_s6 + $0xe8] sm:$0xff] }
  0x38   : > { %10104 = vmatprep.mubr.msk.f32.mxu1 %vm783_vm0, %v740_v11  ;;  %v768_v39 = vld [vmem:[%s12150_s6 + $0xf0] sm:$0xff]  ;;  %v769_v40 = vld [vmem:[%s12150_s6 + $0xf8] sm:$0xff] }
  0x3b   : > { %10105 = vmatmul.mubr.msk.f32.gmra.mrb[2].mxu1 %vm783_vm0, %v741_v12 }
  0x3c   : > { %10107 = vmatprep.mubr.msk.f32.mxu1 %vm783_vm0, %v742_v13 }
  0x3f   : > { %10108 = vmatmul.mubr.msk.f32.gmra.mrb[4].mxu1 %vm783_vm0, %v743_v14 }
  0x40   : > { %10110 = vmatprep.mubr.msk.f32.mxu1 %vm783_vm0, %v744_v15 }
  0x43   : > { %10111 = vmatmul.mubr.msk.f32.gmra.mrb[6].mxu1 %vm783_vm0, %v745_v16 }
  0x44   : > { %10113 = vmatprep.mubr.msk.f32.mxu1 %vm783_vm0, %v746_v17 }
  0x47   : > { %10114 = vmatmul.mubr.msk.f32.gmra.mrb[8].mxu1 %vm783_vm0, %v747_v18 }
  0x48   : > { %10116 = vmatprep.mubr.msk.f32.mxu1 %vm783_vm0, %v748_v19 }
  0x4b   : > { %10117 = vmatmul.mubr.msk.f32.gmra.mrb[10].mxu1 %vm783_vm0, %v749_v20 }
  0x4c   : > { %10119 = vmatprep.mubr.msk.f32.mxu1 %vm783_vm0, %v750_v21 }
  0x4f   : > { %10120 = vmatmul.mubr.msk.f32.gmra.mrb[12].mxu1 %vm783_vm0, %v751_v22 }
  0x50   : > { %10122 = vmatprep.mubr.msk.f32.mxu1 %vm783_vm0, %v752_v23 }
  0x53   : > { %10123 = vmatmul.mubr.msk.f32.gmra.mrb[14].mxu1 %vm783_vm0, %v753_v24 }
  0x54   : > { %10125 = vmatprep.mubr.msk.f32.mxu1 %vm783_vm0, %v754_v25 }
  0x57   : > { %10126 = vmatmul.mubr.msk.f32.gmra.mrb[16].mxu1 %vm783_vm0, %v755_v26 }
  0x58   : > { %10128 = vmatprep.mubr.msk.f32.mxu1 %vm783_vm0, %v756_v27 }
  0x5b   : > { %10129 = vmatmul.mubr.msk.f32.gmra.mrb[18].mxu1 %vm783_vm0, %v757_v28 }
  0x5c   : > { %10131 = vmatprep.mubr.msk.f32.mxu1 %vm783_vm0, %v758_v29 }
  0x5f   : > { %10132 = vmatmul.mubr.msk.f32.gmra.mrb[20].mxu1 %vm783_vm0, %v759_v30 }
  0x60   : > { %10134 = vmatprep.mubr.msk.f32.mxu1 %vm783_vm0, %v760_v31 }
  0x63   : > { %10135 = vmatmul.mubr.msk.f32.gmra.mrb[22].mxu1 %vm783_vm0, %v761_v32 }
  0x64   : > { %10137 = vmatprep.mubr.msk.f32.mxu1 %vm783_vm0, %v762_v33 }
  0x67   : > { %10138 = vmatmul.mubr.msk.f32.gmra.mrb[24].mxu1 %vm783_vm0, %v763_v34 }
  0x68   : > { %10140 = vmatprep.mubr.msk.f32.mxu1 %vm783_vm0, %v764_v35 }
  0x6b   : > { %10141 = vmatmul.mubr.msk.f32.gmra.mrb[26].mxu1 %vm783_vm0, %v765_v36 }
  0x6c   : > { %10143 = vmatprep.mubr.msk.f32.mxu1 %vm783_vm0, %v766_v37 }
  0x6f   : > { %10144 = vmatmul.mubr.msk.f32.gmra.mrb[28].mxu1 %vm783_vm0, %v767_v38 }
  0x70   : > { %10146 = vmatprep.mubr.msk.f32.mxu1 %vm783_vm0, %v768_v39 }
  0x73   : > { %10147 = vmatmul.mubr.msk.f32.gmra.mrb[30].mxu1 %vm783_vm0, %v769_v40 }
 0x10a   : > { %v10103_v42 = vpop.f32.mrb[0].mxu1 }
 0x10b   : > { %v952_v43 = vadd.f32 %v10103_v42, %v12219_v41  ;;  %v946_v44 = vpop.f32.mrb[1].mxu1 }
 0x10c   : > { %v947_v45 = vadd.f32 %v12219_v41, %v946_v44 }
 0x10d   : > { %vm1106_vm1 = vcmp.gt.f32.partialorder %v952_v43, 0.0  ;;  %v1138_v46 = vmul.f32 0.2, %v952_v43 }
 0x10e   : > { %vm1105_vm3 = vcmp.gt.f32.partialorder %v947_v45, 0.0  ;;  %v1137_v47 = vmul.f32 0.2, %v947_v45  ;;  %v10106_v48 = vpop.f32.mrb[2].mxu1 }
 0x10f   : > { %v12223_v49 = vsel %vm1106_vm1, %v952_v43, %v1138_v46  ;;  %v962_v50 = vadd.f32 %v10106_v48, %v12219_v41  ;;  %v956_v51 = vpop.f32.mrb[3].mxu1 }
 0x110   : > { %v12226_v52 = vsel %vm1105_vm3, %v947_v45, %v1137_v47  ;;  %v957_v53 = vadd.f32 %v12219_v41, %v956_v51  ;;  %v1203_v54 = vsel %vm1201_vm2, %v12223_v49, 0.0 }
 0x111   : > { %v1202_v55 = vsel %vm1201_vm2, %v12226_v52, 0.0  ;;  %vm1108_vm4 = vcmp.gt.f32.partialorder %v962_v50, 0.0  ;;  %v1140_v56 = vmul.f32 0.2, %v962_v50 }
 0x112   : > { %vm1107_vm5 = vcmp.gt.f32.partialorder %v957_v53, 0.0  ;;  %v1139_v57 = vmul.f32 0.2, %v957_v53  ;;  %v10109_v58 = vpop.f32.mrb[4].mxu1  ;;  %v1204_v61 = vadd.f32 %v1203_v54, %v1202_v55 }
 0x113   : > { %v972_v59 = vadd.f32 %v10109_v58, %v12219_v41  ;;  %v966_v60 = vpop.f32.mrb[5].mxu1  ;;  %v12234_v62 = vsel %vm1108_vm4, %v962_v50, %v1140_v56 }
 0x114   : > { %v12236_v63 = vsel %vm1107_vm5, %v957_v53, %v1139_v57  ;;  %v967_v0 = vadd.f32 %v12219_v41, %v966_v60  ;;  %v1207_v6 = vsel %vm1201_vm2, %v12234_v62, 0.0 }
 0x115   : > { %v1205_v1 = vsel %vm1201_vm2, %v12236_v63, 0.0  ;;  %vm1110_vm6 = vcmp.gt.f32.partialorder %v972_v59, 0.0  ;;  %v1142_v2 = vmul.f32 0.2, %v972_v59 }
 0x116   : > { %v1206_v3 = vadd.f32 %v1205_v1, %v1204_v61  ;;  %vm1109_vm7 = vcmp.gt.f32.partialorder %v967_v0, 0.0  ;;  %v1141_v4 = vmul.f32 0.2, %v967_v0  ;;  %v10112_v5 = vpop.f32.mrb[6].mxu1 }
 0x117   : > { %v982_v7 = vadd.f32 %v10112_v5, %v12219_v41  ;;  %v976_v8 = vpop.f32.mrb[7].mxu1  ;;  %v12244_v9 = vsel %vm1110_vm6, %v972_v59, %v1142_v2 }
 0x118   : > { %v12246_v10 = vsel %vm1109_vm7, %v967_v0, %v1141_v4  ;;  %v1208_v11 = vadd.f32 %v1207_v6, %v1206_v3  ;;  %v977_v12 = vadd.f32 %v12219_v41, %v976_v8  ;;  %v1211_v18 = vsel %vm1201_vm2, %v12244_v9, 0.0 }
 0x119   : > { %v1209_v13 = vsel %vm1201_vm2, %v12246_v10, 0.0  ;;  %vm1112_vm8 = vcmp.gt.f32.partialorder %v982_v7, 0.0  ;;  %v1144_v14 = vmul.f32 0.2, %v982_v7 }
 0x11a   : > { %v1210_v15 = vadd.f32 %v1209_v13, %v1208_v11  ;;  %vm1111_vm9 = vcmp.gt.f32.partialorder %v977_v12, 0.0  ;;  %v1143_v16 = vmul.f32 0.2, %v977_v12  ;;  %v10115_v17 = vpop.f32.mrb[8].mxu1 }
 0x11b   : > { %v992_v19 = vadd.f32 %v10115_v17, %v12219_v41  ;;  %v986_v20 = vpop.f32.mrb[9].mxu1  ;;  %v12254_v21 = vsel %vm1112_vm8, %v982_v7, %v1144_v14 }
 0x11c   : > { %v12256_v22 = vsel %vm1111_vm9, %v977_v12, %v1143_v16  ;;  %v1212_v23 = vadd.f32 %v1211_v18, %v1210_v15  ;;  %v987_v24 = vadd.f32 %v12219_v41, %v986_v20  ;;  %v1215_v30 = vsel %vm1201_vm2, %v12254_v21, 0.0 }
 0x11d   : > { %v1213_v25 = vsel %vm1201_vm2, %v12256_v22, 0.0  ;;  %vm1114_vm10 = vcmp.gt.f32.partialorder %v992_v19, 0.0  ;;  %v1146_v26 = vmul.f32 0.2, %v992_v19 }
 0x11e   : > { %v1214_v27 = vadd.f32 %v1213_v25, %v1212_v23  ;;  %vm1113_vm11 = vcmp.gt.f32.partialorder %v987_v24, 0.0  ;;  %v1145_v28 = vmul.f32 0.2, %v987_v24  ;;  %v10118_v29 = vpop.f32.mrb[10].mxu1 }
 0x11f   : > { %v1002_v31 = vadd.f32 %v10118_v29, %v12219_v41  ;;  %v996_v32 = vpop.f32.mrb[11].mxu1  ;;  %v12264_v33 = vsel %vm1114_vm10, %v992_v19, %v1146_v26 }
 0x120   : > { %v12266_v34 = vsel %vm1113_vm11, %v987_v24, %v1145_v28  ;;  %v1216_v35 = vadd.f32 %v1215_v30, %v1214_v27  ;;  %v997_v36 = vadd.f32 %v12219_v41, %v996_v32  ;;  %v1219_v43 = vsel %vm1201_vm2, %v12264_v33, 0.0 }
 0x121   : > { %v1217_v37 = vsel %vm1201_vm2, %v12266_v34, 0.0  ;;  %vm1116_vm12 = vcmp.gt.f32.partialorder %v1002_v31, 0.0  ;;  %v1148_v38 = vmul.f32 0.2, %v1002_v31 }
 0x122   : > { %v1218_v39 = vadd.f32 %v1217_v37, %v1216_v35  ;;  %vm1115_vm13 = vcmp.gt.f32.partialorder %v997_v36, 0.0  ;;  %v1147_v40 = vmul.f32 0.2, %v997_v36  ;;  %v10121_v42 = vpop.f32.mrb[12].mxu1 }
 0x123   : > { %v1012_v44 = vadd.f32 %v10121_v42, %v12219_v41  ;;  %v1006_v45 = vpop.f32.mrb[13].mxu1  ;;  %v12274_v46 = vsel %vm1116_vm12, %v1002_v31, %v1148_v38 }
 0x124   : > { %v12276_v47 = vsel %vm1115_vm13, %v997_v36, %v1147_v40  ;;  %v1220_v48 = vadd.f32 %v1219_v43, %v1218_v39  ;;  %v1007_v50 = vadd.f32 %v12219_v41, %v1006_v45  ;;  %v1223_v57 = vsel %vm1201_vm2, %v12274_v46, 0.0 }
 0x125   : > { %v1221_v51 = vsel %vm1201_vm2, %v12276_v47, 0.0  ;;  %vm1118_vm14 = vcmp.gt.f32.partialorder %v1012_v44, 0.0  ;;  %v1150_v53 = vmul.f32 0.2, %v1012_v44 }
 0x126   : > { %v1222_v54 = vadd.f32 %v1221_v51, %v1220_v48  ;;  %vm1117_vm15 = vcmp.gt.f32.partialorder %v1007_v50, 0.0  ;;  %v1149_v55 = vmul.f32 0.2, %v1007_v50  ;;  %v10124_v56 = vpop.f32.mrb[14].mxu1 }
 0x127   : > { %v1022_v58 = vadd.f32 %v10124_v56, %v12219_v41  ;;  %v1016_v59 = vpop.f32.mrb[15].mxu1  ;;  %v12284_v60 = vsel %vm1118_vm14, %v1012_v44, %v1150_v53 }
 0x128   : > { %v12286_v61 = vsel %vm1117_vm15, %v1007_v50, %v1149_v55  ;;  %v1224_v0 = vadd.f32 %v1223_v57, %v1222_v54  ;;  %v1017_v1 = vadd.f32 %v12219_v41, %v1016_v59  ;;  %v1227_v7 = vsel %vm1201_vm2, %v12284_v60, 0.0 }
 0x129   : > { %v1225_v2 = vsel %vm1201_vm2, %v12286_v61, 0.0  ;;  %vm1120_vm0 = vcmp.gt.f32.partialorder %v1022_v58, 0.0  ;;  %v1152_v3 = vmul.f32 0.2, %v1022_v58 }
 0x12a   : > { %v1226_v4 = vadd.f32 %v1225_v2, %v1224_v0  ;;  %vm1119_vm1 = vcmp.gt.f32.partialorder %v1017_v1, 0.0  ;;  %v1151_v5 = vmul.f32 0.2, %v1017_v1  ;;  %v10127_v6 = vpop.f32.mrb[16].mxu1 }
 0x12b   : > { %v1032_v8 = vadd.f32 %v10127_v6, %v12219_v41  ;;  %v1026_v11 = vpop.f32.mrb[17].mxu1  ;;  %v12294_v12 = vsel %vm1120_vm0, %v1022_v58, %v1152_v3 }
 0x12c   : > { %v12296_v13 = vsel %vm1119_vm1, %v1017_v1, %v1151_v5  ;;  %v1228_v14 = vadd.f32 %v1227_v7, %v1226_v4  ;;  %v1027_v15 = vadd.f32 %v12219_v41, %v1026_v11  ;;  %v1231_v23 = vsel %vm1201_vm2, %v12294_v12, 0.0 }
 0x12d   : > { %v1229_v16 = vsel %vm1201_vm2, %v12296_v13, 0.0  ;;  %vm1122_vm3 = vcmp.gt.f32.partialorder %v1032_v8, 0.0  ;;  %v1154_v17 = vmul.f32 0.2, %v1032_v8 }
 0x12e   : > { %v1230_v18 = vadd.f32 %v1229_v16, %v1228_v14  ;;  %vm1121_vm4 = vcmp.gt.f32.partialorder %v1027_v15, 0.0  ;;  %v1153_v19 = vmul.f32 0.2, %v1027_v15  ;;  %v10130_v20 = vpop.f32.mrb[18].mxu1 }
 0x12f   : > { %v1042_v24 = vadd.f32 %v10130_v20, %v12219_v41  ;;  %v1036_v25 = vpop.f32.mrb[19].mxu1  ;;  %v12304_v26 = vsel %vm1122_vm3, %v1032_v8, %v1154_v17 }
 0x130   : > { %v12306_v27 = vsel %vm1121_vm4, %v1027_v15, %v1153_v19  ;;  %v1232_v28 = vadd.f32 %v1231_v23, %v1230_v18  ;;  %v1037_v29 = vadd.f32 %v12219_v41, %v1036_v25  ;;  %v1235_v37 = vsel %vm1201_vm2, %v12304_v26, 0.0 }
 0x131   : > { %v1233_v30 = vsel %vm1201_vm2, %v12306_v27, 0.0  ;;  %vm1124_vm5 = vcmp.gt.f32.partialorder %v1042_v24, 0.0  ;;  %v1156_v31 = vmul.f32 0.2, %v1042_v24  ;;  %vm4696_vm4 = vcmask 523264  }
 0x132   : > { %v1234_v32 = vadd.f32 %v1233_v30, %v1232_v28  ;;  %vm1123_vm6 = vcmp.gt.f32.partialorder %v1037_v29, 0.0  ;;  %v1155_v35 = vmul.f32 0.2, %v1037_v29  ;;  %v10133_v36 = vpop.f32.mrb[20].mxu1 }
 0x133   : > { %v1052_v38 = vadd.f32 %v10133_v36, %v12219_v41  ;;  %v1046_v39 = vpop.f32.mrb[21].mxu1  ;;  %v12314_v40 = vsel %vm1124_vm5, %v1042_v24, %v1156_v31 }
 0x134   : > { %v12316_v42 = vsel %vm1123_vm6, %v1037_v29, %v1155_v35  ;;  %v1236_v43 = vadd.f32 %v1235_v37, %v1234_v32  ;;  %v1047_v44 = vadd.f32 %v12219_v41, %v1046_v39  ;;  %v1239_v54 = vsel %vm1201_vm2, %v12314_v40, 0.0 }
 0x135   : > { %v1237_v45 = vsel %vm1201_vm2, %v12316_v42, 0.0  ;;  %vm1126_vm7 = vcmp.gt.f32.partialorder %v1052_v38, 0.0  ;;  %v1158_v48 = vmul.f32 0.2, %v1052_v38  ;;  %v11948_v35 = vmov 0.0|0.0  }
 0x136   : > { %v1238_v50 = vadd.f32 %v1237_v45, %v1236_v43  ;;  %vm1125_vm8 = vcmp.gt.f32.partialorder %v1047_v44, 0.0  ;;  %v1157_v51 = vmul.f32 0.2, %v1047_v44  ;;  %v10136_v53 = vpop.f32.mrb[22].mxu1  ;;  %11063 = vmatprep.subr.bf16.mxu1 %v11948_v35 }
 0x137   : > { %v1062_v55 = vadd.f32 %v10136_v53, %v12219_v41  ;;  %v1056_v56 = vpop.f32.mrb[23].mxu1  ;;  %v12324_v57 = vsel %vm1126_vm7, %v1052_v38, %v1158_v48 }
 0x138   : > { %v12326_v58 = vsel %vm1125_vm8, %v1047_v44, %v1157_v51  ;;  %v1240_v59 = vadd.f32 %v1239_v54, %v1238_v50  ;;  %v1057_v0 = vadd.f32 %v12219_v41, %v1056_v56  ;;  %v1243_v6 = vsel %vm1201_vm2, %v12324_v57, 0.0 }
 0x139   : > { %v1241_v1 = vsel %vm1201_vm2, %v12326_v58, 0.0  ;;  %vm1128_vm9 = vcmp.gt.f32.partialorder %v1062_v55, 0.0  ;;  %v1160_v2 = vmul.f32 0.2, %v1062_v55 }
 0x13a   : > { %v1242_v3 = vadd.f32 %v1241_v1, %v1240_v59  ;;  %vm1127_vm10 = vcmp.gt.f32.partialorder %v1057_v0, 0.0  ;;  %v1159_v4 = vmul.f32 0.2, %v1057_v0  ;;  %v10139_v5 = vpop.f32.mrb[24].mxu1 }
 0x13b   : > { %v1072_v7 = vadd.f32 %v10139_v5, %v12219_v41  ;;  %v1066_v8 = vpop.f32.mrb[25].mxu1  ;;  %v12334_v11 = vsel %vm1128_vm9, %v1062_v55, %v1160_v2 }
 0x13c   : > { %v12336_v14 = vsel %vm1127_vm10, %v1057_v0, %v1159_v4  ;;  %v1244_v15 = vadd.f32 %v1243_v6, %v1242_v3  ;;  %v1067_v16 = vadd.f32 %v12219_v41, %v1066_v8  ;;  %v1247_v24 = vsel %vm1201_vm2, %v12334_v11, 0.0 }
 0x13d   : > { %v1245_v17 = vsel %vm1201_vm2, %v12336_v14, 0.0  ;;  %vm1130_vm11 = vcmp.gt.f32.partialorder %v1072_v7, 0.0  ;;  %v1162_v18 = vmul.f32 0.2, %v1072_v7 }
 0x13e   : > { %v1246_v19 = vadd.f32 %v1245_v17, %v1244_v15  ;;  %vm1129_vm12 = vcmp.gt.f32.partialorder %v1067_v16, 0.0  ;;  %v1161_v20 = vmul.f32 0.2, %v1067_v16  ;;  %v10142_v23 = vpop.f32.mrb[26].mxu1 }
 0x13f   : > { %v1082_v25 = vadd.f32 %v10142_v23, %v12219_v41  ;;  %v1076_v28 = vpop.f32.mrb[27].mxu1  ;;  %v12344_v29 = vsel %vm1130_vm11, %v1072_v7, %v1162_v18 }
 0x140   : > { %v12346_v30 = vsel %vm1129_vm12, %v1067_v16, %v1161_v20  ;;  %v1248_v31 = vadd.f32 %v1247_v24, %v1246_v19  ;;  %v1077_v32 = vadd.f32 %v12219_v41, %v1076_v28  ;;  %v1251_v44 = vsel %vm1201_vm2, %v12344_v29, 0.0 }
 0x141   : > { %v1249_v36 = vsel %vm1201_vm2, %v12346_v30, 0.0  ;;  %vm1132_vm13 = vcmp.gt.f32.partialorder %v1082_v25, 0.0  ;;  %v1164_v37 = vmul.f32 0.2, %v1082_v25 }
 0x142   : > { %v1250_v38 = vadd.f32 %v1249_v36, %v1248_v31  ;;  %vm1131_vm14 = vcmp.gt.f32.partialorder %v1077_v32, 0.0  ;;  %v1163_v39 = vmul.f32 0.2, %v1077_v32  ;;  %v10145_v43 = vpop.f32.mrb[28].mxu1 }
 0x143   : > { %v1092_v45 = vadd.f32 %v10145_v43, %v12219_v41  ;;  %v1086_v48 = vpop.f32.mrb[29].mxu1  ;;  %v1196_v50 = vsel %vm1132_vm13, %v1082_v25, %v1164_v37  ;;  %vm6603_vm13 = vcmask 130048  }
 0x144   : > { %v1195_v51 = vsel %vm1131_vm14, %v1077_v32, %v1163_v39  ;;  %v1252_v53 = vadd.f32 %v1251_v44, %v1250_v38  ;;  %v1087_v54 = vadd.f32 %v12219_v41, %v1086_v48  ;;  %v1255_v2 = vsel %vm1201_vm2, %v1196_v50, 0.0 }
 0x145   : > { %v1253_v55 = vsel %vm1201_vm2, %v1195_v51, 0.0  ;;  %vm1134_vm15 = vcmp.gt.f32.partialorder %v1092_v45, 0.0  ;;  %v1166_v56 = vmul.f32 0.2, %v1092_v45 }
 0x146   : > { %v1254_v59 = vadd.f32 %v1253_v55, %v1252_v53  ;;  %vm1133_vm0 = vcmp.gt.f32.partialorder %v1087_v54, 0.0  ;;  %v1165_v0 = vmul.f32 0.2, %v1087_v54  ;;  %v10148_v1 = vpop.f32.mrb[30].mxu1 }
 0x147   : > { %v1102_v3 = vadd.f32 %v10148_v1, %v12219_v41  ;;  %v1096_v4 = vpop.f32.mrb[31].mxu1  ;;  %v1198_v5 = vsel %vm1134_vm15, %v1092_v45, %v1166_v56 }
 0x148   : > { %v1197_v6 = vsel %vm1133_vm0, %v1087_v54, %v1165_v0  ;;  %v1256_v7 = vadd.f32 %v1255_v2, %v1254_v59  ;;  %v1097_v8 = vadd.f32 %v12219_v41, %v1096_v4  ;;  %v1259_v19 = vsel %vm1201_vm2, %v1198_v5, 0.0 }
 0x149   : > { %v1257_v15 = vsel %vm1201_vm2, %v1197_v6, 0.0  ;;  %vm1136_vm1 = vcmp.gt.f32.partialorder %v1102_v3, 0.0  ;;  %v1168_v16 = vmul.f32 0.2, %v1102_v3  ;;  %vm11949_vm0 = vmmov 0  }
 0x14a   : > { %v1258_v17 = vadd.f32 %v1257_v15, %v1256_v7  ;;  %vm1135_vm3 = vcmp.gt.f32.partialorder %v1097_v8, 0.0  ;;  %v1167_v18 = vmul.f32 0.2, %v1097_v8 }
 0x14b   : > { %v1200_v20 = vsel %vm1136_vm1, %v1102_v3, %v1168_v16 }
 0x14c   : > { %v1199_v23 = vsel %vm1135_vm3, %v1097_v8, %v1167_v18  ;;  %v1260_v24 = vadd.f32 %v1259_v19, %v1258_v17  ;;  %v1263_v31 = vsel %vm1201_vm2, %v1200_v20, 0.0  ;;  %vm8082_vm3 = vcmask 125952  }
 0x14d   : > { %v1261_v25 = vsel %vm1201_vm2, %v1199_v23, 0.0 }
 0x14e   : > { %v1262_v28 = vadd.f32 %v1261_v25, %v1260_v24 }
 0x150   : > { %v1264_v32 = vadd.f32 %v1263_v31, %v1262_v28 }
 0x152   : > { %v1265_v36 = vrot.slane %v1264_v32, 4 }
 0x154   : > { %v1266_v41 = vadd.f32 %v1265_v36, %v1264_v32 }
 0x156   : > { %v1267_v37 = vrot.slane %v1266_v41, 2 }
 0x158   : > { %v1268_v38 = vadd.f32 %v1267_v37, %v1266_v41 }
 0x15a   : > { %v1269_v39 = vrot.slane %v1268_v38, 1 }
 0x15c   : > { %v1270_v43 = vadd.f32 %v1269_v39, %v1268_v38 }
 0x15e   : > { %v1272_v44 = vmul.f32 0.00390625, %v1270_v43 }
 0x160   : > { %v12365_v45 = vsub.f32 %v12276_v47, %v1272_v44  ;;  %v12368_v48 = vsub.f32 %v12274_v46, %v1272_v44  ;;  %v12371_v53 = vsub.f32 %v12286_v61, %v1272_v44  ;;  %v12374_v54 = vsub.f32 %v12284_v60, %v1272_v44 }
 0x161   : > { %v12377_v55 = vsub.f32 %v12296_v13, %v1272_v44  ;;  %v12380_v56 = vsub.f32 %v12294_v12, %v1272_v44  ;;  %v12383_v59 = vsub.f32 %v12306_v27, %v1272_v44  ;;  %v12386_v47 = vsub.f32 %v12304_v26, %v1272_v44 }
 0x162   : > { %v12389_v46 = vsub.f32 %v12316_v42, %v1272_v44  ;;  %v12392_v61 = vsub.f32 %v12314_v40, %v1272_v44  ;;  %v12395_v60 = vsub.f32 %v12326_v58, %v1272_v44  ;;  %v12398_v13 = vsub.f32 %v12324_v57, %v1272_v44 }
 0x163   : > { %v12401_v12 = vsub.f32 %v12336_v14, %v1272_v44  ;;  %v12404_v27 = vsub.f32 %v12334_v11, %v1272_v44  ;;  %v12407_v26 = vsub.f32 %v12346_v30, %v1272_v44  ;;  %v12410_v42 = vsub.f32 %v12344_v29, %v1272_v44 }
 0x164   : > { %v12412_v40 = vsub.f32 %v1195_v51, %v1272_v44  ;;  %v12414_v0 = vsub.f32 %v1196_v50, %v1272_v44  ;;  %v12416_v58 = vsub.f32 %v1197_v6, %v1272_v44  ;;  %v12418_v57 = vsub.f32 %v1198_v5, %v1272_v44 }
 0x165   : > { %v12420_v1 = vsub.f32 %v1199_v23, %v1272_v44  ;;  %v12422_v14 = vsub.f32 %v1200_v20, %v1272_v44  ;;  %v12425_v11 = vsub.f32 %v12226_v52, %v1272_v44  ;;  %v12428_v30 = vsub.f32 %v12223_v49, %v1272_v44 }
 0x166   : > { %v12431_v29 = vsub.f32 %v12236_v63, %v1272_v44  ;;  %v12434_v50 = vsub.f32 %v12234_v62, %v1272_v44  ;;  %v12441_v3 = vsub.f32 %v12246_v10, %v1272_v44  ;;  %v12446_v49 = vsub.f32 %v12244_v9, %v1272_v44 }
 0x167   : > { %v1305_v51 = vmul.f32 %v12425_v11, %v12425_v11  ;;  %v1306_v2 = vmul.f32 %v12428_v30, %v12428_v30  ;;  %v12453_v6 = vsub.f32 %v12256_v22, %v1272_v44  ;;  %v12459_v9 = vsub.f32 %v12254_v21, %v1272_v44 }
 0x168   : > { %v1307_v52 = vmul.f32 %v12431_v29, %v12431_v29  ;;  %v1308_v63 = vmul.f32 %v12434_v50, %v12434_v50  ;;  %v1309_v10 = vmul.f32 %v12441_v3, %v12441_v3  ;;  %v1310_v15 = vmul.f32 %v12446_v49, %v12446_v49 }
 0x169   : > { %v1337_v62 = vsel %vm1201_vm2, %v1305_v51, 0.0  ;;  %v1338_v4 = vsel %vm1201_vm2, %v1306_v2, 0.0  ;;  %v12465_v18 = vsub.f32 %v12266_v34, %v1272_v44  ;;  %v1311_v22 = vmul.f32 %v12453_v6, %v12453_v6 }
 0x16a   : > { %v1339_v5 = vadd.f32 %v1338_v4, %v1337_v62  ;;  %v1340_v7 = vsel %vm1201_vm2, %v1307_v52, 0.0  ;;  %v1342_v16 = vsel %vm1201_vm2, %v1308_v63, 0.0  ;;  %v1344_v19 = vsel %vm1201_vm2, %v1309_v10, 0.0 }
 0x16b   : > { %v12471_v23 = vsub.f32 %v12264_v33, %v1272_v44  ;;  %v1312_v21 = vmul.f32 %v12459_v9, %v12459_v9  ;;  %v1346_v24 = vsel %vm1201_vm2, %v1310_v15, 0.0  ;;  %v1313_v28 = vmul.f32 %v12465_v18, %v12465_v18 }
 0x16c   : > { %v1341_v8 = vadd.f32 %v1340_v7, %v1339_v5  ;;  %v1348_v34 = vsel %vm1201_vm2, %v1311_v22, 0.0  ;;  %v1315_v33 = vmul.f32 %v12365_v45, %v12365_v45  ;;  %v1316_v39 = vmul.f32 %v12368_v48, %v12368_v48 }
 0x16d   : > { %v1314_v32 = vmul.f32 %v12471_v23, %v12471_v23  ;;  %v1350_v36 = vsel %vm1201_vm2, %v1312_v21, 0.0  ;;  %v1352_v37 = vsel %vm1201_vm2, %v1313_v28, 0.0  ;;  %v1317_v51 = vmul.f32 %v12371_v53, %v12371_v53 }
 0x16e   : > { %v1343_v17 = vadd.f32 %v1342_v16, %v1341_v8  ;;  %v1356_v2 = vsel %vm1201_vm2, %v1315_v33, 0.0  ;;  %v1318_v63 = vmul.f32 %v12374_v54, %v12374_v54  ;;  %v1358_v62 = vsel %vm1201_vm2, %v1316_v39, 0.0 }
 0x16f   : > { %v1354_v43 = vsel %vm1201_vm2, %v1314_v32, 0.0  ;;  %v1319_v5 = vmul.f32 %v12377_v55, %v12377_v55  ;;  %v1360_v10 = vsel %vm1201_vm2, %v1317_v51, 0.0  ;;  %v1320_v8 = vmul.f32 %v12380_v56, %v12380_v56 }
 0x170   : > { %v1345_v20 = vadd.f32 %v1344_v19, %v1343_v17  ;;  %v1362_v15 = vsel %vm1201_vm2, %v1318_v63, 0.0  ;;  %v1321_v17 = vmul.f32 %v12383_v59, %v12383_v59  ;;  %v1442_v19 = vld [vmem:[%s14944_s24 + $0x8] sm:$0xff]  ;;  %v1322_v21 = vmul.f32 %v12386_v47, %v12386_v47 }
 0x171   : > { %v1364_v22 = vsel %vm1201_vm2, %v1319_v5, 0.0  ;;  %1761 = vmatprep.mubr.f32.mxu1 %v1442_v19  ;;  %v1323_v28 = vmul.f32 %v12389_v46, %v12389_v46  ;;  %v1324_v32 = vmul.f32 %v12392_v61, %v12392_v61  ;;  %v1325_v33 = vmul.f32 %v12395_v60, %v12395_v60 }
 0x172   : > { %v1347_v25 = vadd.f32 %v1346_v24, %v1345_v20  ;;  %v1366_v24 = vsel %vm1201_vm2, %v1320_v8, 0.0  ;;  %v1326_v39 = vmul.f32 %v12398_v13, %v12398_v13  ;;  %v1327_v51 = vmul.f32 %v12401_v12, %v12401_v12 }
 0x173   : > { %v1328_v63 = vmul.f32 %v12404_v27, %v12404_v27  ;;  %v1329_v5 = vmul.f32 %v12407_v26, %v12407_v26  ;;  %v1330_v8 = vmul.f32 %v12410_v42, %v12410_v42 }
 0x174   : > { %v1349_v31 = vadd.f32 %v1348_v34, %v1347_v25  ;;  %v1368_v34 = vsel %vm1201_vm2, %v1321_v17, 0.0  ;;  %v1331_v17 = vmul.f32 %v12412_v40, %v12412_v40 }
 0x176   : > { %v1351_v41 = vadd.f32 %v1350_v36, %v1349_v31  ;;  %v1370_v36 = vsel %vm1201_vm2, %v1322_v21, 0.0  ;;  %v1386_v21 = vsel %vm1201_vm2, %v1330_v8, 0.0 }
 0x178   : > { %v1353_v38 = vadd.f32 %v1352_v37, %v1351_v41  ;;  %v1372_v37 = vsel %vm1201_vm2, %v1323_v28, 0.0  ;;  %v1388_v28 = vsel %vm1201_vm2, %v1331_v17, 0.0 }
 0x17a   : > { %v1355_v44 = vadd.f32 %v1354_v43, %v1353_v38  ;;  %v1374_v43 = vsel %vm1201_vm2, %v1324_v32, 0.0 }
 0x17c   : > { %v1357_v52 = vadd.f32 %v1356_v2, %v1355_v44  ;;  %v1376_v2 = vsel %vm1201_vm2, %v1325_v33, 0.0 }
 0x17e   : > { %v1359_v4 = vadd.f32 %v1358_v62, %v1357_v52  ;;  %v1378_v62 = vsel %vm1201_vm2, %v1326_v39, 0.0 }
 0x180   : > { %v1361_v7 = vadd.f32 %v1360_v10, %v1359_v4  ;;  %v1380_v10 = vsel %vm1201_vm2, %v1327_v51, 0.0 }
 0x182   : > { %v1363_v16 = vadd.f32 %v1362_v15, %v1361_v7  ;;  %v1382_v15 = vsel %vm1201_vm2, %v1328_v63, 0.0 }
 0x184   : > { %v1365_v20 = vadd.f32 %v1364_v22, %v1363_v16  ;;  %v1384_v22 = vsel %vm1201_vm2, %v1329_v5, 0.0 }
 0x186   : > { %v1367_v25 = vadd.f32 %v1366_v24, %v1365_v20  ;;  %v1332_v20 = vmul.f32 %v12414_v0, %v12414_v0 }
 0x188   : > { %v1369_v31 = vadd.f32 %v1368_v34, %v1367_v25  ;;  %v1333_v25 = vmul.f32 %v12416_v58, %v12416_v58  ;;  %v1390_v32 = vsel %vm1201_vm2, %v1332_v20, 0.0 }
 0x18a   : > { %v1371_v41 = vadd.f32 %v1370_v36, %v1369_v31  ;;  %v1334_v31 = vmul.f32 %v12418_v57, %v12418_v57  ;;  %v1392_v33 = vsel %vm1201_vm2, %v1333_v25, 0.0 }
 0x18c   : > { %v1373_v38 = vadd.f32 %v1372_v37, %v1371_v41  ;;  %v1335_v41 = vmul.f32 %v12420_v1, %v12420_v1  ;;  %v1394_v39 = vsel %vm1201_vm2, %v1334_v31, 0.0 }
 0x18e   : > { %v1375_v44 = vadd.f32 %v1374_v43, %v1373_v38  ;;  %v1336_v38 = vmul.f32 %v12422_v14, %v12422_v14 }
 0x190   : > { %v1377_v52 = vadd.f32 %v1376_v2, %v1375_v44  ;;  %v1396_v44 = vsel %vm1201_vm2, %v1335_v41, 0.0  ;;  %v1398_v2 = vsel %vm1201_vm2, %v1336_v38, 0.0 }
 0x192   : > { %v1379_v4 = vadd.f32 %v1378_v62, %v1377_v52 }
 0x194   : > { %v1381_v7 = vadd.f32 %v1380_v10, %v1379_v4 }
 0x196   : > { %v1383_v16 = vadd.f32 %v1382_v15, %v1381_v7 }
 0x198   : > { %v1385_v19 = vadd.f32 %v1384_v22, %v1383_v16 }
 0x19a   : > { %v1387_v24 = vadd.f32 %v1386_v21, %v1385_v19 }
 0x19c   : > { %v1389_v34 = vadd.f32 %v1388_v28, %v1387_v24 }
 0x19e   : > { %v1391_v36 = vadd.f32 %v1390_v32, %v1389_v34 }
 0x1a0   : > { %v1393_v37 = vadd.f32 %v1392_v33, %v1391_v36 }
 0x1a2   : > { %v1395_v43 = vadd.f32 %v1394_v39, %v1393_v37 }
 0x1a4   : > { %v1397_v51 = vadd.f32 %v1396_v44, %v1395_v43 }
 0x1a6   : > { %v1399_v52 = vadd.f32 %v1398_v2, %v1397_v51  ;;  %v1445_v2 = vld [vmem:[%s14945_s26 + $0x20] sm:$0xff] }
 0x1a8   : > { %v1400_v63 = vrot.slane %v1399_v52, 4 }
 0x1aa   : > { %v1401_v62 = vadd.f32 %v1400_v63, %v1399_v52  ;;  %v1448_v52 = vld [vmem:[%s14945_s26 + $0x38] sm:$0xff]  ;;  %v1447_v63 = vld [vmem:[%s14945_s26 + $0x30] sm:$0xff] }
 0x1ac   : > { %v1402_v4 = vrot.slane %v1401_v62, 2 }
 0x1ae   : > { %v1403_v5 = vadd.f32 %v1402_v4, %v1401_v62  ;;  %v1450_v62 = vld [vmem:[%s14945_s26 + $0x48] sm:$0xff]  ;;  %v1449_v4 = vld [vmem:[%s14945_s26 + $0x40] sm:$0xff] }
 0x1b0   : > { %v1404_v10 = vrot.slane %v1403_v5, 1 }
 0x1b2   : > { %v1405_v7 = vadd.f32 %v1404_v10, %v1403_v5  ;;  %v1452_v5 = vld [vmem:[%s14945_s26 + $0x58] sm:$0xff]  ;;  %v1451_v10 = vld [vmem:[%s14945_s26 + $0x50] sm:$0xff] }
 0x1b4   : > { %v1406_v8 = vmul.f32 0.00390625, %v1405_v7  ;;  %v1454_v7 = vld [vmem:[%s14945_s26 + $0x68] sm:$0xff] }
 0x1b6   : > { %v1407_v15 = vadd.f32 1e-05, %v1406_v8  ;;  %v1453_v8 = vld [vmem:[%s14945_s26 + $0x60] sm:$0xff] }
 0x1b8   : > { %11814 = vrsqrt.f32 %v1407_v15  ;;  %v1456_v15 = vld [vmem:[%s14945_s26 + $0x78] sm:$0xff] }
 0x1c2   : > { %v12553_v16 = vpop.eup %11814 }
 0x1c3   : > { %v1409_v17 = vmul.f32 %v12553_v16, %v12425_v11  ;;  %v1410_v22 = vmul.f32 %v12553_v16, %v12428_v30  ;;  %v1411_v20 = vmul.f32 %v12553_v16, %v12431_v29  ;;  %v1412_v21 = vmul.f32 %v12553_v16, %v12434_v50 }
 0x1c4   : > { %v1413_v25 = vmul.f32 %v12553_v16, %v12441_v3  ;;  %v1414_v11 = vmul.f32 %v12553_v16, %v12446_v49  ;;  %v1415_v29 = vmul.f32 %v12553_v16, %v12453_v6  ;;  %v1416_v50 = vmul.f32 %v12553_v16, %v12459_v9 }
 0x1c5   : > { %v11064_v19 = vpack.c.bf16 %v1410_v22, %v1409_v17  ;;  %v11067_v24 = vpack.c.bf16 %v1412_v21, %v1411_v20  ;;  %v1417_v3 = vmul.f32 %v12553_v16, %v12465_v18  ;;  %v1418_v49 = vmul.f32 %v12553_v16, %v12471_v23  ;;  %v1458_v17 = vld [vmem:[%s14945_s26 + $0x88] sm:$0xff]  ;;  %v1457_v22 = vld [vmem:[%s14945_s26 + $0x80] sm:$0xff]  ;;  %v1459_v20 = vld [vmem:[%s14945_s26 + $0x90] sm:$0xff] }
 0x1c6   : > { %v11070_v30 = vpack.c.bf16 %v1414_v11, %v1413_v25  ;;  %v11073_v28 = vpack.c.bf16 %v1416_v50, %v1415_v29  ;;  %v1419_v6 = vmul.f32 %v12553_v16, %v12365_v45  ;;  %v1420_v9 = vmul.f32 %v12553_v16, %v12368_v48  ;;  %v1462_v21 = vld [vmem:[%s14945_s26 + $0xa8] sm:$0xff]  ;;  %v1464_v25 = vld [vmem:[%s14945_s26 + $0xb8] sm:$0xff]  ;;  %v1463_v11 = vld [vmem:[%s14945_s26 + $0xb0] sm:$0xff] }
 0x1c7   : > { %11065 = vmatpush1.bf16.msra.mxu1 %v11064_v19  ;;  %v11076_v34 = vpack.c.bf16 %v1418_v49, %v1417_v3  ;;  %v1421_v18 = vmul.f32 %v12553_v16, %v12371_v53  ;;  %v1422_v23 = vmul.f32 %v12553_v16, %v12374_v54  ;;  %v1423_v45 = vmul.f32 %v12553_v16, %v12377_v55  ;;  %v1460_v19 = vld [vmem:[%s14945_s26 + $0x98] sm:$0xff]  ;;  %v1465_v29 = vld [vmem:[%s14945_s26 + $0xc0] sm:$0xff]  ;;  %v1470_v3 = vld [vmem:[%s14945_s26 + $0xe8] sm:$0xff] }
 0x1c8   : > { %11066 = vmatprep.subr.bf16.mxu1 %v11948_v35  ;;  %v11079_v31 = vpack.c.bf16 %v1420_v9, %v1419_v6  ;;  %v1424_v48 = vmul.f32 %v12553_v16, %v12380_v56  ;;  %v1425_v53 = vmul.f32 %v12553_v16, %v12383_v59  ;;  %v1426_v54 = vmul.f32 %v12553_v16, %v12386_v47  ;;  %v1468_v50 = vld [vmem:[%s14945_s26 + $0xd8] sm:$0xff]  ;;  %v1469_v49 = vld [vmem:[%s14945_s26 + $0xe0] sm:$0xff]  ;;  %v1471_v6 = vld [vmem:[%s14945_s26 + $0xf0] sm:$0xff] }
 0x1c9   : > { %v11082_v32 = vpack.c.bf16 %v1422_v23, %v1421_v18  ;;  %v1427_v55 = vmul.f32 %v12553_v16, %v12389_v46  ;;  %v1428_v56 = vmul.f32 %v12553_v16, %v12392_v61  ;;  %v1429_v59 = vmul.f32 %v12553_v16, %v12395_v60  ;;  %v1474_v9 = vld [vmem:[%s14945_s26 + $0x108] sm:$0xff]  ;;  %v1476_v18 = vld [vmem:[%s14945_s26 + $0x118] sm:$0xff]  ;;  %v1475_v23 = vld [vmem:[%s14945_s26 + $0x110] sm:$0xff] }
 0x1ca   : > { %v11085_v36 = vpack.c.bf16 %v1424_v48, %v1423_v45  ;;  %v11088_v41 = vpack.c.bf16 %v1426_v54, %v1425_v53  ;;  %v1430_v47 = vmul.f32 %v12553_v16, %v12398_v13  ;;  %v1431_v46 = vmul.f32 %v12553_v16, %v12401_v12  ;;  %v1477_v45 = vld [vmem:[%s14945_s26 + $0x120] sm:$0xff]  ;;  %v1480_v48 = vld [vmem:[%s14945_s26 + $0x138] sm:$0xff]  ;;  %v1482_v53 = vld [vmem:[%s14945_s26 + $0x148] sm:$0xff] }
 0x1cb   : > { %11068 = vmatpush1.bf16.msra.mxu1 %v11067_v24  ;;  %v11091_v33 = vpack.c.bf16 %v1428_v56, %v1427_v55  ;;  %v1432_v61 = vmul.f32 %v12553_v16, %v12404_v27  ;;  %v1433_v60 = vmul.f32 %v12553_v16, %v12407_v26  ;;  %v1434_v13 = vmul.f32 %v12553_v16, %v12410_v42  ;;  %v1461_v24 = vld [vmem:[%s14945_s26 + $0xa0] sm:$0xff]  ;;  %v1483_v55 = vld [vmem:[%s14945_s26 + $0x150] sm:$0xff]  ;;  %v1486_v56 = vld [vmem:[%s14945_s26 + $0x168] sm:$0xff] }
 0x1cc   : > { %11069 = vmatprep.subr.bf16.mxu1 %v11948_v35  ;;  %v11094_v37 = vpack.c.bf16 %v1430_v47, %v1429_v59  ;;  %v1435_v12 = vmul.f32 %v12553_v16, %v12412_v40  ;;  %v1436_v27 = vmul.f32 %v12553_v16, %v12414_v0  ;;  %v1437_v26 = vmul.f32 %v12553_v16, %v12416_v58  ;;  %v1441_v58 = vld [vmem:[%s14945_s26] sm:$0xff]  ;;  %v1488_v59 = vld [vmem:[%s14945_s26 + $0x178] sm:$0xff]  ;;  %v1487_v47 = vld [vmem:[%s14945_s26 + $0x170] sm:$0xff] }
 0x1cd   : > { %v11097_v38 = vpack.c.bf16 %v1432_v61, %v1431_v46  ;;  %v11100_v39 = vpack.c.bf16 %v1434_v13, %v1433_v60  ;;  %v1438_v42 = vmul.f32 %v12553_v16, %v12418_v57  ;;  %v1439_v40 = vmul.f32 %v12553_v16, %v12420_v1  ;;  %v1444_v57 = vld [vmem:[%s14945_s26 + $0x18] sm:$0xff]  ;;  %v1443_v1 = vld [vmem:[%s14945_s26 + $0x10] sm:$0xff]  ;;  %v1481_v54 = vld [vmem:[%s14945_s26 + $0x140] sm:$0xff] }
 0x1ce   : > { %v11103_v43 = vpack.c.bf16 %v1436_v27, %v1435_v12  ;;  %v1440_v0 = vmul.f32 %v12553_v16, %v12422_v14  ;;  %v1446_v14 = vld [vmem:[%s14945_s26 + $0x28] sm:$0xff]  ;;  %v1455_v16 = vld [vmem:[%s14945_s26 + $0x70] sm:$0xff]  ;;  %v1489_v46 = vld [vmem:[%s14945_s26 + $0x180] sm:$0xff] }
 0x1cf   : > { %11071 = vmatpush1.bf16.msra.mxu1 %v11070_v30  ;;  %v11106_v44 = vpack.c.bf16 %v1438_v42, %v1437_v26  ;;  %v1466_v30 = vld [vmem:[%s14945_s26 + $0xc8] sm:$0xff]  ;;  %v1492_v61 = vld [vmem:[%s14945_s26 + $0x198] sm:$0xff]  ;;  %v1493_v13 = vld [vmem:[%s14945_s26 + $0x1a0] sm:$0xff] }
 0x1d0   : > { %11072 = vmatprep.subr.bf16.mxu1 %v11948_v35  ;;  %v11109_v51 = vpack.c.bf16 %v1440_v0, %v1439_v40  ;;  %v1494_v60 = vld [vmem:[%s14945_s26 + $0x1a8] sm:$0xff]  ;;  %v1495_v12 = vld [vmem:[%s14945_s26 + $0x1b0] sm:$0xff]  ;;  %v1500_v26 = vld [vmem:[%s14945_s26 + $0x1d8] sm:$0xff] }
 0x1d1   : > { %v1498_v27 = vld [vmem:[%s14945_s26 + $0x1c8] sm:$0xff]  ;;  %v9094_v42 = vld [vmem:[%s14946_s23 + $0x20] sm:$0xff]  ;;  %v1499_v40 = vld [vmem:[%s14945_s26 + $0x1d0] sm:$0xff] }
 0x1d3   : > { %11074 = vmatpush1.bf16.msra.mxu1 %v11073_v28  ;;  %v1467_v28 = vld [vmem:[%s14945_s26 + $0xd0] sm:$0xff] }
 0x1d4   : > { %11075 = vmatprep.subr.bf16.mxu1 %v11948_v35 }
 0x1d7   : > { %11077 = vmatpush1.bf16.msra.mxu1 %v11076_v34  ;;  %v1472_v34 = vld [vmem:[%s14945_s26 + $0xf8] sm:$0xff] }
 0x1d8   : > { %11078 = vmatprep.subr.bf16.mxu1 %v11948_v35 }
 0x1db   : > { %11080 = vmatpush1.bf16.msra.mxu1 %v11079_v31  ;;  %v1473_v31 = vld [vmem:[%s14945_s26 + $0x100] sm:$0xff] }
 0x1dc   : > { %11081 = vmatprep.subr.bf16.mxu1 %v11948_v35 }
 0x1df   : > { %11083 = vmatpush1.bf16.msra.mxu1 %v11082_v32  ;;  %v1478_v32 = vld [vmem:[%s14945_s26 + $0x128] sm:$0xff] }
 0x1e0   : > { %11084 = vmatprep.subr.bf16.mxu1 %v11948_v35 }
 0x1e3   : > { %11086 = vmatpush1.bf16.msra.mxu1 %v11085_v36  ;;  %v1479_v36 = vld [vmem:[%s14945_s26 + $0x130] sm:$0xff] }
 0x1e4   : > { %11087 = vmatprep.subr.bf16.mxu1 %v11948_v35 }
 0x1e7   : > { %11089 = vmatpush1.bf16.msra.mxu1 %v11088_v41  ;;  %v1484_v41 = vld [vmem:[%s14945_s26 + $0x158] sm:$0xff] }
 0x1e8   : > { %11090 = vmatprep.subr.bf16.mxu1 %v11948_v35 }
 0x1eb   : > { %11092 = vmatpush1.bf16.msra.mxu1 %v11091_v33  ;;  %v1485_v33 = vld [vmem:[%s14945_s26 + $0x160] sm:$0xff] }
 0x1ec   : > { %11093 = vmatprep.subr.bf16.mxu1 %v11948_v35 }
 0x1ef   : > { %11095 = vmatpush1.bf16.msra.mxu1 %v11094_v37  ;;  %v1490_v37 = vld [vmem:[%s14945_s26 + $0x188] sm:$0xff] }
 0x1f0   : > { %11096 = vmatprep.subr.bf16.mxu1 %v11948_v35 }
 0x1f3   : > { %11098 = vmatpush1.bf16.msra.mxu1 %v11097_v38  ;;  %v1491_v38 = vld [vmem:[%s14945_s26 + $0x190] sm:$0xff] }
 0x1f4   : > { %11099 = vmatprep.subr.bf16.mxu1 %v11948_v35 }
 0x1f7   : > { %11101 = vmatpush1.bf16.msra.mxu1 %v11100_v39  ;;  %v1496_v39 = vld [vmem:[%s14945_s26 + $0x1b8] sm:$0xff] }
 0x1f8   : > { %11102 = vmatprep.subr.bf16.mxu1 %v11948_v35 }
 0x1fb   : > { %11104 = vmatpush1.bf16.msra.mxu1 %v11103_v43  ;;  %v1497_v43 = vld [vmem:[%s14945_s26 + $0x1c0] sm:$0xff] }
 0x1fc   : > { %11105 = vmatprep.subr.bf16.mxu1 %v11948_v35 }
 0x1ff   : > { %11107 = vmatpush1.bf16.msra.mxu1 %v11106_v44  ;;  %v9095_v44 = vld [vmem:[%s14946_s23 + $0x28] sm:$0xff] }
 0x200   : > { %11108 = vmatprep.subr.bf16.mxu1 %v11948_v35  ;;  %v11111_v0 = vpack.c.bf16 %v9095_v44, %v9094_v42 }
 0x202   : > { %11112 = vmatprep.subr.bf16.mxu0 %v11111_v0 }
 0x203   : > { %11110 = vmatpush1.bf16.msra.mxu1 %v11109_v51  ;;  %v1502_v51 = vld [vmem:[%s14945_s26 + $0x1e8] sm:$0xff]  ;;  %11114 = vmatpush3.bf16.msra.mxu0 %v11111_v0 }
 0x204   : > { %v1554_v0 = vld [vmem:[%s14945_s26 + $0x388] sm:$0xff] }
 0x206   : > { %1762 = vmatmul.mubr.f32.vlgmr.msra.gmra.mrb[32].mxu1 %v1441_v58  ;;  %v9096_v58 = vld [vmem:[%s14946_s23 + $0x30] sm:$0xff] }
 0x207   : > { %1766 = vmatprep.mubr.f32.mxu1 %v1444_v57  ;;  %v9097_v57 = vld [vmem:[%s14946_s23 + $0x38] sm:$0xff] }
 0x20a   : > { %1767 = vmatmul.mubr.f32.gmra.mrb[34].mxu1 %v1443_v1  ;;  %v1501_v1 = vld [vmem:[%s14945_s26 + $0x1e0] sm:$0xff] }
 0x20b   : > { %1771 = vmatprep.mubr.f32.mxu1 %v1446_v14  ;;  %v11115_v14 = vpack.c.bf16 %v9097_v57, %v9096_v58  ;;  %v1553_v57 = vld [vmem:[%s14945_s26 + $0x380] sm:$0xff] }
 0x20d   : > { %11116 = vmatprep.subr.bf16.mxu0 %v11115_v14 }
 0x20e   : > { %1772 = vmatmul.mubr.f32.gmra.mrb[36].mxu1 %v1445_v2  ;;  %v1504_v2 = vld [vmem:[%s14945_s26 + $0x1f8] sm:$0xff]  ;;  %11118 = vmatpush3.bf16.msra.mxu0 %v11115_v14 }
 0x20f   : > { %1776 = vmatprep.mubr.f32.mxu1 %v1448_v52  ;;  %v1503_v52 = vld [vmem:[%s14945_s26 + $0x1f0] sm:$0xff] }
 0x212   : > { %1777 = vmatmul.mubr.f32.gmra.mrb[38].mxu1 %v1447_v63  ;;  %v1506_v63 = vld [vmem:[%s14945_s26 + $0x208] sm:$0xff] }
 0x213   : > { %1781 = vmatprep.mubr.f32.mxu1 %v1450_v62  ;;  %v1505_v62 = vld [vmem:[%s14945_s26 + $0x200] sm:$0xff] }
 0x216   : > { %1782 = vmatmul.mubr.f32.gmra.mrb[40].mxu1 %v1449_v4  ;;  %v1508_v4 = vld [vmem:[%s14945_s26 + $0x218] sm:$0xff] }
 0x217   : > { %1786 = vmatprep.mubr.f32.mxu1 %v1452_v5  ;;  %v1507_v5 = vld [vmem:[%s14945_s26 + $0x210] sm:$0xff] }
 0x21a   : > { %1787 = vmatmul.mubr.f32.gmra.mrb[42].mxu1 %v1451_v10  ;;  %v1510_v10 = vld [vmem:[%s14945_s26 + $0x228] sm:$0xff] }
 0x21b   : > { %1791 = vmatprep.mubr.f32.mxu1 %v1454_v7  ;;  %v1509_v7 = vld [vmem:[%s14945_s26 + $0x220] sm:$0xff] }
 0x21e   : > { %1792 = vmatmul.mubr.f32.gmra.mrb[44].mxu1 %v1453_v8  ;;  %v1512_v8 = vld [vmem:[%s14945_s26 + $0x238] sm:$0xff] }
 0x21f   : > { %1796 = vmatprep.mubr.f32.mxu1 %v1456_v15  ;;  %v1511_v15 = vld [vmem:[%s14945_s26 + $0x230] sm:$0xff] }
 0x222   : > { %1797 = vmatmul.mubr.f32.gmra.mrb[46].mxu1 %v1455_v16  ;;  %v1514_v16 = vld [vmem:[%s14945_s26 + $0x248] sm:$0xff] }
 0x223   : > { %1801 = vmatprep.mubr.f32.mxu1 %v1458_v17  ;;  %v2402_v17 = vld [vmem:[%s14946_s23] sm:$0xff] }
 0x226   : > { %1802 = vmatmul.mubr.f32.gmra.mrb[48].mxu1 %v1457_v22  ;;  %v2403_v22 = vld [vmem:[%s14946_s23 + $0x8] sm:$0xff] }
 0x227   : > { %1806 = vmatprep.mubr.f32.mxu1 %v1460_v19  ;;  %v1513_v19 = vld [vmem:[%s14945_s26 + $0x240] sm:$0xff] }
 0x22a   : > { %1807 = vmatmul.mubr.f32.gmra.mrb[50].mxu1 %v1459_v20  ;;  %v12871_v20 = vpack.c.bf16 %v2403_v22, %v2402_v17 }
 0x22b   : > { %1811 = vmatprep.mubr.f32.mxu1 %v1462_v21  ;;  %v1516_v21 = vld [vmem:[%s14945_s26 + $0x258] sm:$0xff] }
 0x22c   : > { %11120 = vmatprep.subr.bf16.mxu0 %v12871_v20 }
 0x22e   : > { %1812 = vmatmul.mubr.f32.gmra.mrb[52].mxu1 %v1461_v24  ;;  %v1515_v24 = vld [vmem:[%s14945_s26 + $0x250] sm:$0xff] }
 0x22f   : > { %1816 = vmatprep.mubr.f32.mxu1 %v1464_v25  ;;  %v1518_v25 = vld [vmem:[%s14945_s26 + $0x268] sm:$0xff] }
 0x232   : > { %1817 = vmatmul.mubr.f32.gmra.mrb[54].mxu1 %v1463_v11  ;;  %v1517_v11 = vld [vmem:[%s14945_s26 + $0x260] sm:$0xff] }
 0x233   : > { %1821 = vmatprep.mubr.f32.mxu1 %v1466_v30  ;;  %v1520_v30 = vld [vmem:[%s14945_s26 + $0x278] sm:$0xff] }
 0x236   : > { %1822 = vmatmul.mubr.f32.gmra.mrb[56].mxu1 %v1465_v29  ;;  %v1519_v29 = vld [vmem:[%s14945_s26 + $0x270] sm:$0xff] }
 0x237   : > { %1826 = vmatprep.mubr.f32.mxu1 %v1468_v50  ;;  %v1522_v50 = vld [vmem:[%s14945_s26 + $0x288] sm:$0xff] }
 0x23a   : > { %1827 = vmatmul.mubr.f32.gmra.mrb[58].mxu1 %v1467_v28  ;;  %v1521_v28 = vld [vmem:[%s14945_s26 + $0x280] sm:$0xff] }
 0x23b   : > { %1831 = vmatprep.mubr.f32.mxu1 %v1470_v3  ;;  %v1524_v3 = vld [vmem:[%s14945_s26 + $0x298] sm:$0xff] }
 0x23e   : > { %1832 = vmatmul.mubr.f32.gmra.mrb[60].mxu1 %v1469_v49  ;;  %v1523_v49 = vld [vmem:[%s14945_s26 + $0x290] sm:$0xff] }
 0x23f   : > { %1836 = vmatprep.mubr.f32.mxu1 %v1472_v34  ;;  %v1526_v34 = vld [vmem:[%s14945_s26 + $0x2a8] sm:$0xff] }
 0x242   : > { %1837 = vmatmul.mubr.f32.gmra.mrb[62].mxu1 %v1471_v6  ;;  %v1525_v6 = vld [vmem:[%s14945_s26 + $0x2a0] sm:$0xff] }
 0x243   : > { %1841 = vmatprep.mubr.f32.mxu1 %v1474_v9  ;;  %v1528_v9 = vld [vmem:[%s14945_s26 + $0x2b8] sm:$0xff] }
 0x246   : > { %1842 = vmatmul.mubr.f32.gmra.mrb[64].mxu1 %v1473_v31  ;;  %v1527_v31 = vld [vmem:[%s14945_s26 + $0x2b0] sm:$0xff] }
 0x247   : > { %1846 = vmatprep.mubr.f32.mxu1 %v1476_v18  ;;  %v1530_v18 = vld [vmem:[%s14945_s26 + $0x2c8] sm:$0xff] }
 0x24a   : > { %1847 = vmatmul.mubr.f32.gmra.mrb[66].mxu1 %v1475_v23  ;;  %v1529_v23 = vld [vmem:[%s14945_s26 + $0x2c0] sm:$0xff] }
 0x24b   : > { %1851 = vmatprep.mubr.f32.mxu1 %v1478_v32  ;;  %v1532_v32 = vld [vmem:[%s14945_s26 + $0x2d8] sm:$0xff] }
 0x24e   : > { %1852 = vmatmul.mubr.f32.gmra.mrb[68].mxu1 %v1477_v45  ;;  %v1531_v45 = vld [vmem:[%s14945_s26 + $0x2d0] sm:$0xff] }
 0x24f   : > { %1856 = vmatprep.mubr.f32.mxu1 %v1480_v48  ;;  %v1534_v48 = vld [vmem:[%s14945_s26 + $0x2e8] sm:$0xff] }
 0x252   : > { %1857 = vmatmul.mubr.f32.gmra.mrb[70].mxu1 %v1479_v36  ;;  %v1533_v36 = vld [vmem:[%s14945_s26 + $0x2e0] sm:$0xff] }
 0x253   : > { %1861 = vmatprep.mubr.f32.mxu1 %v1482_v53  ;;  %v1536_v53 = vld [vmem:[%s14945_s26 + $0x2f8] sm:$0xff] }
 0x256   : > { %1862 = vmatmul.mubr.f32.gmra.mrb[72].mxu1 %v1481_v54  ;;  %v1535_v54 = vld [vmem:[%s14945_s26 + $0x2f0] sm:$0xff] }
 0x257   : > { %1866 = vmatprep.mubr.f32.mxu1 %v1484_v41  ;;  %v1538_v41 = vld [vmem:[%s14945_s26 + $0x308] sm:$0xff] }
 0x25a   : > { %1867 = vmatmul.mubr.f32.gmra.mrb[74].mxu1 %v1483_v55  ;;  %v1537_v55 = vld [vmem:[%s14945_s26 + $0x300] sm:$0xff] }
 0x25b   : > { %1871 = vmatprep.mubr.f32.mxu1 %v1486_v56  ;;  %v1540_v56 = vld [vmem:[%s14945_s26 + $0x318] sm:$0xff] }
 0x25e   : > { %1872 = vmatmul.mubr.f32.gmra.mrb[76].mxu1 %v1485_v33  ;;  %v1539_v33 = vld [vmem:[%s14945_s26 + $0x310] sm:$0xff] }
 0x25f   : > { %1876 = vmatprep.mubr.f32.mxu1 %v1488_v59  ;;  %v1542_v59 = vld [vmem:[%s14945_s26 + $0x328] sm:$0xff] }
 0x262   : > { %1877 = vmatmul.mubr.f32.gmra.mrb[78].mxu1 %v1487_v47  ;;  %v1541_v47 = vld [vmem:[%s14945_s26 + $0x320] sm:$0xff] }
 0x263   : > { %1881 = vmatprep.mubr.f32.mxu1 %v1490_v37  ;;  %v1544_v37 = vld [vmem:[%s14945_s26 + $0x338] sm:$0xff] }
 0x266   : > { %1882 = vmatmul.mubr.f32.gmra.mrb[80].mxu1 %v1489_v46  ;;  %v1543_v46 = vld [vmem:[%s14945_s26 + $0x330] sm:$0xff] }
 0x267   : > { %1886 = vmatprep.mubr.f32.mxu1 %v1492_v61  ;;  %v1546_v61 = vld [vmem:[%s14945_s26 + $0x348] sm:$0xff] }
 0x26a   : > { %1887 = vmatmul.mubr.f32.gmra.mrb[82].mxu1 %v1491_v38  ;;  %v1545_v38 = vld [vmem:[%s14945_s26 + $0x340] sm:$0xff] }
 0x26b   : > { %1891 = vmatprep.mubr.f32.mxu1 %v1494_v60  ;;  %v1548_v60 = vld [vmem:[%s14945_s26 + $0x358] sm:$0xff] }
 0x26e   : > { %1892 = vmatmul.mubr.f32.gmra.mrb[84].mxu1 %v1493_v13  ;;  %v1547_v13 = vld [vmem:[%s14945_s26 + $0x350] sm:$0xff] }
 0x26f   : > { %1896 = vmatprep.mubr.f32.mxu1 %v1496_v39  ;;  %v1550_v39 = vld [vmem:[%s14945_s26 + $0x368] sm:$0xff] }
 0x272   : > { %1897 = vmatmul.mubr.f32.gmra.mrb[86].mxu1 %v1495_v12 }
 0x273   : > { %1901 = vmatprep.mubr.f32.mxu1 %v1498_v27 }
 0x276   : > { %1902 = vmatmul.mubr.f32.gmra.mrb[88].mxu1 %v1497_v43  ;;  %v1549_v43 = vld [vmem:[%s14945_s26 + $0x360] sm:$0xff] }
 0x277   : > { %1906 = vmatprep.mubr.f32.mxu1 %v1500_v26  ;;  %v1552_v26 = vld [vmem:[%s14945_s26 + $0x378] sm:$0xff] }
 0x27a   : > { %1907 = vmatmul.mubr.f32.gmra.mrb[90].mxu1 %v1499_v40  ;;  %v1551_v40 = vld [vmem:[%s14945_s26 + $0x370] sm:$0xff] }
 0x27b   : > { %1911 = vmatprep.mubr.f32.mxu1 %v1502_v51 }
 0x27e   : > { %1912 = vmatmul.mubr.f32.gmra.mrb[92].mxu1 %v1501_v1  ;;  %v1556_v1 = vld [vmem:[%s14945_s26 + $0x398] sm:$0xff] }
 0x27f   : > { %1916 = vmatprep.mubr.f32.mxu1 %v1504_v2 }
 0x282   : > { %1917 = vmatmul.mubr.f32.gmra.mrb[94].mxu1 %v1503_v52  ;;  %v1555_v52 = vld [vmem:[%s14945_s26 + $0x390] sm:$0xff] }
 0x283   : > { %1921 = vmatprep.mubr.f32.mxu1 %v1506_v63  ;;  %v1558_v63 = vld [vmem:[%s14945_s26 + $0x3a8] sm:$0xff] }
 0x286   : > { %1922 = vmatmul.mubr.f32.gmra.mrb[96].mxu1 %v1505_v62 }
 0x287   : > { %1926 = vmatprep.mubr.f32.mxu1 %v1508_v4 }
 0x28a   : > { %1927 = vmatmul.mubr.f32.gmra.mrb[98].mxu1 %v1507_v5  ;;  %v1557_v5 = vld [vmem:[%s14945_s26 + $0x3a0] sm:$0xff] }
 0x28b   : > { %1931 = vmatprep.mubr.f32.mxu1 %v1510_v10  ;;  %v1560_v10 = vld [vmem:[%s14945_s26 + $0x3b8] sm:$0xff] }
 0x28e   : > { %1932 = vmatmul.mubr.f32.gmra.mrb[100].mxu1 %v1509_v7 }
 0x28f   : > { %1936 = vmatprep.mubr.f32.mxu1 %v1512_v8 }
 0x292   : > { %1937 = vmatmul.mubr.f32.gmra.mrb[102].mxu1 %v1511_v15  ;;  %v1559_v15 = vld [vmem:[%s14945_s26 + $0x3b0] sm:$0xff] }
 0x293   : > { %1941 = vmatprep.mubr.f32.mxu1 %v1514_v16  ;;  %v1562_v16 = vld [vmem:[%s14945_s26 + $0x3c8] sm:$0xff] }
 0x296   : > { %1942 = vmatmul.mubr.f32.gmra.mrb[104].mxu1 %v1513_v19  ;;  %v1561_v19 = vld [vmem:[%s14945_s26 + $0x3c0] sm:$0xff] }
 0x297   : > { %1946 = vmatprep.mubr.f32.mxu1 %v1516_v21  ;;  %v1564_v21 = vld [vmem:[%s14945_s26 + $0x3d8] sm:$0xff] }
 0x29a   : > { %1947 = vmatmul.mubr.f32.gmra.mrb[106].mxu1 %v1515_v24 }
 0x29b   : > { %1951 = vmatprep.mubr.f32.mxu1 %v1518_v25 }
 0x29e   : > { %1952 = vmatmul.mubr.f32.gmra.mrb[108].mxu1 %v1517_v11  ;;  %v1563_v11 = vld [vmem:[%s14945_s26 + $0x3d0] sm:$0xff] }
 0x29f   : > { %1956 = vmatprep.mubr.f32.mxu1 %v1520_v30  ;;  %v1566_v30 = vld [vmem:[%s14945_s26 + $0x3e8] sm:$0xff] }
 0x2a2   : > { %1957 = vmatmul.mubr.f32.gmra.mrb[110].mxu1 %v1519_v29 }
 0x2a3   : > { %1961 = vmatprep.mubr.f32.mxu1 %v1522_v50  ;;  %v2404_v50 = vld [vmem:[%s14946_s23 + $0x10] sm:$0xff] }
 0x2a6   : > { %1962 = vmatmul.mubr.f32.gmra.mrb[112].mxu1 %v1521_v28  ;;  %v2405_v28 = vld [vmem:[%s14946_s23 + $0x18] sm:$0xff] }
 0x2a7   : > { %1966 = vmatprep.mubr.f32.mxu1 %v1524_v3 }
 0x2aa   : > { %1967 = vmatmul.mubr.f32.gmra.mrb[114].mxu1 %v1523_v49  ;;  %v1565_v49 = vld [vmem:[%s14945_s26 + $0x3e0] sm:$0xff] }
 0x2ab   : > { %1971 = vmatprep.mubr.f32.mxu1 %v1526_v34  ;;  %v1568_v34 = vld [vmem:[%s14945_s26 + $0x3f8] sm:$0xff] }
 0x2ae   : > { %1972 = vmatmul.mubr.f32.gmra.mrb[116].mxu1 %v1525_v6  ;;  %v11123_v6 = vpack.c.bf16 %v2405_v28, %v2404_v50  ;;  %v9138_v28 = vld [vmem:[%s14946_s23 + $0x80] sm:$0xff] }
 0x2af   : > { %1976 = vmatprep.mubr.f32.mxu1 %v1528_v9 }
 0x2b2   : > { %1977 = vmatmul.mubr.f32.gmra.mrb[118].mxu1 %v1527_v31  ;;  %v9114_v31 = vld [vmem:[%s14946_s23 + $0x40] sm:$0xff] }
 0x2b3   : > { %1981 = vmatprep.mubr.f32.mxu1 %v1530_v18  ;;  %v9115_v18 = vld [vmem:[%s14946_s23 + $0x48] sm:$0xff] }
 0x2b6   : > { %1982 = vmatmul.mubr.f32.gmra.mrb[120].mxu1 %v1529_v23 }
 0x2b7   : > { %1986 = vmatprep.mubr.f32.mxu1 %v1532_v32  ;;  %v1567_v32 = vld [vmem:[%s14945_s26 + $0x3f0] sm:$0xff] }
 0x2ba   : > { %1987 = vmatmul.mubr.f32.gmra.mrb[122].mxu1 %v1531_v45  ;;  %v1570_v45 = vld [vmem:[%s14945_s26 + $0x408] sm:$0xff] }
 0x2bb   : > { %1991 = vmatprep.mubr.f32.mxu1 %v1534_v48  ;;  %v11127_v48 = vpack.c.bf16 %v9115_v18, %v9114_v31  ;;  %v1591_v18 = vld [vmem:[%s14945_s26 + $0x4b0] sm:$0xff] }
 0x2be   : > { %1992 = vmatmul.mubr.f32.gmra.mrb[124].mxu1 %v1533_v36 }
 0x2bf   : > { %1996 = vmatprep.mubr.f32.mxu1 %v1536_v53 }
 0x2c2   : > { %1997 = vmatmul.mubr.f32.gmra.mrb[126].mxu1 %v1535_v54  ;;  %v1569_v54 = vld [vmem:[%s14945_s26 + $0x400] sm:$0xff] }
 0x2c3   : > { %2001 = vmatprep.mubr.f32.mxu1 %v1538_v41 }
 0x2c6   : > { %2002 = vmatmul.mubr.f32.gmra.mrb[128].mxu1 %v1537_v55 }
 0x2c7   : > { %2006 = vmatprep.mubr.f32.mxu1 %v1540_v56  ;;  %v1571_v56 = vld [vmem:[%s14945_s26 + $0x410] sm:$0xff] }
 0x2ca   : > { %2007 = vmatmul.mubr.f32.gmra.mrb[130].mxu1 %v1539_v33  ;;  %v1574_v33 = vld [vmem:[%s14945_s26 + $0x428] sm:$0xff] }
 0x2cb   : > { %2011 = vmatprep.mubr.f32.mxu1 %v1542_v59 }
 0x2ce   : > { %2012 = vmatmul.mubr.f32.gmra.mrb[132].mxu1 %v1541_v47 }
 0x2cf   : > { %2016 = vmatprep.mubr.f32.mxu1 %v1544_v37  ;;  %v1573_v37 = vld [vmem:[%s14945_s26 + $0x420] sm:$0xff] }
 0x2d2   : > { %2017 = vmatmul.mubr.f32.gmra.mrb[134].mxu1 %v1543_v46  ;;  %v1576_v46 = vld [vmem:[%s14945_s26 + $0x438] sm:$0xff] }
 0x2d3   : > { %2021 = vmatprep.mubr.f32.mxu1 %v1546_v61 }
 0x2d6   : > { %2022 = vmatmul.mubr.f32.gmra.mrb[136].mxu1 %v1545_v38 }
 0x2d7   : > { %2026 = vmatprep.mubr.f32.mxu1 %v1548_v60  ;;  %v1575_v60 = vld [vmem:[%s14945_s26 + $0x430] sm:$0xff] }
 0x2d9   : > { %v12979_v12 = vpop.f32.mrb[32].mxu1 }
 0x2da   : > { %v1765_v27 = vpop.f32.mrb[33].mxu1  ;;  %2027 = vmatmul.mubr.f32.gmra.mrb[138].mxu1 %v1547_v13  ;;  %v1578_v13 = vld [vmem:[%s14945_s26 + $0x448] sm:$0xff] }
 0x2db   : > { %2031 = vmatprep.mubr.f32.mxu1 %v1550_v39 }
 0x2dd   : > { %v12987_v42 = vpop.f32.mrb[34].mxu1 }
 0x2de   : > { %v1770_v44 = vpop.f32.mrb[35].mxu1  ;;  %2032 = vmatmul.mubr.f32.gmra.mrb[140].mxu1 %v1549_v43  ;;  %v1577_v43 = vld [vmem:[%s14945_s26 + $0x440] sm:$0xff] }
 0x2df   : > { %2036 = vmatprep.mubr.f32.mxu1 %v1552_v26  ;;  %v1580_v26 = vld [vmem:[%s14945_s26 + $0x458] sm:$0xff] }
 0x2e1   : > { %v12995_v51 = vpop.f32.mrb[36].mxu1 }
 0x2e2   : > { %v1775_v58 = vpop.f32.mrb[37].mxu1  ;;  %2037 = vmatmul.mubr.f32.gmra.mrb[142].mxu1 %v1551_v40 }
 0x2e3   : > { %2041 = vmatprep.mubr.f32.mxu1 %v1554_v0  ;;  %v9116_v0 = vld [vmem:[%s14946_s23 + $0x50] sm:$0xff]  ;;  %v9117_v58 = vld [vmem:[%s14946_s23 + $0x58] sm:$0xff] }
 0x2e5   : > { %v13003_v14 = vpop.f32.mrb[38].mxu1 }
 0x2e6   : > { %v1780_v2 = vpop.f32.mrb[39].mxu1  ;;  %2042 = vmatmul.mubr.f32.gmra.mrb[144].mxu1 %v1553_v57  ;;  %v1579_v57 = vld [vmem:[%s14945_s26 + $0x450] sm:$0xff] }
 0x2e7   : > { %2046 = vmatprep.mubr.f32.mxu1 %v1556_v1  ;;  %v1582_v1 = vld [vmem:[%s14945_s26 + $0x468] sm:$0xff] }
 0x2e9   : > { %v13011_v62 = vpop.f32.mrb[40].mxu1 }
 0x2ea   : > { %v1785_v4 = vpop.f32.mrb[41].mxu1  ;;  %2047 = vmatmul.mubr.f32.gmra.mrb[146].mxu1 %v1555_v52  ;;  %v11131_v52 = vpack.c.bf16 %v9117_v58, %v9116_v0  ;;  %v1604_v0 = vld [vmem:[%s14945_s26 + $0x518] sm:$0xff] }
 0x2eb   : > { %2051 = vmatprep.mubr.f32.mxu1 %v1558_v63  ;;  %v9127_v4 = vld [vmem:[%s14946_s23 + $0x68] sm:$0xff] }
 0x2ed   : > { %v13019_v7 = vpop.f32.mrb[42].mxu1 }
 0x2ee   : > { %v1790_v8 = vpop.f32.mrb[43].mxu1  ;;  %2052 = vmatmul.mubr.f32.gmra.mrb[148].mxu1 %v1557_v5  ;;  %v1581_v5 = vld [vmem:[%s14945_s26 + $0x460] sm:$0xff] }
 0x2ef   : > { %2056 = vmatprep.mubr.f32.mxu1 %v1560_v10 }
 0x2f1   : > { %v13027_v17 = vpop.f32.mrb[44].mxu1 }
 0x2f2   : > { %v1795_v22 = vpop.f32.mrb[45].mxu1  ;;  %2057 = vmatmul.mubr.f32.gmra.mrb[150].mxu1 %v1559_v15 }
 0x2f3   : > { %2061 = vmatprep.mubr.f32.mxu1 %v1562_v16  ;;  %v1586_v16 = vld [vmem:[%s14945_s26 + $0x488] sm:$0xff] }
 0x2f5   : > { %v13035_v24 = vpop.f32.mrb[46].mxu1 }
 0x2f6   : > { %v1800_v25 = vpop.f32.mrb[47].mxu1  ;;  %2062 = vmatmul.mubr.f32.gmra.mrb[152].mxu1 %v1561_v19 }
 0x2f7   : > { %2066 = vmatprep.mubr.f32.mxu1 %v1564_v21 }
 0x2f9   : > { %v1803_v29 = vpop.f32.mrb[48].mxu1 }
 0x2fa   : > { %v1805_v3 = vpop.f32.mrb[49].mxu1  ;;  %2067 = vmatmul.mubr.f32.gmra.mrb[154].mxu1 %v1563_v11  ;;  %10157 = vmatprep.mubr.msk.f32.mxu0 %vm1201_vm2, %v1803_v29  ;;  %v1587_v11 = vld [vmem:[%s14945_s26 + $0x490] sm:$0xff] }
 0x2fb   : > { %2071 = vmatprep.mubr.f32.mxu1 %v1566_v30  ;;  %v1590_v30 = vld [vmem:[%s14945_s26 + $0x4a8] sm:$0xff] }
 0x2fc   : > { %v9139_v3 = vld [vmem:[%s14946_s23 + $0x88] sm:$0xff] }
 0x2fd   : > { %v1808_v9 = vpop.f32.mrb[50].mxu1 }
 0x2fe   : > { %v1810_v23 = vpop.f32.mrb[51].mxu1  ;;  %2072 = vmatmul.mubr.f32.gmra.mrb[156].mxu1 %v1565_v49  ;;  %10158 = vmatmul.mubr.msk.f32.vlgmr.msra.gmra.mrb[0].mxu0 %vm1201_vm2, %v1808_v9  ;;  %v1589_v49 = vld [vmem:[%s14945_s26 + $0x4a0] sm:$0xff]  ;;  %v11143_v9 = vpack.c.bf16 %v9139_v3, %v9138_v28  ;;  %v9163_v3 = vld [vmem:[%s14946_s23 + $0xc8] sm:$0xff] }
 0x2ff   : > { %2076 = vmatprep.mubr.f32.mxu1 %v1568_v34  ;;  %11122 = vmatpush3.bf16.msra.mxu0 %v12871_v20  ;;  %v1572_v20 = vld [vmem:[%s14945_s26 + $0x418] sm:$0xff]  ;;  %v1594_v23 = vld [vmem:[%s14945_s26 + $0x4c8] sm:$0xff]  ;;  %v9162_v28 = vld [vmem:[%s14946_s23 + $0xc0] sm:$0xff] }
 0x300   : > { %11124 = vmatprep.subr.bf16.mxu0 %v11123_v6  ;;  %v1592_v34 = vld [vmem:[%s14945_s26 + $0x4b8] sm:$0xff] }
 0x301   : > { %v1813_v36 = vpop.f32.mrb[52].mxu1 }
 0x302   : > { %v1815_v53 = vpop.f32.mrb[53].mxu1  ;;  %2077 = vmatmul.mubr.f32.gmra.mrb[158].mxu1 %v1567_v32  ;;  %10160 = vmatprep.mubr.msk.f32.mxu0 %vm1201_vm2, %v1813_v36  ;;  %v1596_v36 = vld [vmem:[%s14945_s26 + $0x4d8] sm:$0xff] }
 0x303   : > { %2081 = vmatprep.mubr.f32.mxu1 %v1570_v45  ;;  %11126 = vmatpush3.bf16.msra.mxu0 %v11123_v6 }
 0x304   : > { %11128 = vmatprep.subr.bf16.mxu0 %v11127_v48 }
 0x305   : > { %v1818_v41 = vpop.f32.mrb[54].mxu1 }
 0x306   : > { %v1820_v55 = vpop.f32.mrb[55].mxu1  ;;  %2082 = vmatmul.mubr.f32.gmra.mrb[160].mxu1 %v1569_v54  ;;  %10161 = vmatmul.mubr.msk.f32.gmra.mrb[2].mxu0 %vm1201_vm2, %v1818_v41  ;;  %v1598_v41 = vld [vmem:[%s14945_s26 + $0x4e8] sm:$0xff] }
 0x307   : > { %2086 = vmatprep.mubr.f32.mxu1 %v1572_v20  ;;  %v1595_v20 = vld [vmem:[%s14945_s26 + $0x4d0] sm:$0xff] }
 0x309   : > { %v1823_v59 = vpop.f32.mrb[56].mxu1 }
 0x30a   : > { %v1825_v47 = vpop.f32.mrb[57].mxu1  ;;  %2087 = vmatmul.mubr.f32.gmra.mrb[162].mxu1 %v1571_v56  ;;  %10163 = vmatprep.mubr.msk.f32.mxu0 %vm1201_vm2, %v1823_v59  ;;  %v9140_v56 = vld [vmem:[%s14946_s23 + $0x90] sm:$0xff] }
 0x30b   : > { %2091 = vmatprep.mubr.f32.mxu1 %v1574_v33  ;;  %v9141_v33 = vld [vmem:[%s14946_s23 + $0x98] sm:$0xff]  ;;  %v1597_v47 = vld [vmem:[%s14945_s26 + $0x4e0] sm:$0xff] }
 0x30d   : > { %v1828_v61 = vpop.f32.mrb[58].mxu1 }
 0x30e   : > { %v1830_v38 = vpop.f32.mrb[59].mxu1  ;;  %2092 = vmatmul.mubr.f32.gmra.mrb[164].mxu1 %v1573_v37  ;;  %10164 = vmatmul.mubr.msk.f32.gmra.mrb[4].mxu0 %vm1201_vm2, %v1828_v61  ;;  %v1600_v37 = vld [vmem:[%s14945_s26 + $0x4f8] sm:$0xff] }
 0x30f   : > { %2096 = vmatprep.mubr.f32.mxu1 %v1576_v46  ;;  %v11147_v46 = vpack.c.bf16 %v9141_v33, %v9140_v56  ;;  %v9150_v38 = vld [vmem:[%s14946_s23 + $0xa0] sm:$0xff] }
 0x311   : > { %v1833_v39 = vpop.f32.mrb[60].mxu1 }
 0x312   : > { %v1835_v27 = vpop.f32.mrb[61].mxu1  ;;  %2097 = vmatmul.mubr.f32.gmra.mrb[166].mxu1 %v1575_v60  ;;  %10166 = vmatprep.mubr.msk.f32.mxu0 %vm1201_vm2, %v1833_v39  ;;  %v9151_v60 = vld [vmem:[%s14946_s23 + $0xa8] sm:$0xff]  ;;  %v1599_v39 = vld [vmem:[%s14945_s26 + $0x4f0] sm:$0xff] }
 0x313   : > { %2101 = vmatprep.mubr.f32.mxu1 %v1578_v13  ;;  %v1602_v27 = vld [vmem:[%s14945_s26 + $0x508] sm:$0xff] }
 0x315   : > { %v1838_v44 = vpop.f32.mrb[62].mxu1 }
 0x316   : > { %v1840_v40 = vpop.f32.mrb[63].mxu1  ;;  %2102 = vmatmul.mubr.f32.gmra.mrb[168].mxu1 %v1577_v43  ;;  %10167 = vmatmul.mubr.msk.f32.gmra.mrb[6].mxu0 %vm1201_vm2, %v1838_v44  ;;  %v11151_v43 = vpack.c.bf16 %v9151_v60, %v9150_v38  ;;  %v1628_v38 = vld [vmem:[%s14945_s26 + $0x5d8] sm:$0xff] }
 0x317   : > { %10177 = vmatprep.mubr.msk.f32.mxu0 %vm1201_vm2, %v12979_v12  ;;  %2106 = vmatprep.mubr.f32.mxu1 %v1580_v26  ;;  %v9126_v12 = vld [vmem:[%s14946_s23 + $0x60] sm:$0xff] }
 0x318   : > { %v11135_v8 = vpack.c.bf16 %v9127_v4, %v9126_v12  ;;  %v1601_v40 = vld [vmem:[%s14945_s26 + $0x500] sm:$0xff]  ;;  %v1608_v4 = vld [vmem:[%s14945_s26 + $0x538] sm:$0xff] }
 0x319   : > { %v1843_v2 = vpop.f32.mrb[64].mxu1  ;;  %v1605_v12 = vld [vmem:[%s14945_s26 + $0x520] sm:$0xff] }
 0x31a   : > { %v1845_v63 = vpop.f32.mrb[65].mxu1  ;;  %2107 = vmatmul.mubr.f32.gmra.mrb[170].mxu1 %v1579_v57  ;;  %10178 = vmatmul.mubr.msk.f32.vlgmr.msra.gmra.mrb[0].mxu0 %vm1201_vm2, %v12987_v42  ;;  %v1584_v42 = vld [vmem:[%s14945_s26 + $0x478] sm:$0xff] }
 0x31b   : > { %10180 = vmatprep.mubr.msk.f32.mxu0 %vm1201_vm2, %v12995_v51  ;;  %2111 = vmatprep.mubr.f32.mxu1 %v1582_v1  ;;  %v1583_v51 = vld [vmem:[%s14945_s26 + $0x470] sm:$0xff] }
 0x31c   : > { %11130 = vmatpush3.bf16.msra.mxu0 %v11127_v48  ;;  %v1593_v48 = vld [vmem:[%s14945_s26 + $0x4c0] sm:$0xff]  ;;  %v1603_v1 = vld [vmem:[%s14945_s26 + $0x510] sm:$0xff] }
 0x31d   : > { %v1848_v10 = vpop.f32.mrb[66].mxu1  ;;  %11132 = vmatprep.subr.bf16.mxu0 %v11131_v52 }
 0x31e   : > { %v1850_v15 = vpop.f32.mrb[67].mxu1  ;;  %2112 = vmatmul.mubr.f32.gmra.mrb[172].mxu1 %v1581_v5  ;;  %10181 = vmatmul.mubr.msk.f32.gmra.mrb[2].mxu0 %vm1201_vm2, %v13003_v14  ;;  %v1585_v14 = vld [vmem:[%s14945_s26 + $0x480] sm:$0xff] }
 0x31f   : > { %10183 = vmatprep.mubr.msk.f32.mxu0 %vm1201_vm2, %v13011_v62  ;;  %2116 = vmatprep.mubr.f32.mxu1 %v1584_v42  ;;  %v1588_v62 = vld [vmem:[%s14945_s26 + $0x498] sm:$0xff] }
 0x320   : > { %11134 = vmatpush3.bf16.msra.mxu0 %v11131_v52 }
 0x321   : > { %v1853_v22 = vpop.f32.mrb[68].mxu1  ;;  %11136 = vmatprep.subr.bf16.mxu0 %v11135_v8 }
 0x322   : > { %v1855_v19 = vpop.f32.mrb[69].mxu1  ;;  %2117 = vmatmul.mubr.f32.gmra.mrb[174].mxu1 %v1583_v51  ;;  %10184 = vmatmul.mubr.msk.f32.gmra.mrb[4].mxu0 %vm1201_vm2, %v13019_v7  ;;  %v9128_v7 = vld [vmem:[%s14946_s23 + $0x70] sm:$0xff] }
 0x323   : > { %10186 = vmatprep.mubr.msk.f32.mxu0 %vm1201_vm2, %v13027_v17  ;;  %2121 = vmatprep.mubr.f32.mxu1 %v1586_v16  ;;  %v9129_v17 = vld [vmem:[%s14946_s23 + $0x78] sm:$0xff]  ;;  %v1609_v16 = vld [vmem:[%s14945_s26 + $0x540] sm:$0xff] }
 0x324   : > { %v11139_v29 = vpack.c.bf16 %v9129_v17, %v9128_v7  ;;  %v9152_v7 = vld [vmem:[%s14946_s23 + $0xb0] sm:$0xff]  ;;  %v9153_v17 = vld [vmem:[%s14946_s23 + $0xb8] sm:$0xff] }
 0x325   : > { %v1858_v21 = vpop.f32.mrb[70].mxu1 }
 0x326   : > { %v1860_v25 = vpop.f32.mrb[71].mxu1  ;;  %2122 = vmatmul.mubr.f32.gmra.mrb[176].mxu1 %v1585_v14  ;;  %10187 = vmatmul.mubr.msk.f32.gmra.mrb[6].mxu0 %vm1201_vm2, %v13035_v24 }
 0x327   : > { %10197 = vmatprep.mubr.msk.f32.mxu0 %vm1201_vm2, %v1843_v2  ;;  %2126 = vmatprep.mubr.f32.mxu1 %v1588_v62  ;;  %v1606_v2 = vld [vmem:[%s14945_s26 + $0x528] sm:$0xff]  ;;  %v1611_v62 = vld [vmem:[%s14945_s26 + $0x550] sm:$0xff] }
 0x329   : > { %v1863_v24 = vpop.f32.mrb[72].mxu1 }
 0x32a   : > { %v1865_v50 = vpop.f32.mrb[73].mxu1  ;;  %2127 = vmatmul.mubr.f32.gmra.mrb[178].mxu1 %v1587_v11  ;;  %10198 = vmatmul.mubr.msk.f32.vlgmr.msra.gmra.mrb[0].mxu0 %vm1201_vm2, %v1848_v10  ;;  %v1607_v10 = vld [vmem:[%s14945_s26 + $0x530] sm:$0xff] }
 0x32b   : > { %10200 = vmatprep.mubr.msk.f32.mxu0 %vm1201_vm2, %v1853_v22  ;;  %2131 = vmatprep.mubr.f32.mxu1 %v1590_v30  ;;  %v1612_v22 = vld [vmem:[%s14945_s26 + $0x558] sm:$0xff]  ;;  %v1613_v30 = vld [vmem:[%s14945_s26 + $0x560] sm:$0xff] }
 0x32c   : > { %11138 = vmatpush3.bf16.msra.mxu0 %v11135_v8  ;;  %v1610_v8 = vld [vmem:[%s14945_s26 + $0x548] sm:$0xff] }
 0x32d   : > { %v1868_v6 = vpop.f32.mrb[74].mxu1  ;;  %11140 = vmatprep.subr.bf16.mxu0 %v11139_v29 }
 0x32e   : > { %v1870_v31 = vpop.f32.mrb[75].mxu1  ;;  %2132 = vmatmul.mubr.f32.gmra.mrb[180].mxu1 %v1589_v49  ;;  %10201 = vmatmul.mubr.msk.f32.gmra.mrb[2].mxu0 %vm1201_vm2, %v1858_v21  ;;  %v1614_v21 = vld [vmem:[%s14945_s26 + $0x568] sm:$0xff] }
 0x32f   : > { %10203 = vmatprep.mubr.msk.f32.mxu0 %vm1201_vm2, %v1863_v24  ;;  %2136 = vmatprep.mubr.f32.mxu1 %v1592_v34  ;;  %v1616_v24 = vld [vmem:[%s14945_s26 + $0x578] sm:$0xff]  ;;  %v1615_v34 = vld [vmem:[%s14945_s26 + $0x570] sm:$0xff] }
 0x330   : > { %11142 = vmatpush3.bf16.msra.mxu0 %v11139_v29  ;;  %v11155_v29 = vpack.c.bf16 %v9153_v17, %v9152_v7 }
 0x331   : > { %v1873_v32 = vpop.f32.mrb[76].mxu1  ;;  %11144 = vmatprep.subr.bf16.mxu0 %v11143_v9 }
 0x332   : > { %v1875_v45 = vpop.f32.mrb[77].mxu1  ;;  %2137 = vmatmul.mubr.f32.gmra.mrb[182].mxu1 %v1591_v18  ;;  %10204 = vmatmul.mubr.msk.f32.gmra.mrb[4].mxu0 %vm1201_vm2, %v1868_v6  ;;  %v1618_v6 = vld [vmem:[%s14945_s26 + $0x588] sm:$0xff] }
 0x333   : > { %10206 = vmatprep.mubr.msk.f32.mxu0 %vm1201_vm2, %v1873_v32  ;;  %2141 = vmatprep.mubr.f32.mxu1 %v1594_v23  ;;  %v1617_v23 = vld [vmem:[%s14945_s26 + $0x580] sm:$0xff]  ;;  %v1620_v32 = vld [vmem:[%s14945_s26 + $0x598] sm:$0xff] }
 0x335   : > { %v1878_v53 = vpop.f32.mrb[78].mxu1 }
 0x336   : > { %v1880_v54 = vpop.f32.mrb[79].mxu1  ;;  %2142 = vmatmul.mubr.f32.gmra.mrb[184].mxu1 %v1593_v48  ;;  %10207 = vmatmul.mubr.msk.f32.gmra.mrb[6].mxu0 %vm1201_vm2, %v1878_v53  ;;  %v1622_v53 = vld [vmem:[%s14945_s26 + $0x5a8] sm:$0xff] }
 0x337   : > { %2146 = vmatprep.mubr.f32.mxu1 %v1596_v36  ;;  %v1619_v36 = vld [vmem:[%s14945_s26 + $0x590] sm:$0xff] }
 0x339   : > { %v1883_v55 = vpop.f32.mrb[80].mxu1 }
 0x33a   : > { %v1885_v59 = vpop.f32.mrb[81].mxu1  ;;  %2147 = vmatmul.mubr.f32.gmra.mrb[186].mxu1 %v1595_v20  ;;  %10217 = vmatprep.mubr.msk.f32.mxu0 %vm1201_vm2, %v1883_v55  ;;  %v1624_v55 = vld [vmem:[%s14945_s26 + $0x5b8] sm:$0xff] }
 0x33b   : > { %2151 = vmatprep.mubr.f32.mxu1 %v1598_v41  ;;  %v1621_v41 = vld [vmem:[%s14945_s26 + $0x5a0] sm:$0xff]  ;;  %v1623_v59 = vld [vmem:[%s14945_s26 + $0x5b0] sm:$0xff] }
 0x33d   : > { %v1888_v61 = vpop.f32.mrb[82].mxu1 }
 0x33e   : > { %v1890_v13 = vpop.f32.mrb[83].mxu1  ;;  %2152 = vmatmul.mubr.f32.gmra.mrb[188].mxu1 %v1597_v47  ;;  %10218 = vmatmul.mubr.msk.f32.vlgmr.msra.gmra.mrb[0].mxu0 %vm1201_vm2, %v1888_v61  ;;  %v1626_v47 = vld [vmem:[%s14945_s26 + $0x5c8] sm:$0xff]  ;;  %v1625_v61 = vld [vmem:[%s14945_s26 + $0x5c0] sm:$0xff] }
 0x33f   : > { %2156 = vmatprep.mubr.f32.mxu1 %v1600_v37  ;;  %11146 = vmatpush3.bf16.msra.mxu0 %v11143_v9  ;;  %v11159_v9 = vpack.c.bf16 %v9163_v3, %v9162_v28  ;;  %v1644_v28 = vld [vmem:[%s14945_s26 + $0x658] sm:$0xff] }
 0x340   : > { %11148 = vmatprep.subr.bf16.mxu0 %v11147_v46 }
 0x341   : > { %v1893_v26 = vpop.f32.mrb[84].mxu1 }
 0x342   : > { %v1895_v44 = vpop.f32.mrb[85].mxu1  ;;  %2157 = vmatmul.mubr.f32.gmra.mrb[190].mxu1 %v1599_v39  ;;  %10220 = vmatprep.mubr.msk.f32.mxu0 %vm1201_vm2, %v1893_v26  ;;  %v1627_v39 = vld [vmem:[%s14945_s26 + $0x5d0] sm:$0xff] }
 0x343   : > { %2161 = vmatprep.mubr.f32.mxu1 %v1602_v27  ;;  %11150 = vmatpush3.bf16.msra.mxu0 %v11147_v46  ;;  %v1630_v27 = vld [vmem:[%s14945_s26 + $0x5e8] sm:$0xff]  ;;  %v9164_v26 = vld [vmem:[%s14946_s23 + $0xd0] sm:$0xff]  ;;  %v9165_v44 = vld [vmem:[%s14946_s23 + $0xd8] sm:$0xff] }
 0x344   : > { %11152 = vmatprep.subr.bf16.mxu0 %v11151_v43 }
 0x345   : > { %v1898_v58 = vpop.f32.mrb[86].mxu1 }
 0x346   : > { %v1900_v57 = vpop.f32.mrb[87].mxu1  ;;  %2162 = vmatmul.mubr.f32.gmra.mrb[192].mxu1 %v1601_v40  ;;  %10221 = vmatmul.mubr.msk.f32.gmra.mrb[2].mxu0 %vm1201_vm2, %v1898_v58  ;;  %v1632_v58 = vld [vmem:[%s14945_s26 + $0x5f8] sm:$0xff] }
 0x347   : > { %2166 = vmatprep.mubr.f32.mxu1 %v1604_v0  ;;  %v1629_v0 = vld [vmem:[%s14945_s26 + $0x5e0] sm:$0xff]  ;;  %v11163_v57 = vpack.c.bf16 %v9165_v44, %v9164_v26 }
 0x349   : > { %v1903_v52 = vpop.f32.mrb[88].mxu1 }
 0x34a   : > { %v1905_v63 = vpop.f32.mrb[89].mxu1  ;;  %2167 = vmatmul.mubr.f32.gmra.mrb[194].mxu1 %v1603_v1  ;;  %10223 = vmatprep.mubr.msk.f32.mxu0 %vm1201_vm2, %v1903_v52  ;;  %v9175_v52 = vld [vmem:[%s14946_s23 + $0xe8] sm:$0xff] }
 0x34b   : > { %2171 = vmatprep.mubr.f32.mxu1 %v1606_v2  ;;  %v9174_v2 = vld [vmem:[%s14946_s23 + $0xe0] sm:$0xff] }
 0x34d   : > { %v1908_v5 = vpop.f32.mrb[90].mxu1 }
 0x34e   : > { %v1910_v42 = vpop.f32.mrb[91].mxu1  ;;  %2172 = vmatmul.mubr.f32.gmra.mrb[196].mxu1 %v1605_v12  ;;  %10224 = vmatmul.mubr.msk.f32.gmra.mrb[4].mxu0 %vm1201_vm2, %v1908_v5  ;;  %v1631_v12 = vld [vmem:[%s14945_s26 + $0x5f0] sm:$0xff]  ;;  %v11167_v5 = vpack.c.bf16 %v9175_v52, %v9174_v2  ;;  %v1660_v2 = vld [vmem:[%s14945_s26 + $0x6d8] sm:$0xff] }
 0x34f   : > { %2176 = vmatprep.mubr.f32.mxu1 %v1608_v4  ;;  %v1634_v4 = vld [vmem:[%s14945_s26 + $0x608] sm:$0xff] }
 0x351   : > { %v1913_v15 = vpop.f32.mrb[92].mxu1 }
 0x352   : > { %v1915_v51 = vpop.f32.mrb[93].mxu1  ;;  %2177 = vmatmul.mubr.f32.gmra.mrb[198].mxu1 %v1607_v10  ;;  %10226 = vmatprep.mubr.msk.f32.mxu0 %vm1201_vm2, %v1913_v15  ;;  %v1636_v15 = vld [vmem:[%s14945_s26 + $0x618] sm:$0xff] }
 0x353   : > { %2181 = vmatprep.mubr.f32.mxu1 %v1610_v8  ;;  %v1633_v8 = vld [vmem:[%s14945_s26 + $0x600] sm:$0xff] }
 0x355   : > { %v1918_v19 = vpop.f32.mrb[94].mxu1 }
 0x356   : > { %v1920_v14 = vpop.f32.mrb[95].mxu1  ;;  %2182 = vmatmul.mubr.f32.gmra.mrb[200].mxu1 %v1609_v16  ;;  %10227 = vmatmul.mubr.msk.f32.gmra.mrb[6].mxu0 %vm1201_vm2, %v1918_v19  ;;  %v1638_v19 = vld [vmem:[%s14945_s26 + $0x628] sm:$0xff] }
 0x357   : > { %2186 = vmatprep.mubr.f32.mxu1 %v1612_v22  ;;  %v1635_v22 = vld [vmem:[%s14945_s26 + $0x610] sm:$0xff] }
 0x359   : > { %v1923_v25 = vpop.f32.mrb[96].mxu1 }
 0x35a   : > { %v1925_v11 = vpop.f32.mrb[97].mxu1  ;;  %2187 = vmatmul.mubr.f32.gmra.mrb[202].mxu1 %v1611_v62  ;;  %10237 = vmatprep.mubr.msk.f32.mxu0 %vm1201_vm2, %v1923_v25  ;;  %v1640_v25 = vld [vmem:[%s14945_s26 + $0x638] sm:$0xff] }
 0x35b   : > { %2191 = vmatprep.mubr.f32.mxu1 %v1614_v21  ;;  %v1637_v21 = vld [vmem:[%s14945_s26 + $0x620] sm:$0xff]  ;;  %v1639_v11 = vld [vmem:[%s14945_s26 + $0x630] sm:$0xff] }
 0x35d   : > { %v1928_v50 = vpop.f32.mrb[98].mxu1 }
 0x35e   : > { %v1930_v49 = vpop.f32.mrb[99].mxu1  ;;  %2192 = vmatmul.mubr.f32.gmra.mrb[204].mxu1 %v1613_v30  ;;  %10238 = vmatmul.mubr.msk.f32.vlgmr.msra.gmra.mrb[0].mxu0 %vm1201_vm2, %v1928_v50  ;;  %v1642_v30 = vld [vmem:[%s14945_s26 + $0x648] sm:$0xff]  ;;  %v1641_v50 = vld [vmem:[%s14945_s26 + $0x640] sm:$0xff] }
 0x35f   : > { %2196 = vmatprep.mubr.f32.mxu1 %v1616_v24  ;;  %11154 = vmatpush3.bf16.msra.mxu0 %v11151_v43 }
 0x360   : > { %11156 = vmatprep.subr.bf16.mxu0 %v11155_v29 }
 0x361   : > { %v1933_v31 = vpop.f32.mrb[100].mxu1 }
 0x362   : > { %v1935_v18 = vpop.f32.mrb[101].mxu1  ;;  %2197 = vmatmul.mubr.f32.gmra.mrb[206].mxu1 %v1615_v34  ;;  %10240 = vmatprep.mubr.msk.f32.mxu0 %vm1201_vm2, %v1933_v31  ;;  %v1643_v34 = vld [vmem:[%s14945_s26 + $0x650] sm:$0xff] }
 0x363   : > { %2201 = vmatprep.mubr.f32.mxu1 %v1618_v6  ;;  %11158 = vmatpush3.bf16.msra.mxu0 %v11155_v29  ;;  %v1646_v6 = vld [vmem:[%s14945_s26 + $0x668] sm:$0xff]  ;;  %v9176_v31 = vld [vmem:[%s14946_s23 + $0xf0] sm:$0xff]  ;;  %v9177_v18 = vld [vmem:[%s14946_s23 + $0xf8] sm:$0xff] }
 0x364   : > { %11160 = vmatprep.subr.bf16.mxu0 %v11159_v9 }
 0x365   : > { %v1938_v45 = vpop.f32.mrb[102].mxu1 }
 0x366   : > { %v1940_v48 = vpop.f32.mrb[103].mxu1  ;;  %2202 = vmatmul.mubr.f32.gmra.mrb[208].mxu1 %v1617_v23  ;;  %10241 = vmatmul.mubr.msk.f32.gmra.mrb[2].mxu0 %vm1201_vm2, %v1938_v45  ;;  %v1648_v45 = vld [vmem:[%s14945_s26 + $0x678] sm:$0xff] }
 0x367   : > { %2206 = vmatprep.mubr.f32.mxu1 %v1620_v32  ;;  %v1645_v32 = vld [vmem:[%s14945_s26 + $0x660] sm:$0xff]  ;;  %v11171_v48 = vpack.c.bf16 %v9177_v18, %v9176_v31 }
 0x369   : > { %v1943_v54 = vpop.f32.mrb[104].mxu1 }
 0x36a   : > { %v1945_v20 = vpop.f32.mrb[105].mxu1  ;;  %2207 = vmatmul.mubr.f32.gmra.mrb[210].mxu1 %v1619_v36  ;;  %10243 = vmatprep.mubr.msk.f32.mxu0 %vm1201_vm2, %v1943_v54  ;;  %v9187_v54 = vld [vmem:[%s14946_s23 + $0x108] sm:$0xff] }
 0x36b   : > { %2211 = vmatprep.mubr.f32.mxu1 %v1622_v53  ;;  %v9186_v53 = vld [vmem:[%s14946_s23 + $0x100] sm:$0xff] }
 0x36d   : > { %v1948_v56 = vpop.f32.mrb[106].mxu1 }
 0x36e   : > { %v1950_v33 = vpop.f32.mrb[107].mxu1  ;;  %2212 = vmatmul.mubr.f32.gmra.mrb[212].mxu1 %v1621_v41  ;;  %10244 = vmatmul.mubr.msk.f32.gmra.mrb[4].mxu0 %vm1201_vm2, %v1948_v56  ;;  %v1647_v41 = vld [vmem:[%s14945_s26 + $0x670] sm:$0xff]  ;;  %v11175_v56 = vpack.c.bf16 %v9187_v54, %v9186_v53  ;;  %v1676_v53 = vld [vmem:[%s14945_s26 + $0x758] sm:$0xff] }
 0x36f   : > { %2216 = vmatprep.mubr.f32.mxu1 %v1624_v55  ;;  %v1650_v55 = vld [vmem:[%s14945_s26 + $0x688] sm:$0xff] }
 0x371   : > { %v1953_v37 = vpop.f32.mrb[108].mxu1 }
 0x372   : > { %v1955_v46 = vpop.f32.mrb[109].mxu1  ;;  %2217 = vmatmul.mubr.f32.gmra.mrb[214].mxu1 %v1623_v59  ;;  %10246 = vmatprep.mubr.msk.f32.mxu0 %vm1201_vm2, %v1953_v37  ;;  %v1652_v37 = vld [vmem:[%s14945_s26 + $0x698] sm:$0xff] }
 0x373   : > { %2221 = vmatprep.mubr.f32.mxu1 %v1626_v47  ;;  %v1649_v47 = vld [vmem:[%s14945_s26 + $0x680] sm:$0xff] }
 0x375   : > { %v1958_v60 = vpop.f32.mrb[110].mxu1 }
 0x376   : > { %v1960_v13 = vpop.f32.mrb[111].mxu1  ;;  %2222 = vmatmul.mubr.f32.gmra.mrb[216].mxu1 %v1625_v61  ;;  %10247 = vmatmul.mubr.msk.f32.gmra.mrb[6].mxu0 %vm1201_vm2, %v1958_v60  ;;  %v1654_v60 = vld [vmem:[%s14945_s26 + $0x6a8] sm:$0xff] }
 0x377   : > { %2226 = vmatprep.mubr.f32.mxu1 %v1628_v38  ;;  %v1651_v38 = vld [vmem:[%s14945_s26 + $0x690] sm:$0xff] }
 0x379   : > { %v1963_v43 = vpop.f32.mrb[112].mxu1 }
 0x37a   : > { %v1965_v40 = vpop.f32.mrb[113].mxu1  ;;  %2227 = vmatmul.mubr.f32.gmra.mrb[218].mxu1 %v1627_v39  ;;  %10257 = vmatprep.mubr.msk.f32.mxu0 %vm1201_vm2, %v1963_v43  ;;  %v1656_v43 = vld [vmem:[%s14945_s26 + $0x6b8] sm:$0xff] }
 0x37b   : > { %2231 = vmatprep.mubr.f32.mxu1 %v1630_v27  ;;  %v1653_v27 = vld [vmem:[%s14945_s26 + $0x6a0] sm:$0xff]  ;;  %v1655_v40 = vld [vmem:[%s14945_s26 + $0x6b0] sm:$0xff] }
 0x37d   : > { %v1968_v1 = vpop.f32.mrb[114].mxu1 }
 0x37e   : > { %v1970_v63 = vpop.f32.mrb[115].mxu1  ;;  %2232 = vmatmul.mubr.f32.gmra.mrb[220].mxu1 %v1629_v0  ;;  %10258 = vmatmul.mubr.msk.f32.vlgmr.msra.gmra.mrb[0].mxu0 %vm1201_vm2, %v1968_v1  ;;  %v1658_v0 = vld [vmem:[%s14945_s26 + $0x6c8] sm:$0xff]  ;;  %v1657_v1 = vld [vmem:[%s14945_s26 + $0x6c0] sm:$0xff] }
 0x37f   : > { %2236 = vmatprep.mubr.f32.mxu1 %v1632_v58  ;;  %11162 = vmatpush3.bf16.msra.mxu0 %v11159_v9 }
 0x380   : > { %11164 = vmatprep.subr.bf16.mxu0 %v11163_v57 }
 0x381   : > { %v1973_v42 = vpop.f32.mrb[116].mxu1 }
 0x382   : > { %v1975_v10 = vpop.f32.mrb[117].mxu1  ;;  %2237 = vmatmul.mubr.f32.gmra.mrb[222].mxu1 %v1631_v12  ;;  %10260 = vmatprep.mubr.msk.f32.mxu0 %vm1201_vm2, %v1973_v42  ;;  %v1659_v12 = vld [vmem:[%s14945_s26 + $0x6d0] sm:$0xff] }
 0x383   : > { %2241 = vmatprep.mubr.f32.mxu1 %v1634_v4  ;;  %11166 = vmatpush3.bf16.msra.mxu0 %v11163_v57  ;;  %v1662_v4 = vld [vmem:[%s14945_s26 + $0x6e8] sm:$0xff]  ;;  %v9188_v42 = vld [vmem:[%s14946_s23 + $0x110] sm:$0xff]  ;;  %v9189_v10 = vld [vmem:[%s14946_s23 + $0x118] sm:$0xff] }
 0x384   : > { %11168 = vmatprep.subr.bf16.mxu0 %v11167_v5 }
 0x385   : > { %v1978_v51 = vpop.f32.mrb[118].mxu1 }
 0x386   : > { %v1980_v16 = vpop.f32.mrb[119].mxu1  ;;  %2242 = vmatmul.mubr.f32.gmra.mrb[224].mxu1 %v1633_v8  ;;  %10261 = vmatmul.mubr.msk.f32.gmra.mrb[2].mxu0 %vm1201_vm2, %v1978_v51  ;;  %v1664_v51 = vld [vmem:[%s14945_s26 + $0x6f8] sm:$0xff] }
 0x387   : > { %2246 = vmatprep.mubr.f32.mxu1 %v1636_v15  ;;  %v1661_v15 = vld [vmem:[%s14945_s26 + $0x6e0] sm:$0xff]  ;;  %v11179_v16 = vpack.c.bf16 %v9189_v10, %v9188_v42 }
 0x389   : > { %v1983_v14 = vpop.f32.mrb[120].mxu1 }
 0x38a   : > { %v1985_v62 = vpop.f32.mrb[121].mxu1  ;;  %2247 = vmatmul.mubr.f32.gmra.mrb[226].mxu1 %v1635_v22  ;;  %10263 = vmatprep.mubr.msk.f32.mxu0 %vm1201_vm2, %v1983_v14  ;;  %v9199_v14 = vld [vmem:[%s14946_s23 + $0x128] sm:$0xff] }
 0x38b   : > { %2251 = vmatprep.mubr.f32.mxu1 %v1638_v19  ;;  %v9198_v19 = vld [vmem:[%s14946_s23 + $0x120] sm:$0xff] }
 0x38d   : > { %v1988_v7 = vpop.f32.mrb[122].mxu1 }
 0x38e   : > { %v1990_v17 = vpop.f32.mrb[123].mxu1  ;;  %2252 = vmatmul.mubr.f32.gmra.mrb[228].mxu1 %v1637_v21  ;;  %10264 = vmatmul.mubr.msk.f32.gmra.mrb[4].mxu0 %vm1201_vm2, %v1988_v7  ;;  %v1663_v21 = vld [vmem:[%s14945_s26 + $0x6f0] sm:$0xff]  ;;  %v11183_v7 = vpack.c.bf16 %v9199_v14, %v9198_v19  ;;  %v1692_v19 = vld [vmem:[%s14945_s26 + $0x7d8] sm:$0xff] }
 0x38f   : > { %2256 = vmatprep.mubr.f32.mxu1 %v1640_v25  ;;  %v1666_v25 = vld [vmem:[%s14945_s26 + $0x708] sm:$0xff] }
 0x391   : > { %v1993_v24 = vpop.f32.mrb[124].mxu1 }
 0x392   : > { %v1995_v29 = vpop.f32.mrb[125].mxu1  ;;  %2257 = vmatmul.mubr.f32.gmra.mrb[230].mxu1 %v1639_v11  ;;  %10266 = vmatprep.mubr.msk.f32.mxu0 %vm1201_vm2, %v1993_v24  ;;  %v1668_v24 = vld [vmem:[%s14945_s26 + $0x718] sm:$0xff] }
 0x393   : > { %2261 = vmatprep.mubr.f32.mxu1 %v1642_v30  ;;  %v1665_v30 = vld [vmem:[%s14945_s26 + $0x700] sm:$0xff] }
 0x395   : > { %v1998_v3 = vpop.f32.mrb[126].mxu1 }
 0x396   : > { %v2000_v49 = vpop.f32.mrb[127].mxu1  ;;  %2262 = vmatmul.mubr.f32.gmra.mrb[232].mxu1 %v1641_v50  ;;  %10267 = vmatmul.mubr.msk.f32.gmra.mrb[6].mxu0 %vm1201_vm2, %v1998_v3  ;;  %v1670_v3 = vld [vmem:[%s14945_s26 + $0x728] sm:$0xff] }
 0x397   : > { %2266 = vmatprep.mubr.f32.mxu1 %v1644_v28  ;;  %v1667_v28 = vld [vmem:[%s14945_s26 + $0x710] sm:$0xff] }
 0x399   : > { %v2003_v9 = vpop.f32.mrb[128].mxu1 }
 0x39a   : > { %v2005_v23 = vpop.f32.mrb[129].mxu1  ;;  %2267 = vmatmul.mubr.f32.gmra.mrb[234].mxu1 %v1643_v34  ;;  %10277 = vmatprep.mubr.msk.f32.mxu0 %vm1201_vm2, %v2003_v9  ;;  %v1672_v9 = vld [vmem:[%s14945_s26 + $0x738] sm:$0xff] }
 0x39b   : > { %2271 = vmatprep.mubr.f32.mxu1 %v1646_v6  ;;  %v1669_v6 = vld [vmem:[%s14945_s26 + $0x720] sm:$0xff]  ;;  %v1671_v23 = vld [vmem:[%s14945_s26 + $0x730] sm:$0xff] }
 0x39d   : > { %v2008_v36 = vpop.f32.mrb[130].mxu1 }
 0x39e   : > { %v2010_v20 = vpop.f32.mrb[131].mxu1  ;;  %2272 = vmatmul.mubr.f32.gmra.mrb[236].mxu1 %v1645_v32  ;;  %10278 = vmatmul.mubr.msk.f32.vlgmr.msra.gmra.mrb[0].mxu0 %vm1201_vm2, %v2008_v36  ;;  %v1674_v32 = vld [vmem:[%s14945_s26 + $0x748] sm:$0xff]  ;;  %v1673_v36 = vld [vmem:[%s14945_s26 + $0x740] sm:$0xff] }
 0x39f   : > { %2276 = vmatprep.mubr.f32.mxu1 %v1648_v45  ;;  %11170 = vmatpush3.bf16.msra.mxu0 %v11167_v5 }
 0x3a0   : > { %11172 = vmatprep.subr.bf16.mxu0 %v11171_v48 }
 0x3a1   : > { %v2013_v33 = vpop.f32.mrb[132].mxu1 }
 0x3a2   : > { %v2015_v59 = vpop.f32.mrb[133].mxu1  ;;  %2277 = vmatmul.mubr.f32.gmra.mrb[238].mxu1 %v1647_v41  ;;  %10280 = vmatprep.mubr.msk.f32.mxu0 %vm1201_vm2, %v2013_v33  ;;  %v1675_v41 = vld [vmem:[%s14945_s26 + $0x750] sm:$0xff] }
 0x3a3   : > { %2281 = vmatprep.mubr.f32.mxu1 %v1650_v55  ;;  %11174 = vmatpush3.bf16.msra.mxu0 %v11171_v48  ;;  %v1678_v55 = vld [vmem:[%s14945_s26 + $0x768] sm:$0xff]  ;;  %v9200_v33 = vld [vmem:[%s14946_s23 + $0x130] sm:$0xff]  ;;  %v9201_v59 = vld [vmem:[%s14946_s23 + $0x138] sm:$0xff] }
 0x3a4   : > { %11176 = vmatprep.subr.bf16.mxu0 %v11175_v56 }
 0x3a5   : > { %v2018_v46 = vpop.f32.mrb[134].mxu1 }
 0x3a6   : > { %v2020_v61 = vpop.f32.mrb[135].mxu1  ;;  %2282 = vmatmul.mubr.f32.gmra.mrb[240].mxu1 %v1649_v47  ;;  %10281 = vmatmul.mubr.msk.f32.gmra.mrb[2].mxu0 %vm1201_vm2, %v2018_v46  ;;  %v1680_v46 = vld [vmem:[%s14945_s26 + $0x778] sm:$0xff] }
 0x3a7   : > { %2286 = vmatprep.mubr.f32.mxu1 %v1652_v37  ;;  %v1677_v37 = vld [vmem:[%s14945_s26 + $0x760] sm:$0xff]  ;;  %v11187_v61 = vpack.c.bf16 %v9201_v59, %v9200_v33  ;;  %v9224_v33 = vld [vmem:[%s14946_s23 + $0x170] sm:$0xff]  ;;  %v9225_v59 = vld [vmem:[%s14946_s23 + $0x178] sm:$0xff] }
 0x3a9   : > { %v2023_v13 = vpop.f32.mrb[136].mxu1 }
 0x3aa   : > { %v2025_v39 = vpop.f32.mrb[137].mxu1  ;;  %2287 = vmatmul.mubr.f32.gmra.mrb[242].mxu1 %v1651_v38  ;;  %10283 = vmatprep.mubr.msk.f32.mxu0 %vm1201_vm2, %v2023_v13  ;;  %v9211_v13 = vld [vmem:[%s14946_s23 + $0x148] sm:$0xff] }
 0x3ab   : > { %2291 = vmatprep.mubr.f32.mxu1 %v1654_v60  ;;  %v9210_v60 = vld [vmem:[%s14946_s23 + $0x140] sm:$0xff] }
 0x3ad   : > { %v2028_v26 = vpop.f32.mrb[138].mxu1 }
 0x3ae   : > { %v2030_v44 = vpop.f32.mrb[139].mxu1  ;;  %2292 = vmatmul.mubr.f32.gmra.mrb[244].mxu1 %v1653_v27  ;;  %10284 = vmatmul.mubr.msk.f32.gmra.mrb[4].mxu0 %vm1201_vm2, %v2028_v26  ;;  %v1679_v27 = vld [vmem:[%s14945_s26 + $0x770] sm:$0xff]  ;;  %v11191_v26 = vpack.c.bf16 %v9211_v13, %v9210_v60 }
 0x3af   : > { %2296 = vmatprep.mubr.f32.mxu1 %v1656_v43  ;;  %v1682_v43 = vld [vmem:[%s14945_s26 + $0x788] sm:$0xff] }
 0x3b1   : > { %v2033_v58 = vpop.f32.mrb[140].mxu1 }
 0x3b2   : > { %v2035_v57 = vpop.f32.mrb[141].mxu1  ;;  %2297 = vmatmul.mubr.f32.gmra.mrb[246].mxu1 %v1655_v40  ;;  %10286 = vmatprep.mubr.msk.f32.mxu0 %vm1201_vm2, %v2033_v58  ;;  %v1684_v58 = vld [vmem:[%s14945_s26 + $0x798] sm:$0xff] }
 0x3b3   : > { %2301 = vmatprep.mubr.f32.mxu1 %v1658_v0  ;;  %v1681_v0 = vld [vmem:[%s14945_s26 + $0x780] sm:$0xff] }
 0x3b5   : > { %v2038_v52 = vpop.f32.mrb[142].mxu1 }
 0x3b6   : > { %v2040_v63 = vpop.f32.mrb[143].mxu1  ;;  %2302 = vmatmul.mubr.f32.gmra.mrb[248].mxu1 %v1657_v1  ;;  %10287 = vmatmul.mubr.msk.f32.gmra.mrb[6].mxu0 %vm1201_vm2, %v2038_v52  ;;  %v1686_v52 = vld [vmem:[%s14945_s26 + $0x7a8] sm:$0xff] }
 0x3b7   : > { %2306 = vmatprep.mubr.f32.mxu1 %v1660_v2  ;;  %v1683_v2 = vld [vmem:[%s14945_s26 + $0x790] sm:$0xff] }
 0x3b9   : > { %v2043_v5 = vpop.f32.mrb[144].mxu1 }
 0x3ba   : > { %v2045_v8 = vpop.f32.mrb[145].mxu1  ;;  %2307 = vmatmul.mubr.f32.gmra.mrb[250].mxu1 %v1659_v12  ;;  %10297 = vmatprep.mubr.msk.f32.mxu0 %vm1201_vm2, %v2043_v5  ;;  %v1688_v5 = vld [vmem:[%s14945_s26 + $0x7b8] sm:$0xff] }
 0x3bb   : > { %2311 = vmatprep.mubr.f32.mxu1 %v1662_v4  ;;  %v1685_v4 = vld [vmem:[%s14945_s26 + $0x7a0] sm:$0xff]  ;;  %v1687_v8 = vld [vmem:[%s14945_s26 + $0x7b0] sm:$0xff] }
 0x3bd   : > { %v2048_v22 = vpop.f32.mrb[146].mxu1 }
 0x3be   : > { %v2050_v62 = vpop.f32.mrb[147].mxu1  ;;  %2312 = vmatmul.mubr.f32.gmra.mrb[252].mxu1 %v1661_v15  ;;  %10298 = vmatmul.mubr.msk.f32.vlgmr.msra.gmra.mrb[0].mxu0 %vm1201_vm2, %v2048_v22  ;;  %v1690_v15 = vld [vmem:[%s14945_s26 + $0x7c8] sm:$0xff]  ;;  %v1689_v22 = vld [vmem:[%s14945_s26 + $0x7c0] sm:$0xff] }
 0x3bf   : > { %2316 = vmatprep.mubr.f32.mxu1 %v1664_v51  ;;  %11178 = vmatpush3.bf16.msra.mxu0 %v11175_v56 }
 0x3c0   : > { %11180 = vmatprep.subr.bf16.mxu0 %v11179_v16 }
 0x3c1   : > { %v2053_v17 = vpop.f32.mrb[148].mxu1 }
 0x3c2   : > { %v2055_v11 = vpop.f32.mrb[149].mxu1  ;;  %2317 = vmatmul.mubr.f32.gmra.mrb[254].mxu1 %v1663_v21  ;;  %10300 = vmatprep.mubr.msk.f32.mxu0 %vm1201_vm2, %v2053_v17  ;;  %v1691_v21 = vld [vmem:[%s14945_s26 + $0x7d0] sm:$0xff] }
 0x3c3   : > { %2321 = vmatprep.mubr.f32.mxu1 %v1666_v25  ;;  %11182 = vmatpush3.bf16.msra.mxu0 %v11179_v16  ;;  %v1694_v25 = vld [vmem:[%s14945_s26 + $0x7e8] sm:$0xff]  ;;  %v9212_v17 = vld [vmem:[%s14946_s23 + $0x150] sm:$0xff]  ;;  %v9213_v11 = vld [vmem:[%s14946_s23 + $0x158] sm:$0xff] }
 0x3c4   : > { %11184 = vmatprep.subr.bf16.mxu0 %v11183_v7 }
 0x3c5   : > { %v2058_v29 = vpop.f32.mrb[150].mxu1 }
 0x3c6   : > { %v2060_v50 = vpop.f32.mrb[151].mxu1  ;;  %2322 = vmatmul.mubr.f32.gmra.mrb[0].mxu1 %v1665_v30  ;;  %10301 = vmatmul.mubr.msk.f32.gmra.mrb[2].mxu0 %vm1201_vm2, %v2058_v29  ;;  %v1696_v29 = vld [vmem:[%s14945_s26 + $0x7f8] sm:$0xff] }
 0x3c7   : > { %2326 = vmatprep.mubr.f32.mxu1 %v1668_v24  ;;  %v1693_v24 = vld [vmem:[%s14945_s26 + $0x7e0] sm:$0xff]  ;;  %v11195_v50 = vpack.c.bf16 %v9213_v11, %v9212_v17 }
 0x3c9   : > { %v2063_v49 = vpop.f32.mrb[152].mxu1 }
 0x3ca   : > { %v2065_v34 = vpop.f32.mrb[153].mxu1  ;;  %2327 = vmatmul.mubr.f32.gmra.mrb[2].mxu1 %v1667_v28  ;;  %10303 = vmatprep.mubr.msk.f32.mxu0 %vm1201_vm2, %v2063_v49  ;;  %v9223_v49 = vld [vmem:[%s14946_s23 + $0x168] sm:$0xff] }
 0x3cb   : > { %2331 = vmatprep.mubr.f32.mxu1 %v1670_v3  ;;  %v9222_v3 = vld [vmem:[%s14946_s23 + $0x160] sm:$0xff] }
 0x3cd   : > { %v2068_v31 = vpop.f32.mrb[154].mxu1 }
 0x3ce   : > { %v2070_v18 = vpop.f32.mrb[155].mxu1  ;;  %2332 = vmatmul.mubr.f32.gmra.mrb[4].mxu1 %v1669_v6  ;;  %10304 = vmatmul.mubr.msk.f32.gmra.mrb[4].mxu0 %vm1201_vm2, %v2068_v31  ;;  %v1695_v6 = vld [vmem:[%s14945_s26 + $0x7f0] sm:$0xff] }
 0x3cf   : > { %2336 = vmatprep.mubr.f32.mxu1 %v1672_v9  ;;  %v11199_v9 = vpack.c.bf16 %v9223_v49, %v9222_v3  ;;  %v9249_v3 = vld [vmem:[%s14946_s23 + $0x1b8] sm:$0xff] }
 0x3d1   : > { %v2073_v45 = vpop.f32.mrb[156].mxu1 }
 0x3d2   : > { %v2075_v48 = vpop.f32.mrb[157].mxu1  ;;  %2337 = vmatmul.mubr.f32.gmra.mrb[6].mxu1 %v1671_v23  ;;  %10306 = vmatprep.mubr.msk.f32.mxu0 %vm1201_vm2, %v2073_v45 }
 0x3d3   : > { %2341 = vmatprep.mubr.f32.mxu1 %v1674_v32 }
 0x3d5   : > { %v2078_v54 = vpop.f32.mrb[158].mxu1 }
 0x3d6   : > { %v2080_v20 = vpop.f32.mrb[159].mxu1  ;;  %2342 = vmatmul.mubr.f32.gmra.mrb[8].mxu1 %v1673_v36  ;;  %10307 = vmatmul.mubr.msk.f32.gmra.mrb[6].mxu0 %vm1201_vm2, %v2078_v54 }
 0x3d7   : > { %2346 = vmatprep.mubr.f32.mxu1 %v1676_v53 }
 0x3d9   : > { %v2083_v56 = vpop.f32.mrb[160].mxu1 }
 0x3da   : > { %v2085_v47 = vpop.f32.mrb[161].mxu1  ;;  %2347 = vmatmul.mubr.f32.gmra.mrb[10].mxu1 %v1675_v41  ;;  %10317 = vmatprep.mubr.msk.f32.mxu0 %vm1201_vm2, %v2083_v56 }
 0x3db   : > { %2351 = vmatprep.mubr.f32.mxu1 %v1678_v55 }
 0x3dd   : > { %v2088_v38 = vpop.f32.mrb[162].mxu1 }
 0x3de   : > { %v2090_v39 = vpop.f32.mrb[163].mxu1  ;;  %2352 = vmatmul.mubr.f32.gmra.mrb[12].mxu1 %v1677_v37  ;;  %10318 = vmatmul.mubr.msk.f32.vlgmr.msra.gmra.mrb[0].mxu0 %vm1201_vm2, %v2088_v38  ;;  %v11203_v37 = vpack.c.bf16 %v9225_v59, %v9224_v33  ;;  %v9235_v38 = vld [vmem:[%s14946_s23 + $0x188] sm:$0xff] }
 0x3df   : > { %2356 = vmatprep.mubr.f32.mxu1 %v1680_v46  ;;  %11186 = vmatpush3.bf16.msra.mxu0 %v11183_v7 }
 0x3e0   : > { %11188 = vmatprep.subr.bf16.mxu0 %v11187_v61 }
 0x3e1   : > { %v2093_v44 = vpop.f32.mrb[164].mxu1 }
 0x3e2   : > { %v2095_v40 = vpop.f32.mrb[165].mxu1  ;;  %2357 = vmatmul.mubr.f32.gmra.mrb[14].mxu1 %v1679_v27  ;;  %10320 = vmatprep.mubr.msk.f32.mxu0 %vm1201_vm2, %v2093_v44 }
 0x3e3   : > { %2361 = vmatprep.mubr.f32.mxu1 %v1682_v43  ;;  %11190 = vmatpush3.bf16.msra.mxu0 %v11187_v61  ;;  %v9234_v61 = vld [vmem:[%s14946_s23 + $0x180] sm:$0xff] }
 0x3e4   : > { %11192 = vmatprep.subr.bf16.mxu0 %v11191_v26  ;;  %v11207_v13 = vpack.c.bf16 %v9235_v38, %v9234_v61 }
 0x3e5   : > { %v2098_v57 = vpop.f32.mrb[166].mxu1 }
 0x3e6   : > { %v2100_v1 = vpop.f32.mrb[167].mxu1  ;;  %2362 = vmatmul.mubr.f32.gmra.mrb[16].mxu1 %v1681_v0  ;;  %10321 = vmatmul.mubr.msk.f32.gmra.mrb[2].mxu0 %vm1201_vm2, %v2098_v57 }
 0x3e7   : > { %2366 = vmatprep.mubr.f32.mxu1 %v1684_v58 }
 0x3e9   : > { %v2103_v63 = vpop.f32.mrb[168].mxu1 }
 0x3ea   : > { %v2105_v12 = vpop.f32.mrb[169].mxu1  ;;  %2367 = vmatmul.mubr.f32.gmra.mrb[18].mxu1 %v1683_v2  ;;  %10323 = vmatprep.mubr.msk.f32.mxu0 %vm1201_vm2, %v2103_v63 }
 0x3eb   : > { %2371 = vmatprep.mubr.f32.mxu1 %v1686_v52  ;;  %v9236_v12 = vld [vmem:[%s14946_s23 + $0x190] sm:$0xff] }
 0x3ed   : > { %v2108_v42 = vpop.f32.mrb[170].mxu1 }
 0x3ee   : > { %v2110_v10 = vpop.f32.mrb[171].mxu1  ;;  %2372 = vmatmul.mubr.f32.gmra.mrb[20].mxu1 %v1685_v4  ;;  %10324 = vmatmul.mubr.msk.f32.gmra.mrb[4].mxu0 %vm1201_vm2, %v2108_v42  ;;  %v9237_v4 = vld [vmem:[%s14946_s23 + $0x198] sm:$0xff] }
 0x3ef   : > { %2376 = vmatprep.mubr.f32.mxu1 %v1688_v5  ;;  %v11211_v42 = vpack.c.bf16 %v9237_v4, %v9236_v12 }
 0x3f1   : > { %v2113_v51 = vpop.f32.mrb[172].mxu1 }
 0x3f2   : > { %v2115_v16 = vpop.f32.mrb[173].mxu1  ;;  %2377 = vmatmul.mubr.f32.gmra.mrb[22].mxu1 %v1687_v8  ;;  %10326 = vmatprep.mubr.msk.f32.mxu0 %vm1201_vm2, %v2113_v51  ;;  %v9246_v8 = vld [vmem:[%s14946_s23 + $0x1a0] sm:$0xff] }
 0x3f3   : > { %2381 = vmatprep.mubr.f32.mxu1 %v1690_v15  ;;  %v9247_v15 = vld [vmem:[%s14946_s23 + $0x1a8] sm:$0xff] }
 0x3f4   : > { %v11215_v16 = vpack.c.bf16 %v9247_v15, %v9246_v8 }
 0x3f5   : > { %v2118_v14 = vpop.f32.mrb[174].mxu1 }
 0x3f6   : > { %v2120_v62 = vpop.f32.mrb[175].mxu1  ;;  %2382 = vmatmul.mubr.f32.gmra.mrb[24].mxu1 %v1689_v22  ;;  %10327 = vmatmul.mubr.msk.f32.gmra.mrb[6].mxu0 %vm1201_vm2, %v2118_v14 }
 0x3f7   : > { %2386 = vmatprep.mubr.f32.mxu1 %v1692_v19 }
 0x3f9   : > { %v2123_v7 = vpop.f32.mrb[176].mxu1 }
 0x3fa   : > { %v2125_v30 = vpop.f32.mrb[177].mxu1  ;;  %2387 = vmatmul.mubr.f32.gmra.mrb[26].mxu1 %v1691_v21  ;;  %10337 = vmatprep.mubr.msk.f32.mxu0 %vm1201_vm2, %v2123_v7 }
 0x3fb   : > { %2391 = vmatprep.mubr.f32.mxu1 %v1694_v25 }
 0x3fd   : > { %v2128_v28 = vpop.f32.mrb[178].mxu1 }
 0x3fe   : > { %v2130_v34 = vpop.f32.mrb[179].mxu1  ;;  %2392 = vmatmul.mubr.f32.gmra.mrb[28].mxu1 %v1693_v24  ;;  %10338 = vmatmul.mubr.msk.f32.vlgmr.msra.gmra.mrb[0].mxu0 %vm1201_vm2, %v2128_v28  ;;  %v9248_v28 = vld [vmem:[%s14946_s23 + $0x1b0] sm:$0xff] }
 0x3ff   : > { %2396 = vmatprep.mubr.f32.mxu1 %v1696_v29  ;;  %11194 = vmatpush3.bf16.msra.mxu0 %v11191_v26  ;;  %v11219_v34 = vpack.c.bf16 %v9249_v3, %v9248_v28 }
 0x400   : > { %11196 = vmatprep.subr.bf16.mxu0 %v11195_v50 }
 0x401   : > { %v2133_v31 = vpop.f32.mrb[180].mxu1 }
 0x402   : > { %v2135_v18 = vpop.f32.mrb[181].mxu1  ;;  %2397 = vmatmul.mubr.f32.gmra.mrb[30].mxu1 %v1695_v6  ;;  %10340 = vmatprep.mubr.msk.f32.mxu0 %vm1201_vm2, %v2133_v31  ;;  %v9259_v31 = vld [vmem:[%s14946_s23 + $0x1c8] sm:$0xff] }
 0x403   : > { %11198 = vmatpush3.bf16.msra.mxu0 %v11195_v50 }
 0x404   : > { %11200 = vmatprep.subr.bf16.mxu0 %v11199_v9 }
 0x405   : > { %v2138_v23 = vpop.f32.mrb[182].mxu1 }
 0x406   : > { %v2140_v32 = vpop.f32.mrb[183].mxu1  ;;  %10341 = vmatmul.mubr.msk.f32.gmra.mrb[2].mxu0 %vm1201_vm2, %v2138_v23 }
 0x409   : > { %v2143_v45 = vpop.f32.mrb[184].mxu1 }
 0x40a   : > { %v2145_v48 = vpop.f32.mrb[185].mxu1  ;;  %10343 = vmatprep.mubr.msk.f32.mxu0 %vm1201_vm2, %v2143_v45 }
 0x40d   : > { %v2148_v36 = vpop.f32.mrb[186].mxu1 }
 0x40e   : > { %v2150_v53 = vpop.f32.mrb[187].mxu1  ;;  %10344 = vmatmul.mubr.msk.f32.gmra.mrb[4].mxu0 %vm1201_vm2, %v2148_v36 }
 0x411   : > { %v2153_v54 = vpop.f32.mrb[188].mxu1 }
 0x412   : > { %v2155_v20 = vpop.f32.mrb[189].mxu1  ;;  %10346 = vmatprep.mubr.msk.f32.mxu0 %vm1201_vm2, %v2153_v54 }
 0x415   : > { %v2158_v41 = vpop.f32.mrb[190].mxu1 }
 0x416   : > { %v2160_v55 = vpop.f32.mrb[191].mxu1  ;;  %10347 = vmatmul.mubr.msk.f32.gmra.mrb[6].mxu0 %vm1201_vm2, %v2158_v41 }
 0x419   : > { %v2163_v56 = vpop.f32.mrb[192].mxu1 }
 0x41a   : > { %v2165_v47 = vpop.f32.mrb[193].mxu1  ;;  %10357 = vmatprep.mubr.msk.f32.mxu0 %vm1201_vm2, %v2163_v56 }
 0x41d   : > { %v2168_v46 = vpop.f32.mrb[194].mxu1 }
 0x41e   : > { %v2170_v60 = vpop.f32.mrb[195].mxu1  ;;  %10358 = vmatmul.mubr.msk.f32.vlgmr.msra.gmra.mrb[0].mxu0 %vm1201_vm2, %v2168_v46  ;;  %v9261_v46 = vld [vmem:[%s14946_s23 + $0x1d8] sm:$0xff] }
 0x41f   : > { %11202 = vmatpush3.bf16.msra.mxu0 %v11199_v9  ;;  %v9258_v9 = vld [vmem:[%s14946_s23 + $0x1c0] sm:$0xff] }
 0x420   : > { %11204 = vmatprep.subr.bf16.mxu0 %v11203_v37  ;;  %v11223_v23 = vpack.c.bf16 %v9259_v31, %v9258_v9 }
 0x421   : > { %v2173_v39 = vpop.f32.mrb[196].mxu1 }
 0x422   : > { %v2175_v27 = vpop.f32.mrb[197].mxu1  ;;  %10360 = vmatprep.mubr.msk.f32.mxu0 %vm1201_vm2, %v2173_v39  ;;  %v9271_v39 = vld [vmem:[%s14946_s23 + $0x1e8] sm:$0xff] }
 0x423   : > { %11206 = vmatpush3.bf16.msra.mxu0 %v11203_v37  ;;  %v9260_v37 = vld [vmem:[%s14946_s23 + $0x1d0] sm:$0xff] }
 0x424   : > { %11208 = vmatprep.subr.bf16.mxu0 %v11207_v13  ;;  %v11227_v38 = vpack.c.bf16 %v9261_v46, %v9260_v37 }
 0x425   : > { %v2178_v43 = vpop.f32.mrb[198].mxu1 }
 0x426   : > { %v2180_v26 = vpop.f32.mrb[199].mxu1  ;;  %10361 = vmatmul.mubr.msk.f32.gmra.mrb[2].mxu0 %vm1201_vm2, %v2178_v43 }
 0x429   : > { %v2183_v44 = vpop.f32.mrb[200].mxu1 }
 0x42a   : > { %v2185_v40 = vpop.f32.mrb[201].mxu1  ;;  %10363 = vmatprep.mubr.msk.f32.mxu0 %vm1201_vm2, %v2183_v44 }
 0x42d   : > { %v2188_v0 = vpop.f32.mrb[202].mxu1 }
 0x42e   : > { %v2190_v58 = vpop.f32.mrb[203].mxu1  ;;  %10364 = vmatmul.mubr.msk.f32.gmra.mrb[4].mxu0 %vm1201_vm2, %v2188_v0 }
 0x431   : > { %v2193_v57 = vpop.f32.mrb[204].mxu1 }
 0x432   : > { %v2195_v1 = vpop.f32.mrb[205].mxu1  ;;  %10366 = vmatprep.mubr.msk.f32.mxu0 %vm1201_vm2, %v2193_v57 }
 0x435   : > { %v2198_v2 = vpop.f32.mrb[206].mxu1 }
 0x436   : > { %v2200_v52 = vpop.f32.mrb[207].mxu1  ;;  %10367 = vmatmul.mubr.msk.f32.gmra.mrb[6].mxu0 %vm1201_vm2, %v2198_v2 }
 0x439   : > { %v2203_v63 = vpop.f32.mrb[208].mxu1 }
 0x43a   : > { %v2205_v5 = vpop.f32.mrb[209].mxu1  ;;  %10377 = vmatprep.mubr.msk.f32.mxu0 %vm1201_vm2, %v2203_v63 }
 0x43d   : > { %v2208_v10 = vpop.f32.mrb[210].mxu1 }
 0x43e   : > { %v2210_v51 = vpop.f32.mrb[211].mxu1  ;;  %10378 = vmatmul.mubr.msk.f32.vlgmr.msra.gmra.mrb[0].mxu0 %vm1201_vm2, %v2208_v10  ;;  %v9273_v10 = vld [vmem:[%s14946_s23 + $0x1f8] sm:$0xff] }
 0x43f   : > { %11210 = vmatpush3.bf16.msra.mxu0 %v11207_v13  ;;  %v9270_v13 = vld [vmem:[%s14946_s23 + $0x1e0] sm:$0xff] }
 0x440   : > { %11212 = vmatprep.subr.bf16.mxu0 %v11211_v42  ;;  %v11231_v43 = vpack.c.bf16 %v9271_v39, %v9270_v13 }
 0x441   : > { %v2213_v22 = vpop.f32.mrb[212].mxu1 }
 0x442   : > { %v2215_v19 = vpop.f32.mrb[213].mxu1  ;;  %10380 = vmatprep.mubr.msk.f32.mxu0 %vm1201_vm2, %v2213_v22 }
 0x443   : > { %11214 = vmatpush3.bf16.msra.mxu0 %v11211_v42  ;;  %v9272_v42 = vld [vmem:[%s14946_s23 + $0x1f0] sm:$0xff]  ;;  %s14739_s23 = sand.u32 1, %s11938_s30  }
 0x444   : > { %11216 = vmatprep.subr.bf16.mxu0 %v11215_v16  ;;  %v11235_v15 = vpack.c.bf16 %v9273_v10, %v9272_v42  ;;  %s717_s29 = scalar_lea.vmem [#allocation2], %s14739_s23  ;;  %s14918_s1 = scalar_lea.vmem [#allocation4], %s14739_s23 }
 0x445   : > { %v2218_v14 = vpop.f32.mrb[214].mxu1  ;;  %s8912_s3 = sshll.u32 %s717_s29, 4  ;;  %s8892_s24 = scalar_lea.sflag [#allocation3], %s14739_s23  ;;  %s14757_s3 = int_to_ptr.vmem [resolvable:$true] %s8912_s3 }
 0x446   : > { %v2220_v62 = vpop.f32.mrb[215].mxu1  ;;  %10381 = vmatmul.mubr.msk.f32.gmra.mrb[2].mxu0 %vm1201_vm2, %v2218_v14  ;;  %s11824_s25 = scalar_lea.vmem %s14757_s3, 16 }
 0x447   : > { %p11825_p11 = scmp.ne.s32.totalorder %s14757_s3, %s11824_s25 }
 0x449   : > { %v2223_v21 = vpop.f32.mrb[216].mxu1  ;;  %p11826_p12 = pnand %p11825_p11, %p12114_p5 }
 0x44a   : > { %v2225_v25 = vpop.f32.mrb[217].mxu1  ;;  %10383 = vmatprep.mubr.msk.f32.mxu0 %vm1201_vm2, %v2223_v21 }
 0x44b   : > { %p11827_p13 = pneg %p11826_p12 }
 0x44d   : > { %v2228_v7 = vpop.f32.mrb[218].mxu1 }
 0x44e   : > { %v2230_v17 = vpop.f32.mrb[219].mxu1  ;;  %10384 = vmatmul.mubr.msk.f32.gmra.mrb[4].mxu0 %vm1201_vm2, %v2228_v7 }
 0x451   : > { %v2233_v11 = vpop.f32.mrb[220].mxu1 }
 0x452   : > { %v2235_v30 = vpop.f32.mrb[221].mxu1  ;;  %10386 = vmatprep.mubr.msk.f32.mxu0 %vm1201_vm2, %v2233_v11 }
 0x455   : > { %v2238_v24 = vpop.f32.mrb[222].mxu1 }
 0x456   : > { %v2240_v29 = vpop.f32.mrb[223].mxu1  ;;  %10387 = vmatmul.mubr.msk.f32.gmra.mrb[6].mxu0 %vm1201_vm2, %v2238_v24 }
 0x459   : > { %v2243_v50 = vpop.f32.mrb[224].mxu1 }
 0x45a   : > { %v2245_v49 = vpop.f32.mrb[225].mxu1  ;;  %10397 = vmatprep.mubr.msk.f32.mxu0 %vm1201_vm2, %v2243_v50 }
 0x45d   : > { %v2248_v6 = vpop.f32.mrb[226].mxu1 }
 0x45e   : > { %v2250_v18 = vpop.f32.mrb[227].mxu1  ;;  %10398 = vmatmul.mubr.msk.f32.vlgmr.msra.gmra.mrb[0].mxu0 %vm1201_vm2, %v2248_v6 }
 0x45f   : > { %11218 = vmatpush3.bf16.msra.mxu0 %v11215_v16 }
 0x460   : > { %11220 = vmatprep.subr.bf16.mxu0 %v11219_v34 }
 0x461   : > { %v2253_v32 = vpop.f32.mrb[228].mxu1 }
 0x462   : > { %v2255_v45 = vpop.f32.mrb[229].mxu1  ;;  %10400 = vmatprep.mubr.msk.f32.mxu0 %vm1201_vm2, %v2253_v32 }
 0x463   : > { %11222 = vmatpush3.bf16.msra.mxu0 %v11219_v34 }
 0x464   : > { %11224 = vmatprep.subr.bf16.mxu0 %v11223_v23 }
 0x465   : > { %v2258_v48 = vpop.f32.mrb[230].mxu1 }
 0x466   : > { %v2260_v36 = vpop.f32.mrb[231].mxu1  ;;  %10401 = vmatmul.mubr.msk.f32.gmra.mrb[2].mxu0 %vm1201_vm2, %v2258_v48 }
 0x469   : > { %v2263_v53 = vpop.f32.mrb[232].mxu1 }
 0x46a   : > { %v2265_v54 = vpop.f32.mrb[233].mxu1  ;;  %10403 = vmatprep.mubr.msk.f32.mxu0 %vm1201_vm2, %v2263_v53 }
 0x46d   : > { %v2268_v20 = vpop.f32.mrb[234].mxu1 }
 0x46e   : > { %v2270_v41 = vpop.f32.mrb[235].mxu1  ;;  %10404 = vmatmul.mubr.msk.f32.gmra.mrb[4].mxu0 %vm1201_vm2, %v2268_v20  ;;  %v4768_v20 = vld [vmem:[%s14947_s27] sm:$0xff] }
 0x46f   : > { %v9282_v41 = vld [vmem:[%s14948_s28] ss:$0 sm:$0xff]  ;;  %s14745_s28 = sshll.u32 %s12095_s5, 4 }
 0x470   : > { %s14755_s0 = scalar_lea.hbm %s14900_s21, %s14745_s28 }
 0x471   : > { %v2273_v55 = vpop.f32.mrb[236].mxu1 }
 0x472   : > { %v2275_v56 = vpop.f32.mrb[237].mxu1  ;;  %10406 = vmatprep.mubr.msk.f32.mxu0 %vm1201_vm2, %v2273_v55 }
 0x475   : > { %v2278_v33 = vpop.f32.mrb[238].mxu1 }
 0x476   : > { %v2280_v59 = vpop.f32.mrb[239].mxu1  ;;  %10407 = vmatmul.mubr.msk.f32.gmra.mrb[6].mxu0 %vm1201_vm2, %v2278_v33 }
 0x479   : > { %v2283_v47 = vpop.f32.mrb[240].mxu1 }
 0x47a   : > { %v2285_v61 = vpop.f32.mrb[241].mxu1  ;;  %10417 = vmatprep.mubr.msk.f32.mxu0 %vm1201_vm2, %v2283_v47 }
 0x47d   : > { %v2288_v60 = vpop.f32.mrb[242].mxu1 }
 0x47e   : > { %v2290_v27 = vpop.f32.mrb[243].mxu1  ;;  %10418 = vmatmul.mubr.msk.f32.vlgmr.msra.gmra.mrb[0].mxu0 %vm1201_vm2, %v2288_v60 }
 0x47f   : > { %11226 = vmatpush3.bf16.msra.mxu0 %v11223_v23 }
 0x480   : > { %11228 = vmatprep.subr.bf16.mxu0 %v11227_v38 }
 0x481   : > { %v2293_v26 = vpop.f32.mrb[244].mxu1 }
 0x482   : > { %v2295_v44 = vpop.f32.mrb[245].mxu1  ;;  %10420 = vmatprep.mubr.msk.f32.mxu0 %vm1201_vm2, %v2293_v26 }
 0x483   : > { %11230 = vmatpush3.bf16.msra.mxu0 %v11227_v38 }
 0x484   : > { %11232 = vmatprep.subr.bf16.mxu0 %v11231_v43 }
 0x485   : > { %v2298_v40 = vpop.f32.mrb[246].mxu1 }
 0x486   : > { %v2300_v0 = vpop.f32.mrb[247].mxu1  ;;  %10421 = vmatmul.mubr.msk.f32.gmra.mrb[2].mxu0 %vm1201_vm2, %v2298_v40 }
 0x489   : > { %v2303_v58 = vpop.f32.mrb[248].mxu1 }
 0x48a   : > { %v2305_v57 = vpop.f32.mrb[249].mxu1  ;;  %10423 = vmatprep.mubr.msk.f32.mxu0 %vm1201_vm2, %v2303_v58 }
 0x48d   : > { %v2308_v1 = vpop.f32.mrb[250].mxu1 }
 0x48e   : > { %v2310_v2 = vpop.f32.mrb[251].mxu1  ;;  %10424 = vmatmul.mubr.msk.f32.gmra.mrb[4].mxu0 %vm1201_vm2, %v2308_v1 }
 0x491   : > { %v2313_v52 = vpop.f32.mrb[252].mxu1 }
 0x492   : > { %v2315_v63 = vpop.f32.mrb[253].mxu1  ;;  %10426 = vmatprep.mubr.msk.f32.mxu0 %vm1201_vm2, %v2313_v52 }
 0x495   : > { %v2318_v12 = vpop.f32.mrb[254].mxu1 }
 0x496   : > { %v2320_v4 = vpop.f32.mrb[255].mxu1  ;;  %10427 = vmatmul.mubr.msk.f32.gmra.mrb[6].mxu0 %vm1201_vm2, %v2318_v12 }
 0x499   : > { %v2323_v5 = vpop.f32.mrb[0].mxu1 }
 0x49a   : > { %v2325_v8 = vpop.f32.mrb[1].mxu1  ;;  %10437 = vmatprep.mubr.msk.f32.mxu0 %vm1201_vm2, %v2323_v5 }
 0x49d   : > { %v2328_v51 = vpop.f32.mrb[2].mxu1 }
 0x49e   : > { %v2330_v16 = vpop.f32.mrb[3].mxu1  ;;  %10438 = vmatmul.mubr.msk.f32.vlgmr.msra.gmra.mrb[0].mxu0 %vm1201_vm2, %v2328_v51 }
 0x49f   : > { %11234 = vmatpush3.bf16.msra.mxu0 %v11231_v43 }
 0x4a0   : > { %11236 = vmatprep.subr.bf16.mxu0 %v11235_v15 }
 0x4a1   : > { %v2333_v22 = vpop.f32.mrb[4].mxu1 }
 0x4a2   : > { %v2335_v19 = vpop.f32.mrb[5].mxu1  ;;  %10440 = vmatprep.mubr.msk.f32.mxu0 %vm1201_vm2, %v2333_v22 }
 0x4a3   : > { %11238 = vmatpush3.bf16.msra.mxu0 %v11235_v15 }
 0x4a5   : > { %v2338_v14 = vpop.f32.mrb[6].mxu1 }
 0x4a6   : > { %v2340_v62 = vpop.f32.mrb[7].mxu1  ;;  %10441 = vmatmul.mubr.msk.f32.gmra.mrb[2].mxu0 %vm1201_vm2, %v2338_v14 }
 0x4a9   : > { %v2343_v21 = vpop.f32.mrb[8].mxu1 }
 0x4aa   : > { %v2345_v25 = vpop.f32.mrb[9].mxu1  ;;  %10443 = vmatprep.mubr.msk.f32.mxu0 %vm1201_vm2, %v2343_v21 }
 0x4ad   : > { %v2348_v7 = vpop.f32.mrb[10].mxu1 }
 0x4ae   : > { %v2350_v17 = vpop.f32.mrb[11].mxu1  ;;  %10444 = vmatmul.mubr.msk.f32.gmra.mrb[4].mxu0 %vm1201_vm2, %v2348_v7 }
 0x4b1   : > { %v2353_v11 = vpop.f32.mrb[12].mxu1 }
 0x4b2   : > { %v2355_v30 = vpop.f32.mrb[13].mxu1  ;;  %10446 = vmatprep.mubr.msk.f32.mxu0 %vm1201_vm2, %v2353_v11 }
 0x4b5   : > { %v2358_v24 = vpop.f32.mrb[14].mxu1 }
 0x4b6   : > { %v2360_v29 = vpop.f32.mrb[15].mxu1  ;;  %10447 = vmatmul.mubr.msk.f32.gmra.mrb[6].mxu0 %vm1201_vm2, %v2358_v24 }
 0x4b9   : > { %v2363_v50 = vpop.f32.mrb[16].mxu1 }
 0x4ba   : > { %v2365_v28 = vpop.f32.mrb[17].mxu1  ;;  %10457 = vmatprep.mubr.msk.f32.mxu0 %vm1201_vm2, %v2363_v50 }
 0x4bd   : > { %v2368_v3 = vpop.f32.mrb[18].mxu1 }
 0x4be   : > { %v2370_v49 = vpop.f32.mrb[19].mxu1  ;;  %10458 = vmatmul.mubr.msk.f32.vlgmr.msra.gmra.mrb[0].mxu0 %vm1201_vm2, %v2368_v3 }
 0x4c1   : > { %v2373_v34 = vpop.f32.mrb[20].mxu1 }
 0x4c2   : > { %v2375_v6 = vpop.f32.mrb[21].mxu1  ;;  %10460 = vmatprep.mubr.msk.f32.mxu0 %vm1201_vm2, %v2373_v34 }
 0x4c5   : > { %v2378_v9 = vpop.f32.mrb[22].mxu1 }
 0x4c6   : > { %v2380_v31 = vpop.f32.mrb[23].mxu1  ;;  %10461 = vmatmul.mubr.msk.f32.gmra.mrb[2].mxu0 %vm1201_vm2, %v2378_v9 }
 0x4c9   : > { %v2383_v18 = vpop.f32.mrb[24].mxu1 }
 0x4ca   : > { %v2385_v23 = vpop.f32.mrb[25].mxu1  ;;  %10463 = vmatprep.mubr.msk.f32.mxu0 %vm1201_vm2, %v2383_v18 }
 0x4cd   : > { %v2388_v32 = vpop.f32.mrb[26].mxu1 }
 0x4ce   : > { %v2390_v45 = vpop.f32.mrb[27].mxu1  ;;  %10464 = vmatmul.mubr.msk.f32.gmra.mrb[4].mxu0 %vm1201_vm2, %v2388_v32 }
 0x4d1   : > { %v2393_v48 = vpop.f32.mrb[28].mxu1 }
 0x4d2   : > { %v2395_v36 = vpop.f32.mrb[29].mxu1  ;;  %10466 = vmatprep.mubr.msk.f32.mxu0 %vm1201_vm2, %v2393_v48 }
 0x4d5   : > { %v2398_v53 = vpop.f32.mrb[30].mxu1 }
 0x4d6   : > { %v2400_v54 = vpop.f32.mrb[31].mxu1  ;;  %10467 = vmatmul.mubr.msk.f32.gmra.mrb[6].mxu0 %vm1201_vm2, %v2398_v53 }
 0x4d7   : > { %10485 = vmatprep.mubr.msk.f32.mxu0 %vm4696_vm4, %v4768_v20 }
 0x591   : > { %v10459_v55 = vpop.f32.mrb[0].mxu0 }
 0x592   : > { %v4665_v56 = vadd.f32 %v10459_v55, %v9282_v41  ;;  %v4610_v33 = vpop.f32.mrb[1].mxu0 }
 0x593   : > { %v4664_v59 = vadd.f32 %v9282_v41, %v4610_v33 }
 0x594   : > { %vm4673_vm5 = vcmp.gt.f32.partialorder %v4665_v56, 0.0  ;;  %v4681_v47 = vmul.f32 0.2, %v4665_v56 }
 0x595   : > { %vm4672_vm6 = vcmp.gt.f32.partialorder %v4664_v59, 0.0  ;;  %v4680_v37 = vmul.f32 0.2, %v4664_v59 }
 0x596   : > { %v4689_v46 = vsel %vm4673_vm5, %v4665_v56, %v4681_v47  ;;  %vm8881_vm5 = vcmask 516096  }
 0x597   : > { %v4698_v61 = vsel %vm4696_vm4, %v4689_v46, 0.0  ;;  %v4688_v38 = vsel %vm4672_vm6, %v4664_v59, %v4680_v37 }
 0x598   : > { %v4697_v60 = vsel %vm4696_vm4, %v4688_v38, 0.0 }
 0x599   : > { %v4699_v13 = vadd.f32 %v4698_v61, %v4697_v60  ;;  %v10462_v39 = vpop.f32.mrb[2].mxu0 }
 0x59a   : > { %v4667_v27 = vadd.f32 %v10462_v39, %v9282_v41  ;;  %v4620_v43 = vpop.f32.mrb[3].mxu0 }
 0x59b   : > { %v4666_v26 = vadd.f32 %v9282_v41, %v4620_v43 }
 0x59c   : > { %vm4675_vm7 = vcmp.gt.f32.partialorder %v4667_v27, 0.0  ;;  %v4683_v44 = vmul.f32 0.2, %v4667_v27 }
 0x59d   : > { %vm4674_vm8 = vcmp.gt.f32.partialorder %v4666_v26, 0.0  ;;  %v4682_v40 = vmul.f32 0.2, %v4666_v26 }
 0x59e   : > { %v4691_v0 = vsel %vm4675_vm7, %v4667_v27, %v4683_v44 }
 0x59f   : > { %v4690_v58 = vsel %vm4674_vm8, %v4666_v26, %v4682_v40  ;;  %v4702_v52 = vsel %vm4696_vm4, %v4691_v0, 0.0 }
 0x5a0   : > { %v4700_v57 = vsel %vm4696_vm4, %v4690_v58, 0.0 }
 0x5a1   : > { %v4701_v1 = vadd.f32 %v4700_v57, %v4699_v13  ;;  %v10465_v2 = vpop.f32.mrb[4].mxu0 }
 0x5a2   : > { %v4669_v63 = vadd.f32 %v10465_v2, %v9282_v41  ;;  %v4630_v12 = vpop.f32.mrb[5].mxu0 }
 0x5a3   : > { %v4668_v4 = vadd.f32 %v9282_v41, %v4630_v12  ;;  %v4703_v5 = vadd.f32 %v4702_v52, %v4701_v1 }
 0x5a4   : > { %vm4677_vm9 = vcmp.gt.f32.partialorder %v4669_v63, 0.0  ;;  %v4685_v42 = vmul.f32 0.2, %v4669_v63 }
 0x5a5   : > { %vm4676_vm10 = vcmp.gt.f32.partialorder %v4668_v4, 0.0  ;;  %v4684_v10 = vmul.f32 0.2, %v4668_v4 }
 0x5a6   : > { %v4693_v8 = vsel %vm4677_vm9, %v4669_v63, %v4685_v42 }
 0x5a7   : > { %v4692_v15 = vsel %vm4676_vm10, %v4668_v4, %v4684_v10  ;;  %v4706_v19 = vsel %vm4696_vm4, %v4693_v8, 0.0 }
 0x5a8   : > { %v4704_v51 = vsel %vm4696_vm4, %v4692_v15, 0.0 }
 0x5a9   : > { %v4705_v16 = vadd.f32 %v4704_v51, %v4703_v5  ;;  %v10468_v22 = vpop.f32.mrb[6].mxu0 }
 0x5aa   : > { %v4671_v14 = vadd.f32 %v10468_v22, %v9282_v41  ;;  %v4640_v62 = vpop.f32.mrb[7].mxu0 }
 0x5ab   : > { %v4670_v21 = vadd.f32 %v9282_v41, %v4640_v62  ;;  %v4707_v25 = vadd.f32 %v4706_v19, %v4705_v16 }
 0x5ac   : > { %vm4679_vm11 = vcmp.gt.f32.partialorder %v4671_v14, 0.0  ;;  %v4687_v7 = vmul.f32 0.2, %v4671_v14 }
 0x5ad   : > { %vm4678_vm12 = vcmp.gt.f32.partialorder %v4670_v21, 0.0  ;;  %v4686_v17 = vmul.f32 0.2, %v4670_v21 }
 0x5ae   : > { %v4695_v11 = vsel %vm4679_vm11, %v4671_v14, %v4687_v7 }
 0x5af   : > { %v4694_v30 = vsel %vm4678_vm12, %v4670_v21, %v4686_v17  ;;  %v4710_v50 = vsel %vm4696_vm4, %v4695_v11, 0.0 }
 0x5b0   : > { %v4708_v24 = vsel %vm4696_vm4, %v4694_v30, 0.0 }
 0x5b1   : > { %v4709_v29 = vadd.f32 %v4708_v24, %v4707_v25  ;;  %v9315_v24 = vld [vmem:[%s14949_s8 + $0x40] sm:$0xff] }
 0x5b3   : > { %v4711_v28 = vadd.f32 %v4710_v50, %v4709_v29  ;;  %v9316_v29 = vld [vmem:[%s14949_s8 + $0x48] sm:$0xff] }
 0x5b4   : > { %v11255_v50 = vpack.c.bf16 %v9316_v29, %v9315_v24  ;;  %v9327_v24 = vld [vmem:[%s14949_s8 + $0x80] sm:$0xff]  ;;  %v9328_v29 = vld [vmem:[%s14949_s8 + $0x88] sm:$0xff] }
 0x5b5   : > { %v4712_v3 = vrot.slane %v4711_v28, 4 }
 0x5b7   : > { %v4713_v49 = vadd.f32 %v4712_v3, %v4711_v28  ;;  %v9317_v28 = vld [vmem:[%s14949_s8 + $0x50] sm:$0xff]  ;;  %v9318_v3 = vld [vmem:[%s14949_s8 + $0x58] sm:$0xff] }
 0x5b9   : > { %v4714_v34 = vrot.slane %v4713_v49, 2 }
 0x5bb   : > { %v4715_v6 = vadd.f32 %v4714_v34, %v4713_v49  ;;  %v4769_v49 = vld [vmem:[%s14947_s27 + $0x8] sm:$0xff]  ;;  %v4770_v34 = vld [vmem:[%s14947_s27 + $0x10] sm:$0xff] }
 0x5bd   : > { %v4716_v9 = vrot.slane %v4715_v6, 1 }
 0x5bf   : > { %v4717_v31 = vadd.f32 %v4716_v9, %v4715_v6  ;;  %v11259_v6 = vpack.c.bf16 %v9318_v3, %v9317_v28  ;;  %v9319_v9 = vld [vmem:[%s14949_s8 + $0x60] sm:$0xff]  ;;  %v11287_v28 = vpack.c.bf16 %v9328_v29, %v9327_v24  ;;  %v9363_v24 = vld [vmem:[%s14949_s8 + $0x170] sm:$0xff]  ;;  %v9364_v29 = vld [vmem:[%s14949_s8 + $0x178] sm:$0xff] }
 0x5c1   : > { %v4719_v18 = vmul.f32 0.015625, %v4717_v31  ;;  %v9320_v31 = vld [vmem:[%s14949_s8 + $0x68] sm:$0xff] }
 0x5c3   : > { %v4726_v23 = vsub.f32 %v4694_v30, %v4719_v18  ;;  %v4720_v32 = vsub.f32 %v4688_v38, %v4719_v18  ;;  %v4721_v45 = vsub.f32 %v4689_v46, %v4719_v18  ;;  %v4722_v48 = vsub.f32 %v4690_v58, %v4719_v18 }
 0x5c4   : > { %v4723_v36 = vsub.f32 %v4691_v0, %v4719_v18  ;;  %v4724_v53 = vsub.f32 %v4692_v15, %v4719_v18  ;;  %v4725_v54 = vsub.f32 %v4693_v8, %v4719_v18  ;;  %v4727_v20 = vsub.f32 %v4695_v11, %v4719_v18  ;;  %v4771_v18 = vld [vmem:[%s14947_s27 + $0x18] sm:$0xff] }
 0x5c5   : > { %v4728_v41 = vmul.f32 %v4720_v32, %v4720_v32  ;;  %v4729_v55 = vmul.f32 %v4721_v45, %v4721_v45  ;;  %v4730_v56 = vmul.f32 %v4722_v48, %v4722_v48  ;;  %v4734_v27 = vmul.f32 %v4726_v23, %v4726_v23 }
 0x5c6   : > { %v4731_v33 = vmul.f32 %v4723_v36, %v4723_v36  ;;  %v4732_v61 = vmul.f32 %v4724_v53, %v4724_v53  ;;  %v4733_v38 = vmul.f32 %v4725_v54, %v4725_v54  ;;  %v4735_v44 = vmul.f32 %v4727_v20, %v4727_v20 }
 0x5c7   : > { %v4736_v59 = vsel %vm4696_vm4, %v4728_v41, 0.0  ;;  %v4737_v47 = vsel %vm4696_vm4, %v4729_v55, 0.0  ;;  %v4739_v60 = vsel %vm4696_vm4, %v4730_v56, 0.0  ;;  %v4747_v58 = vsel %vm4696_vm4, %v4734_v27, 0.0  ;;  %v4779_v41 = vld [vmem:[%s14947_s27 + $0x58] sm:$0xff]  ;;  %v4780_v55 = vld [vmem:[%s14947_s27 + $0x60] sm:$0xff] }
 0x5c8   : > { %v4738_v37 = vadd.f32 %v4737_v47, %v4736_v59  ;;  %v4741_v46 = vsel %vm4696_vm4, %v4731_v33, 0.0  ;;  %v4743_v43 = vsel %vm4696_vm4, %v4732_v61, 0.0  ;;  %v4745_v40 = vsel %vm4696_vm4, %v4733_v38, 0.0  ;;  %v4781_v56 = vld [vmem:[%s14947_s27 + $0x68] sm:$0xff]  ;;  %v4782_v33 = vld [vmem:[%s14947_s27 + $0x70] sm:$0xff]  ;;  %v4783_v59 = vld [vmem:[%s14947_s27 + $0x78] sm:$0xff] }
 0x5c9   : > { %v4749_v1 = vsel %vm4696_vm4, %v4735_v44, 0.0  ;;  %v4784_v47 = vld [vmem:[%s14947_s27 + $0x80] sm:$0xff]  ;;  %v4786_v61 = vld [vmem:[%s14947_s27 + $0x90] sm:$0xff]  ;;  %v4789_v38 = vld [vmem:[%s14947_s27 + $0xa8] sm:$0xff] }
 0x5ca   : > { %v4740_v13 = vadd.f32 %v4739_v60, %v4738_v37  ;;  %v4785_v37 = vld [vmem:[%s14947_s27 + $0x88] sm:$0xff]  ;;  %v4787_v60 = vld [vmem:[%s14947_s27 + $0x98] sm:$0xff]  ;;  %v4792_v27 = vld [vmem:[%s14947_s27 + $0xc0] sm:$0xff] }
 0x5cb   : > { %v4795_v44 = vld [vmem:[%s14947_s27 + $0xd8] sm:$0xff] }
 0x5cc   : > { %v4742_v39 = vadd.f32 %v4741_v46, %v4740_v13  ;;  %v4788_v13 = vld [vmem:[%s14947_s27 + $0xa0] sm:$0xff]  ;;  %v4790_v46 = vld [vmem:[%s14947_s27 + $0xb0] sm:$0xff] }
 0x5ce   : > { %v4744_v26 = vadd.f32 %v4743_v43, %v4742_v39  ;;  %v4791_v39 = vld [vmem:[%s14947_s27 + $0xb8] sm:$0xff]  ;;  %v4793_v43 = vld [vmem:[%s14947_s27 + $0xc8] sm:$0xff] }
 0x5d0   : > { %v4746_v0 = vadd.f32 %v4745_v40, %v4744_v26  ;;  %v4794_v26 = vld [vmem:[%s14947_s27 + $0xd0] sm:$0xff]  ;;  %v4796_v40 = vld [vmem:[%s14947_s27 + $0xe0] sm:$0xff] }
 0x5d2   : > { %v4748_v57 = vadd.f32 %v4747_v58, %v4746_v0  ;;  %v4797_v0 = vld [vmem:[%s14947_s27 + $0xe8] sm:$0xff]  ;;  %v4798_v58 = vld [vmem:[%s14947_s27 + $0xf0] sm:$0xff] }
 0x5d4   : > { %v4750_v2 = vadd.f32 %v4749_v1, %v4748_v57  ;;  %v4799_v57 = vld [vmem:[%s14947_s27 + $0xf8] sm:$0xff]  ;;  %v9321_v1 = vld [vmem:[%s14949_s8 + $0x70] sm:$0xff] }
 0x5d6   : > { %v4751_v52 = vrot.slane %v4750_v2, 4 }
 0x5d8   : > { %v4752_v63 = vadd.f32 %v4751_v52, %v4750_v2  ;;  %v9322_v2 = vld [vmem:[%s14949_s8 + $0x78] sm:$0xff] }
 0x5d9   : > { %v11267_v52 = vpack.c.bf16 %v9322_v2, %v9321_v1 }
 0x5da   : > { %v4753_v12 = vrot.slane %v4752_v63, 2 }
 0x5dc   : > { %v4754_v4 = vadd.f32 %v4753_v12, %v4752_v63  ;;  %v5121_v63 = vld [vmem:[%s14949_s8] sm:$0xff]  ;;  %v5122_v12 = vld [vmem:[%s14949_s8 + $0x8] sm:$0xff] }
 0x5de   : > { %v4755_v5 = vrot.slane %v4754_v4, 1 }
 0x5e0   : > { %v4756_v42 = vadd.f32 %v4755_v5, %v4754_v4  ;;  %v11271_v4 = vpack.c.bf16 %v5122_v12, %v5121_v63  ;;  %v9350_v63 = vld [vmem:[%s14949_s8 + $0x118] sm:$0xff] }
 0x5e2   : > { %v4757_v10 = vmul.f32 0.015625, %v4756_v42 }
 0x5e4   : > { %v4758_v8 = vadd.f32 1e-05, %v4757_v10  ;;  %v5123_v10 = vld [vmem:[%s14949_s8 + $0x10] sm:$0xff] }
 0x5e6   : > { %11816 = vrsqrt.f32 %v4758_v8  ;;  %v5124_v8 = vld [vmem:[%s14949_s8 + $0x18] sm:$0xff] }
 0x5f0   : > { %v11817_v15 = vpop.eup %11816 }
 0x5f1   : > { %v4760_v51 = vmul.f32 %v11817_v15, %v4720_v32  ;;  %v4761_v16 = vmul.f32 %v11817_v15, %v4721_v45  ;;  %v4762_v22 = vmul.f32 %v11817_v15, %v4722_v48  ;;  %v4763_v19 = vmul.f32 %v11817_v15, %v4723_v36  ;;  %v4773_v45 = vld [vmem:[%s14947_s27 + $0x28] sm:$0xff]  ;;  %v4774_v48 = vld [vmem:[%s14947_s27 + $0x30] sm:$0xff]  ;;  %v4775_v36 = vld [vmem:[%s14947_s27 + $0x38] sm:$0xff] }
 0x5f2   : > { %v4764_v14 = vmul.f32 %v11817_v15, %v4724_v53  ;;  %v4765_v62 = vmul.f32 %v11817_v15, %v4725_v54  ;;  %v4766_v21 = vmul.f32 %v11817_v15, %v4726_v23  ;;  %v4767_v25 = vmul.f32 %v11817_v15, %v4727_v20  ;;  %v4772_v23 = vld [vmem:[%s14947_s27 + $0x20] sm:$0xff]  ;;  %v4777_v54 = vld [vmem:[%s14947_s27 + $0x48] sm:$0xff]  ;;  %v4778_v20 = vld [vmem:[%s14947_s27 + $0x50] sm:$0xff] }
 0x5f3   : > { %v11239_v7 = vpack.c.bf16 %v4761_v16, %v4760_v51  ;;  %v11243_v17 = vpack.c.bf16 %v4763_v19, %v4762_v22  ;;  %v11263_v32 = vpack.c.bf16 %v9320_v31, %v9319_v9  ;;  %v4776_v53 = vld [vmem:[%s14947_s27 + $0x40] sm:$0xff]  ;;  %v11275_v16 = vpack.c.bf16 %v5124_v8, %v5123_v10  ;;  %v5126_v19 = vld [vmem:[%s14949_s8 + $0x28] sm:$0xff]  ;;  %v9353_v8 = vld [vmem:[%s14949_s8 + $0x130] sm:$0xff] }
 0x5f4   : > { %v11247_v11 = vpack.c.bf16 %v4765_v62, %v4764_v14  ;;  %v11251_v30 = vpack.c.bf16 %v4767_v25, %v4766_v21  ;;  %v5125_v22 = vld [vmem:[%s14949_s8 + $0x20] sm:$0xff]  ;;  %v5127_v25 = vld [vmem:[%s14949_s8 + $0x30] sm:$0xff] }
 0x5f5   : > { %11240 = vmatprep.subr.bf16.mxu0 %v11239_v7  ;;  %v11279_v62 = vpack.c.bf16 %v5126_v19, %v5125_v22  ;;  %v9358_v22 = vld [vmem:[%s14949_s8 + $0x148] sm:$0xff] }
 0x5f6   : > { %11242 = vmatpush3.bf16.msra.mxu0 %v11239_v7  ;;  %v5128_v7 = vld [vmem:[%s14949_s8 + $0x38] sm:$0xff] }
 0x5f7   : > { %11244 = vmatprep.subr.bf16.mxu0 %v11243_v17 }
 0x5fa   : > { %11246 = vmatpush3.bf16.msra.mxu0 %v11243_v17 }
 0x5fb   : > { %11248 = vmatprep.subr.bf16.mxu0 %v11247_v11 }
 0x5fe   : > { %11250 = vmatpush3.bf16.msra.mxu0 %v11247_v11  ;;  %v11283_v11 = vpack.c.bf16 %v5128_v7, %v5127_v25 }
 0x5ff   : > { %11252 = vmatprep.subr.bf16.mxu0 %v11251_v30 }
 0x602   : > { %11254 = vmatpush3.bf16.msra.mxu0 %v11251_v30 }
 0x603   : > { %11256 = vmatprep.subr.bf16.mxu0 %v11255_v50 }
 0x605   : > { %10486 = vmatmul.mubr.msk.f32.vlgmr.msra.gmra.mrb[8].mxu0 %vm4696_vm4, %v4769_v49  ;;  %v9329_v49 = vld [vmem:[%s14949_s8 + $0x90] sm:$0xff] }
 0x606   : > { %10488 = vmatprep.mubr.msk.f32.mxu0 %vm4696_vm4, %v4770_v34  ;;  %11258 = vmatpush3.bf16.msra.mxu0 %v11255_v50  ;;  %v9330_v34 = vld [vmem:[%s14949_s8 + $0x98] sm:$0xff] }
 0x607   : > { %11260 = vmatprep.subr.bf16.mxu0 %v11259_v6  ;;  %v11291_v9 = vpack.c.bf16 %v9330_v34, %v9329_v49  ;;  %v9367_v49 = vld [vmem:[%s14949_s8 + $0x180] sm:$0xff]  ;;  %v9368_v34 = vld [vmem:[%s14949_s8 + $0x188] sm:$0xff] }
 0x609   : > { %10489 = vmatmul.mubr.msk.f32.gmra.mrb[10].mxu0 %vm4696_vm4, %v4771_v18  ;;  %v9331_v18 = vld [vmem:[%s14949_s8 + $0xa0] sm:$0xff] }
 0x60a   : > { %10491 = vmatprep.mubr.msk.f32.mxu0 %vm4696_vm4, %v4772_v23  ;;  %11262 = vmatpush3.bf16.msra.mxu0 %v11259_v6  ;;  %v9332_v23 = vld [vmem:[%s14949_s8 + $0xa8] sm:$0xff] }
 0x60b   : > { %11264 = vmatprep.subr.bf16.mxu0 %v11263_v32 }
 0x60d   : > { %10492 = vmatmul.mubr.msk.f32.gmra.mrb[12].mxu0 %vm4696_vm4, %v4773_v45  ;;  %v11295_v45 = vpack.c.bf16 %v9332_v23, %v9331_v18  ;;  %v9369_v23 = vld [vmem:[%s14949_s8 + $0x190] sm:$0xff] }
 0x60e   : > { %10494 = vmatprep.mubr.msk.f32.mxu0 %vm4696_vm4, %v4774_v48  ;;  %11266 = vmatpush3.bf16.msra.mxu0 %v11263_v32 }
 0x60f   : > { %11268 = vmatprep.subr.bf16.mxu0 %v11267_v52 }
 0x611   : > { %10495 = vmatmul.mubr.msk.f32.gmra.mrb[14].mxu0 %vm4696_vm4, %v4775_v36  ;;  %v9333_v36 = vld [vmem:[%s14949_s8 + $0xb0] sm:$0xff] }
 0x612   : > { %10497 = vmatprep.mubr.msk.f32.mxu0 %vm4696_vm4, %v4776_v53  ;;  %11270 = vmatpush3.bf16.msra.mxu0 %v11267_v52  ;;  %v9334_v53 = vld [vmem:[%s14949_s8 + $0xb8] sm:$0xff]  ;;  %v9349_v52 = vld [vmem:[%s14949_s8 + $0x110] sm:$0xff] }
 0x613   : > { %11272 = vmatprep.subr.bf16.mxu0 %v11271_v4 }
 0x615   : > { %10498 = vmatmul.mubr.msk.f32.gmra.mrb[16].mxu0 %vm4696_vm4, %v4777_v54 }
 0x616   : > { %10500 = vmatprep.mubr.msk.f32.mxu0 %vm4696_vm4, %v4778_v20  ;;  %v11299_v20 = vpack.c.bf16 %v9334_v53, %v9333_v36  ;;  %v9371_v53 = vld [vmem:[%s14949_s8 + $0x1a0] sm:$0xff] }
 0x619   : > { %10501 = vmatmul.mubr.msk.f32.gmra.mrb[18].mxu0 %vm4696_vm4, %v4779_v41 }
 0x61a   : > { %10503 = vmatprep.mubr.msk.f32.mxu0 %vm4696_vm4, %v4780_v55  ;;  %v9337_v55 = vld [vmem:[%s14949_s8 + $0xc0] sm:$0xff] }
 0x61d   : > { %10504 = vmatmul.mubr.msk.f32.gmra.mrb[20].mxu0 %vm4696_vm4, %v4781_v56  ;;  %v9338_v56 = vld [vmem:[%s14949_s8 + $0xc8] sm:$0xff] }
 0x61e   : > { %10506 = vmatprep.mubr.msk.f32.mxu0 %vm4696_vm4, %v4782_v33 }
 0x621   : > { %10507 = vmatmul.mubr.msk.f32.gmra.mrb[22].mxu0 %vm4696_vm4, %v4783_v59  ;;  %v11303_v59 = vpack.c.bf16 %v9338_v56, %v9337_v55 }
 0x622   : > { %10509 = vmatprep.mubr.msk.f32.mxu0 %vm4696_vm4, %v4784_v47 }
 0x625   : > { %10510 = vmatmul.mubr.msk.f32.gmra.mrb[24].mxu0 %vm4696_vm4, %v4785_v37  ;;  %v9339_v37 = vld [vmem:[%s14949_s8 + $0xd0] sm:$0xff] }
 0x626   : > { %10512 = vmatprep.mubr.msk.f32.mxu0 %vm4696_vm4, %v4786_v61  ;;  %v9340_v61 = vld [vmem:[%s14949_s8 + $0xd8] sm:$0xff] }
 0x629   : > { %10513 = vmatmul.mubr.msk.f32.gmra.mrb[26].mxu0 %vm4696_vm4, %v4787_v60 }
 0x62a   : > { %10515 = vmatprep.mubr.msk.f32.mxu0 %vm4696_vm4, %v4788_v13  ;;  %v11307_v13 = vpack.c.bf16 %v9340_v61, %v9339_v37  ;;  %v9373_v37 = vld [vmem:[%s14949_s8 + $0x1b0] sm:$0xff]  ;;  %v9374_v61 = vld [vmem:[%s14949_s8 + $0x1b8] sm:$0xff] }
 0x62d   : > { %10516 = vmatmul.mubr.msk.f32.gmra.mrb[28].mxu0 %vm4696_vm4, %v4789_v38 }
 0x62e   : > { %10518 = vmatprep.mubr.msk.f32.mxu0 %vm4696_vm4, %v4790_v46  ;;  %v9341_v46 = vld [vmem:[%s14949_s8 + $0xe0] sm:$0xff] }
 0x631   : > { %10519 = vmatmul.mubr.msk.f32.gmra.mrb[30].mxu0 %vm4696_vm4, %v4791_v39  ;;  %v9342_v39 = vld [vmem:[%s14949_s8 + $0xe8] sm:$0xff] }
 0x632   : > { %10521 = vmatprep.mubr.msk.f32.mxu0 %vm4696_vm4, %v4792_v27 }
 0x635   : > { %10522 = vmatmul.mubr.msk.f32.gmra.mrb[32].mxu0 %vm4696_vm4, %v4793_v43  ;;  %v11311_v43 = vpack.c.bf16 %v9342_v39, %v9341_v46  ;;  %v9379_v39 = vld [vmem:[%s14949_s8 + $0x1d0] sm:$0xff] }
 0x636   : > { %10524 = vmatprep.mubr.msk.f32.mxu0 %vm4696_vm4, %v4794_v26 }
 0x639   : > { %10525 = vmatmul.mubr.msk.f32.gmra.mrb[34].mxu0 %vm4696_vm4, %v4795_v44  ;;  %v9343_v44 = vld [vmem:[%s14949_s8 + $0xf0] sm:$0xff] }
 0x63a   : > { %10527 = vmatprep.mubr.msk.f32.mxu0 %vm4696_vm4, %v4796_v40  ;;  %v9344_v40 = vld [vmem:[%s14949_s8 + $0xf8] sm:$0xff] }
 0x63d   : > { %10528 = vmatmul.mubr.msk.f32.gmra.mrb[36].mxu0 %vm4696_vm4, %v4797_v0  ;;  %v11315_v0 = vpack.c.bf16 %v9344_v40, %v9343_v44  ;;  %v9381_v40 = vld [vmem:[%s14949_s8 + $0x1e0] sm:$0xff] }
 0x63e   : > { %10530 = vmatprep.mubr.msk.f32.mxu0 %vm4696_vm4, %v4798_v58  ;;  %v9347_v58 = vld [vmem:[%s14949_s8 + $0x100] sm:$0xff] }
 0x641   : > { %10531 = vmatmul.mubr.msk.f32.gmra.mrb[38].mxu0 %vm4696_vm4, %v4799_v57  ;;  %v9348_v57 = vld [vmem:[%s14949_s8 + $0x108] sm:$0xff] }
 0x642   : > { %v11319_v1 = vpack.c.bf16 %v9348_v57, %v9347_v58  ;;  %v9383_v57 = vld [vmem:[%s14949_s8 + $0x1f0] sm:$0xff] }
 0x6d8   : > { %v10487_v5 = vpop.f32.mrb[8].mxu0 }
 0x6d9   : > { %v4962_v42 = vpop.f32.mrb[9].mxu0 }
 0x6dc   : > { %v10490_v15 = vpop.f32.mrb[10].mxu0 }
 0x6dd   : > { %v4972_v51 = vpop.f32.mrb[11].mxu0 }
 0x6de   : > { %10549 = vmatprep.mubr.msk.f32.mxu0 %vm4696_vm4, %v4972_v51 }
 0x6df   : > { %10550 = vmatmul.mubr.msk.f32.vlgmr.msra.gmra.mrb[40].mxu0 %vm4696_vm4, %v10490_v15  ;;  %v9354_v15 = vld [vmem:[%s14949_s8 + $0x138] sm:$0xff] }
 0x6e0   : > { %11274 = vmatpush3.bf16.msra.mxu0 %v11271_v4  ;;  %10568 = vmatprep.mubr.msk.f32.mxu0 %vm4696_vm4, %v4962_v42  ;;  %v10493_v14 = vpop.f32.mrb[12].mxu0  ;;  %v11323_v4 = vpack.c.bf16 %v9350_v63, %v9349_v52  ;;  %v9352_v42 = vld [vmem:[%s14949_s8 + $0x128] sm:$0xff]  ;;  %v11331_v51 = vpack.c.bf16 %v9354_v15, %v9353_v8 }
 0x6e1   : > { %11276 = vmatprep.subr.bf16.mxu0 %v11275_v16  ;;  %v4982_v21 = vpop.f32.mrb[13].mxu0  ;;  %v9392_v8 = vld [vmem:[%s14949_s8 + $0x228] sm:$0xff] }
 0x6e4   : > { %11278 = vmatpush3.bf16.msra.mxu0 %v11275_v16  ;;  %v13945_v17 = vpop.f32.mrb[14].mxu0  ;;  %v9357_v16 = vld [vmem:[%s14949_s8 + $0x140] sm:$0xff] }
 0x6e5   : > { %11280 = vmatprep.subr.bf16.mxu0 %v11279_v62  ;;  %v4992_v30 = vpop.f32.mrb[15].mxu0  ;;  %v11335_v19 = vpack.c.bf16 %v9358_v22, %v9357_v16  ;;  %v9394_v16 = vld [vmem:[%s14949_s8 + $0x238] sm:$0xff] }
 0x6e8   : > { %11282 = vmatpush3.bf16.msra.mxu0 %v11279_v62  ;;  %v13953_v50 = vpop.f32.mrb[16].mxu0  ;;  %v9359_v62 = vld [vmem:[%s14949_s8 + $0x150] sm:$0xff] }
 0x6e9   : > { %11284 = vmatprep.subr.bf16.mxu0 %v11283_v11  ;;  %v13955_v3 = vpop.f32.mrb[17].mxu0 }
 0x6ec   : > { %11286 = vmatpush3.bf16.msra.mxu0 %v11283_v11  ;;  %v13963_v6 = vpop.f32.mrb[18].mxu0  ;;  %v9362_v11 = vld [vmem:[%s14949_s8 + $0x168] sm:$0xff] }
 0x6ed   : > { %11288 = vmatprep.subr.bf16.mxu0 %v11287_v28  ;;  %v13965_v31 = vpop.f32.mrb[19].mxu0 }
 0x6ef   : > { %10569 = vmatmul.mubr.msk.f32.vlgmr.msra.gmra.mrb[40].mxu0 %vm4696_vm4, %v10487_v5  ;;  %v9351_v5 = vld [vmem:[%s14949_s8 + $0x120] sm:$0xff] }
 0x6f0   : > { %11290 = vmatpush3.bf16.msra.mxu0 %v11287_v28  ;;  %10587 = vmatprep.mubr.msk.f32.mxu0 %vm4696_vm4, %v4982_v21  ;;  %v13975_v32 = vpop.f32.mrb[20].mxu0  ;;  %v11327_v10 = vpack.c.bf16 %v9352_v42, %v9351_v5  ;;  %v9360_v21 = vld [vmem:[%s14949_s8 + $0x158] sm:$0xff] }
 0x6f1   : > { %11292 = vmatprep.subr.bf16.mxu0 %v11291_v9  ;;  %v13977_v48 = vpop.f32.mrb[21].mxu0  ;;  %v11339_v7 = vpack.c.bf16 %v9360_v21, %v9359_v62  ;;  %v9390_v5 = vld [vmem:[%s14949_s8 + $0x218] sm:$0xff]  ;;  %v9399_v62 = vld [vmem:[%s14949_s8 + $0x250] sm:$0xff] }
 0x6f2   : > { %v9400_v21 = vld [vmem:[%s14949_s8 + $0x258] sm:$0xff] }
 0x6f4   : > { %11294 = vmatpush3.bf16.msra.mxu0 %v11291_v9  ;;  %v13985_v54 = vpop.f32.mrb[22].mxu0 }
 0x6f5   : > { %11296 = vmatprep.subr.bf16.mxu0 %v11295_v45  ;;  %v13987_v41 = vpop.f32.mrb[23].mxu0 }
 0x6f8   : > { %11298 = vmatpush3.bf16.msra.mxu0 %v11295_v45  ;;  %v13995_v33 = vpop.f32.mrb[24].mxu0  ;;  %v9370_v45 = vld [vmem:[%s14949_s8 + $0x198] sm:$0xff] }
 0x6f9   : > { %11300 = vmatprep.subr.bf16.mxu0 %v11299_v20  ;;  %v13997_v47 = vpop.f32.mrb[25].mxu0  ;;  %v11355_v36 = vpack.c.bf16 %v9370_v45, %v9369_v23  ;;  %v9411_v45 = vld [vmem:[%s14949_s8 + $0x2a0] sm:$0xff] }
 0x6fc   : > { %11302 = vmatpush3.bf16.msra.mxu0 %v11299_v20  ;;  %v14005_v60 = vpop.f32.mrb[26].mxu0  ;;  %v9372_v20 = vld [vmem:[%s14949_s8 + $0x1a8] sm:$0xff] }
 0x6fd   : > { %11304 = vmatprep.subr.bf16.mxu0 %v11303_v59  ;;  %v14007_v38 = vpop.f32.mrb[27].mxu0 }
 0x6ff   : > { %10588 = vmatmul.mubr.msk.f32.vlgmr.msra.gmra.mrb[40].mxu0 %vm4696_vm4, %v10493_v14 }
 0x700   : > { %11306 = vmatpush3.bf16.msra.mxu0 %v11303_v59  ;;  %10606 = vmatprep.mubr.msk.f32.mxu0 %vm4696_vm4, %v4992_v30  ;;  %v14017_v27 = vpop.f32.mrb[28].mxu0  ;;  %v11359_v59 = vpack.c.bf16 %v9372_v20, %v9371_v53  ;;  %v9413_v20 = vld [vmem:[%s14949_s8 + $0x2b0] sm:$0xff] }
 0x701   : > { %11308 = vmatprep.subr.bf16.mxu0 %v11307_v13  ;;  %v14019_v26 = vpop.f32.mrb[29].mxu0 }
 0x704   : > { %11310 = vmatpush3.bf16.msra.mxu0 %v11307_v13  ;;  %v14033_v2 = vpop.f32.mrb[30].mxu0  ;;  %v11363_v13 = vpack.c.bf16 %v9374_v61, %v9373_v37 }
 0x705   : > { %11312 = vmatprep.subr.bf16.mxu0 %v11311_v43  ;;  %v14041_v12 = vpop.f32.mrb[31].mxu0 }
 0x708   : > { %11314 = vmatpush3.bf16.msra.mxu0 %v11311_v43  ;;  %v14065_v14 = vpop.f32.mrb[32].mxu0  ;;  %v9380_v43 = vld [vmem:[%s14949_s8 + $0x1d8] sm:$0xff] }
 0x709   : > { %11316 = vmatprep.subr.bf16.mxu0 %v11315_v0  ;;  %v14073_v25 = vpop.f32.mrb[33].mxu0  ;;  %v11371_v44 = vpack.c.bf16 %v9380_v43, %v9379_v39  ;;  %v9422_v39 = vld [vmem:[%s14949_s8 + $0x2e8] sm:$0xff] }
 0x70c   : > { %11318 = vmatpush3.bf16.msra.mxu0 %v11315_v0  ;;  %v14091_v28 = vpop.f32.mrb[34].mxu0  ;;  %v9382_v0 = vld [vmem:[%s14949_s8 + $0x1e8] sm:$0xff] }
 0x70d   : > { %11320 = vmatprep.subr.bf16.mxu0 %v11319_v1  ;;  %v11375_v58 = vpack.c.bf16 %v9382_v0, %v9381_v40  ;;  %v9424_v40 = vld [vmem:[%s14949_s8 + $0x2f8] sm:$0xff] }
 0x70f   : > { %10607 = vmatmul.mubr.msk.f32.vlgmr.msra.gmra.mrb[40].mxu0 %vm4696_vm4, %v13945_v17  ;;  %v9361_v17 = vld [vmem:[%s14949_s8 + $0x160] sm:$0xff] }
 0x710   : > { %11322 = vmatpush3.bf16.msra.mxu0 %v11319_v1  ;;  %10625 = vmatprep.mubr.msk.f32.mxu0 %vm4696_vm4, %v13955_v3  ;;  %v11343_v30 = vpack.c.bf16 %v9362_v11, %v9361_v17  ;;  %v11347_v3 = vpack.c.bf16 %v9364_v29, %v9363_v24  ;;  %v9384_v1 = vld [vmem:[%s14949_s8 + $0x1f8] sm:$0xff]  ;;  %v9401_v17 = vld [vmem:[%s14949_s8 + $0x260] sm:$0xff]  ;;  %v9402_v11 = vld [vmem:[%s14949_s8 + $0x268] sm:$0xff] }
 0x711   : > { %11324 = vmatprep.subr.bf16.mxu0 %v11323_v4  ;;  %v11379_v52 = vpack.c.bf16 %v9384_v1, %v9383_v57  ;;  %v9403_v24 = vld [vmem:[%s14949_s8 + $0x270] sm:$0xff]  ;;  %v9404_v29 = vld [vmem:[%s14949_s8 + $0x278] sm:$0xff] }
 0x712   : > { %v9429_v57 = vld [vmem:[%s14949_s8 + $0x310] sm:$0xff]  ;;  %v9430_v1 = vld [vmem:[%s14949_s8 + $0x318] sm:$0xff] }
 0x714   : > { %11326 = vmatpush3.bf16.msra.mxu0 %v11323_v4  ;;  %v9389_v4 = vld [vmem:[%s14949_s8 + $0x210] sm:$0xff] }
 0x715   : > { %11328 = vmatprep.subr.bf16.mxu0 %v11327_v10  ;;  %v11387_v42 = vpack.c.bf16 %v9390_v5, %v9389_v4  ;;  %v9433_v4 = vld [vmem:[%s14949_s8 + $0x330] sm:$0xff]  ;;  %v9434_v5 = vld [vmem:[%s14949_s8 + $0x338] sm:$0xff] }
 0x718   : > { %11330 = vmatpush3.bf16.msra.mxu0 %v11327_v10  ;;  %v9391_v10 = vld [vmem:[%s14949_s8 + $0x220] sm:$0xff] }
 0x719   : > { %11332 = vmatprep.subr.bf16.mxu0 %v11331_v51  ;;  %v11391_v15 = vpack.c.bf16 %v9392_v8, %v9391_v10  ;;  %v9439_v8 = vld [vmem:[%s14949_s8 + $0x350] sm:$0xff] }
 0x71c   : > { %11334 = vmatpush3.bf16.msra.mxu0 %v11331_v51  ;;  %v9393_v51 = vld [vmem:[%s14949_s8 + $0x230] sm:$0xff] }
 0x71d   : > { %11336 = vmatprep.subr.bf16.mxu0 %v11335_v19  ;;  %v11395_v22 = vpack.c.bf16 %v9394_v16, %v9393_v51  ;;  %v9441_v16 = vld [vmem:[%s14949_s8 + $0x360] sm:$0xff] }
 0x71f   : > { %10626 = vmatmul.mubr.msk.f32.vlgmr.msra.gmra.mrb[40].mxu0 %vm4696_vm4, %v13953_v50  ;;  %v14093_v50 = vpop.f32.mrb[35].mxu0 }
 0x720   : > { %11338 = vmatpush3.bf16.msra.mxu0 %v11335_v19  ;;  %10644 = vmatprep.mubr.msk.f32.mxu0 %vm4696_vm4, %v13965_v31  ;;  %v14101_v9 = vpop.f32.mrb[36].mxu0  ;;  %v11351_v31 = vpack.c.bf16 %v9368_v34, %v9367_v49  ;;  %v9409_v34 = vld [vmem:[%s14949_s8 + $0x290] sm:$0xff] }
 0x721   : > { %11340 = vmatprep.subr.bf16.mxu0 %v11339_v7  ;;  %v14103_v18 = vpop.f32.mrb[37].mxu0 }
 0x722   : > { %v14117_v55 = vpop.f32.mrb[38].mxu0 }
 0x723   : > { %v14121_v56 = vpop.f32.mrb[39].mxu0 }
 0x724   : > { %11342 = vmatpush3.bf16.msra.mxu0 %v11339_v7  ;;  %v11403_v7 = vpack.c.bf16 %v9400_v21, %v9399_v62 }
 0x725   : > { %11344 = vmatprep.subr.bf16.mxu0 %v11343_v30 }
 0x728   : > { %11346 = vmatpush3.bf16.msra.mxu0 %v11343_v30  ;;  %v11407_v30 = vpack.c.bf16 %v9402_v11, %v9401_v17  ;;  %v9450_v17 = vld [vmem:[%s14949_s8 + $0x398] sm:$0xff] }
 0x729   : > { %11348 = vmatprep.subr.bf16.mxu0 %v11347_v3 }
 0x72c   : > { %11350 = vmatpush3.bf16.msra.mxu0 %v11347_v3  ;;  %v11411_v3 = vpack.c.bf16 %v9404_v29, %v9403_v24  ;;  %v9452_v24 = vld [vmem:[%s14949_s8 + $0x3a8] sm:$0xff] }
 0x72d   : > { %11352 = vmatprep.subr.bf16.mxu0 %v11351_v31 }
 0x72f   : > { %10645 = vmatmul.mubr.msk.f32.vlgmr.msra.gmra.mrb[40].mxu0 %vm4696_vm4, %v13963_v6  ;;  %v9377_v6 = vld [vmem:[%s14949_s8 + $0x1c0] sm:$0xff] }
 0x730   : > { %11354 = vmatpush3.bf16.msra.mxu0 %v11351_v31  ;;  %10663 = vmatprep.mubr.msk.f32.mxu0 %vm4696_vm4, %v13977_v48  ;;  %v9378_v48 = vld [vmem:[%s14949_s8 + $0x1c8] sm:$0xff]  ;;  %v9410_v31 = vld [vmem:[%s14949_s8 + $0x298] sm:$0xff] }
 0x731   : > { %11356 = vmatprep.subr.bf16.mxu0 %v11355_v36  ;;  %v11367_v46 = vpack.c.bf16 %v9378_v48, %v9377_v6  ;;  %v11419_v23 = vpack.c.bf16 %v9410_v31, %v9409_v34  ;;  %v9420_v6 = vld [vmem:[%s14949_s8 + $0x2d8] sm:$0xff]  ;;  %v9459_v34 = vld [vmem:[%s14949_s8 + $0x3d0] sm:$0xff] }
 0x732   : > { %v9460_v31 = vld [vmem:[%s14949_s8 + $0x3d8] sm:$0xff] }
 0x734   : > { %11358 = vmatpush3.bf16.msra.mxu0 %v11355_v36  ;;  %v9412_v36 = vld [vmem:[%s14949_s8 + $0x2a8] sm:$0xff] }
 0x735   : > { %11360 = vmatprep.subr.bf16.mxu0 %v11359_v59  ;;  %v11423_v53 = vpack.c.bf16 %v9412_v36, %v9411_v45  ;;  %v9461_v45 = vld [vmem:[%s14949_s8 + $0x3e0] sm:$0xff]  ;;  %v9462_v36 = vld [vmem:[%s14949_s8 + $0x3e8] sm:$0xff] }
 0x738   : > { %11362 = vmatpush3.bf16.msra.mxu0 %v11359_v59  ;;  %v9414_v59 = vld [vmem:[%s14949_s8 + $0x2b8] sm:$0xff] }
 0x739   : > { %11364 = vmatprep.subr.bf16.mxu0 %v11363_v13  ;;  %v11427_v37 = vpack.c.bf16 %v9414_v59, %v9413_v20  ;;  %v9463_v20 = vld [vmem:[%s14949_s8 + $0x3f0] sm:$0xff]  ;;  %v9464_v59 = vld [vmem:[%s14949_s8 + $0x3f8] sm:$0xff] }
 0x73c   : > { %11366 = vmatpush3.bf16.msra.mxu0 %v11363_v13  ;;  %v9419_v13 = vld [vmem:[%s14949_s8 + $0x2d0] sm:$0xff] }
 0x73d   : > { %11368 = vmatprep.subr.bf16.mxu0 %v11367_v46  ;;  %v11435_v48 = vpack.c.bf16 %v9420_v6, %v9419_v13 }
 0x73f   : > { %10664 = vmatmul.mubr.msk.f32.vlgmr.msra.gmra.mrb[40].mxu0 %vm4696_vm4, %v13975_v32  ;;  %v9387_v32 = vld [vmem:[%s14949_s8 + $0x200] sm:$0xff] }
 0x740   : > { %11370 = vmatpush3.bf16.msra.mxu0 %v11367_v46  ;;  %10682 = vmatprep.mubr.msk.f32.mxu0 %vm4696_vm4, %v13987_v41  ;;  %v9388_v41 = vld [vmem:[%s14949_s8 + $0x208] sm:$0xff]  ;;  %v9421_v46 = vld [vmem:[%s14949_s8 + $0x2e0] sm:$0xff] }
 0x741   : > { %11372 = vmatprep.subr.bf16.mxu0 %v11371_v44  ;;  %v11383_v63 = vpack.c.bf16 %v9388_v41, %v9387_v32  ;;  %v11439_v43 = vpack.c.bf16 %v9422_v39, %v9421_v46  ;;  %v9431_v32 = vld [vmem:[%s14949_s8 + $0x320] sm:$0xff]  ;;  %v9432_v41 = vld [vmem:[%s14949_s8 + $0x328] sm:$0xff] }
 0x744   : > { %11374 = vmatpush3.bf16.msra.mxu0 %v11371_v44  ;;  %v9423_v44 = vld [vmem:[%s14949_s8 + $0x2f0] sm:$0xff] }
 0x745   : > { %11376 = vmatprep.subr.bf16.mxu0 %v11375_v58  ;;  %v11443_v0 = vpack.c.bf16 %v9424_v40, %v9423_v44 }
 0x748   : > { %11378 = vmatpush3.bf16.msra.mxu0 %v11375_v58 }
 0x749   : > { %11380 = vmatprep.subr.bf16.mxu0 %v11379_v52 }
 0x74c   : > { %11382 = vmatpush3.bf16.msra.mxu0 %v11379_v52  ;;  %v11451_v52 = vpack.c.bf16 %v9430_v1, %v9429_v57 }
 0x74d   : > { %11384 = vmatprep.subr.bf16.mxu0 %v11383_v63 }
 0x74f   : > { %10683 = vmatmul.mubr.msk.f32.vlgmr.msra.gmra.mrb[40].mxu0 %vm4696_vm4, %v13985_v54  ;;  %v9397_v54 = vld [vmem:[%s14949_s8 + $0x240] sm:$0xff] }
 0x750   : > { %11386 = vmatpush3.bf16.msra.mxu0 %v11383_v63  ;;  %10701 = vmatprep.mubr.msk.f32.mxu0 %vm4696_vm4, %v13997_v47  ;;  %v9398_v47 = vld [vmem:[%s14949_s8 + $0x248] sm:$0xff]  ;;  %v11455_v63 = vpack.c.bf16 %v9432_v41, %v9431_v32 }
 0x751   : > { %11388 = vmatprep.subr.bf16.mxu0 %v11387_v42  ;;  %v11399_v19 = vpack.c.bf16 %v9398_v47, %v9397_v54  ;;  %v9443_v47 = vld [vmem:[%s14949_s8 + $0x370] sm:$0xff] }
 0x754   : > { %11390 = vmatpush3.bf16.msra.mxu0 %v11387_v42  ;;  %v11459_v42 = vpack.c.bf16 %v9434_v5, %v9433_v4 }
 0x755   : > { %11392 = vmatprep.subr.bf16.mxu0 %v11391_v15 }
 0x758   : > { %11394 = vmatpush3.bf16.msra.mxu0 %v11391_v15  ;;  %v9440_v15 = vld [vmem:[%s14949_s8 + $0x358] sm:$0xff] }
 0x759   : > { %11396 = vmatprep.subr.bf16.mxu0 %v11395_v22  ;;  %v11467_v51 = vpack.c.bf16 %v9440_v15, %v9439_v8 }
 0x75c   : > { %11398 = vmatpush3.bf16.msra.mxu0 %v11395_v22  ;;  %v9442_v22 = vld [vmem:[%s14949_s8 + $0x368] sm:$0xff] }
 0x75d   : > { %11400 = vmatprep.subr.bf16.mxu0 %v11399_v19  ;;  %v11471_v54 = vpack.c.bf16 %v9442_v22, %v9441_v16 }
 0x75f   : > { %10702 = vmatmul.mubr.msk.f32.vlgmr.msra.gmra.mrb[40].mxu0 %vm4696_vm4, %v13995_v33  ;;  %v9407_v33 = vld [vmem:[%s14949_s8 + $0x280] sm:$0xff] }
 0x760   : > { %11402 = vmatpush3.bf16.msra.mxu0 %v11399_v19  ;;  %10720 = vmatprep.mubr.msk.f32.mxu0 %vm4696_vm4, %v14007_v38  ;;  %v9408_v38 = vld [vmem:[%s14949_s8 + $0x288] sm:$0xff]  ;;  %v9444_v19 = vld [vmem:[%s14949_s8 + $0x378] sm:$0xff] }
 0x761   : > { %11404 = vmatprep.subr.bf16.mxu0 %v11403_v7  ;;  %v11415_v49 = vpack.c.bf16 %v9408_v38, %v9407_v33  ;;  %v11475_v62 = vpack.c.bf16 %v9444_v19, %v9443_v47  ;;  %v9454_v33 = vld [vmem:[%s14949_s8 + $0x3b8] sm:$0xff] }
 0x764   : > { %11406 = vmatpush3.bf16.msra.mxu0 %v11403_v7  ;;  %v9449_v7 = vld [vmem:[%s14949_s8 + $0x390] sm:$0xff] }
 0x765   : > { %11408 = vmatprep.subr.bf16.mxu0 %v11407_v30  ;;  %v11483_v11 = vpack.c.bf16 %v9450_v17, %v9449_v7  ;;  %v6634_v7 = vld [vmem:[%s14950_s10 + $0x8] sm:$0xff]  ;;  %v6648_v17 = vld [vmem:[%s14950_s10 + $0x78] sm:$0xff] }
 0x768   : > { %11410 = vmatpush3.bf16.msra.mxu0 %v11407_v30  ;;  %v9451_v30 = vld [vmem:[%s14949_s8 + $0x3a0] sm:$0xff] }
 0x769   : > { %11412 = vmatprep.subr.bf16.mxu0 %v11411_v3  ;;  %v11487_v29 = vpack.c.bf16 %v9452_v24, %v9451_v30  ;;  %v6635_v30 = vld [vmem:[%s14950_s10 + $0x10] sm:$0xff]  ;;  %v6636_v24 = vld [vmem:[%s14950_s10 + $0x18] sm:$0xff] }
 0x76c   : > { %11414 = vmatpush3.bf16.msra.mxu0 %v11411_v3  ;;  %v9453_v3 = vld [vmem:[%s14949_s8 + $0x3b0] sm:$0xff] }
 0x76d   : > { %11416 = vmatprep.subr.bf16.mxu0 %v11415_v49  ;;  %v11491_v38 = vpack.c.bf16 %v9454_v33, %v9453_v3  ;;  %v6638_v3 = vld [vmem:[%s14950_s10 + $0x28] sm:$0xff]  ;;  %v6639_v33 = vld [vmem:[%s14950_s10 + $0x30] sm:$0xff] }
 0x76f   : > { %10721 = vmatmul.mubr.msk.f32.vlgmr.msra.gmra.mrb[40].mxu0 %vm4696_vm4, %v14005_v60  ;;  %v9417_v60 = vld [vmem:[%s14949_s8 + $0x2c0] sm:$0xff] }
 0x770   : > { %11418 = vmatpush3.bf16.msra.mxu0 %v11415_v49  ;;  %10739 = vmatprep.mubr.msk.f32.mxu0 %vm4696_vm4, %v14019_v26  ;;  %v9418_v26 = vld [vmem:[%s14949_s8 + $0x2c8] sm:$0xff] }
 0x771   : > { %11420 = vmatprep.subr.bf16.mxu0 %v11419_v23  ;;  %v11431_v61 = vpack.c.bf16 %v9418_v26, %v9417_v60  ;;  %v9467_v60 = vld [vmem:[%s14951_s9] ss:$0 sm:$0xff]  ;;  %s11951_s9 = smov [#allocation2]  }
 0x772   : > { %s11828_s6 = sshll.u32 %s11951_s9, 4  ;;  %s11829_s6 = int_to_ptr.vmem [resolvable:$false] %s11828_s6 }
 0x773   : > { %s11830_s4 = scalar_lea.vmem %s11829_s6, 32  ;;  %p11831_p0 = scmp.lt.s32.totalorder %s14757_s3, %s11829_s6 }
 0x774   : > { %11422 = vmatpush3.bf16.msra.mxu0 %v11419_v23  ;;  %v11499_v23 = vpack.c.bf16 %v9460_v31, %v9459_v34  ;;  %v6644_v34 = vld [vmem:[%s14950_s10 + $0x58] sm:$0xff]  ;;  %v6645_v31 = vld [vmem:[%s14950_s10 + $0x60] sm:$0xff]  ;;  %p11832_p1 = scmp.lt.s32.totalorder %s11830_s4, %s11824_s25 }
 0x775   : > { %11424 = vmatprep.subr.bf16.mxu0 %v11423_v53 }
 0x776   : > { %p11833_p2 = por %p11832_p1, %p11831_p0 }
 0x778   : > { %11426 = vmatpush3.bf16.msra.mxu0 %v11423_v53  ;;  %v11503_v53 = vpack.c.bf16 %v9462_v36, %v9461_v45  ;;  %v11950_v45 = vmov 0.0   ;;  %v9506_v36 = vld [vmem:[%s14952_s11 + $0x80] sm:$0xff]  ;;  %p11834_p3 = pnand %p11833_p2, %p11827_p13 }
 0x779   : > { %11428 = vmatprep.subr.bf16.mxu0 %v11427_v37 }
 0x77c   : > { %11430 = vmatpush3.bf16.msra.mxu0 %v11427_v37  ;;  %v11507_v37 = vpack.c.bf16 %v9464_v59, %v9463_v20  ;;  %v6842_v59 = vld [vmem:[%s14952_s11] sm:$0xff] }
 0x77d   : > { %11432 = vmatprep.subr.bf16.mxu0 %v11431_v61 }
 0x77f   : > { %10740 = vmatmul.mubr.msk.f32.vlgmr.msra.gmra.mrb[40].mxu0 %vm4696_vm4, %v14017_v27  ;;  %v9427_v27 = vld [vmem:[%s14949_s8 + $0x300] sm:$0xff] }
 0x780   : > { %11434 = vmatpush3.bf16.msra.mxu0 %v11431_v61  ;;  %10758 = vmatprep.mubr.msk.f32.mxu0 %vm4696_vm4, %v14041_v12  ;;  %v9428_v12 = vld [vmem:[%s14949_s8 + $0x308] sm:$0xff] }
 0x781   : > { %11436 = vmatprep.subr.bf16.mxu0 %v11435_v48  ;;  %v11447_v58 = vpack.c.bf16 %v9428_v12, %v9427_v27 }
 0x784   : > { %11438 = vmatpush3.bf16.msra.mxu0 %v11435_v48 }
 0x785   : > { %11440 = vmatprep.subr.bf16.mxu0 %v11439_v43 }
 0x788   : > { %11442 = vmatpush3.bf16.msra.mxu0 %v11439_v43 }
 0x789   : > { %11444 = vmatprep.subr.bf16.mxu0 %v11443_v0 }
 0x78c   : > { %11446 = vmatpush3.bf16.msra.mxu0 %v11443_v0 }
 0x78d   : > { %11448 = vmatprep.subr.bf16.mxu0 %v11447_v58 }
 0x78f   : > { %10759 = vmatmul.mubr.msk.f32.vlgmr.msra.gmra.mrb[40].mxu0 %vm4696_vm4, %v14033_v2  ;;  %v9437_v2 = vld [vmem:[%s14949_s8 + $0x340] sm:$0xff] }
 0x790   : > { %11450 = vmatpush3.bf16.msra.mxu0 %v11447_v58  ;;  %10777 = vmatprep.mubr.msk.f32.mxu0 %vm4696_vm4, %v14073_v25  ;;  %v9438_v25 = vld [vmem:[%s14949_s8 + $0x348] sm:$0xff] }
 0x791   : > { %11452 = vmatprep.subr.bf16.mxu0 %v11451_v52  ;;  %v11463_v10 = vpack.c.bf16 %v9438_v25, %v9437_v2 }
 0x794   : > { %11454 = vmatpush3.bf16.msra.mxu0 %v11451_v52 }
 0x795   : > { %11456 = vmatprep.subr.bf16.mxu0 %v11455_v63 }
 0x798   : > { %11458 = vmatpush3.bf16.msra.mxu0 %v11455_v63 }
 0x799   : > { %11460 = vmatprep.subr.bf16.mxu0 %v11459_v42 }
 0x79c   : > { %11462 = vmatpush3.bf16.msra.mxu0 %v11459_v42 }
 0x79d   : > { %11464 = vmatprep.subr.bf16.mxu0 %v11463_v10 }
 0x79f   : > { %10778 = vmatmul.mubr.msk.f32.vlgmr.msra.gmra.mrb[40].mxu0 %vm4696_vm4, %v14065_v14  ;;  %v9447_v14 = vld [vmem:[%s14949_s8 + $0x380] sm:$0xff] }
 0x7a0   : > { %11466 = vmatpush3.bf16.msra.mxu0 %v11463_v10  ;;  %10796 = vmatprep.mubr.msk.f32.mxu0 %vm4696_vm4, %v14093_v50  ;;  %v9448_v50 = vld [vmem:[%s14949_s8 + $0x388] sm:$0xff] }
 0x7a1   : > { %11468 = vmatprep.subr.bf16.mxu0 %v11467_v51  ;;  %v11479_v21 = vpack.c.bf16 %v9448_v50, %v9447_v14  ;;  %v9484_v50 = vld [vmem:[%s14952_s11 + $0x10] sm:$0xff] }
 0x7a4   : > { %11470 = vmatpush3.bf16.msra.mxu0 %v11467_v51 }
 0x7a5   : > { %11472 = vmatprep.subr.bf16.mxu0 %v11471_v54 }
 0x7a8   : > { %11474 = vmatpush3.bf16.msra.mxu0 %v11471_v54 }
 0x7a9   : > { %11476 = vmatprep.subr.bf16.mxu0 %v11475_v62 }
 0x7ac   : > { %11478 = vmatpush3.bf16.msra.mxu0 %v11475_v62 }
 0x7ad   : > { %11480 = vmatprep.subr.bf16.mxu0 %v11479_v21 }
 0x7af   : > { %10797 = vmatmul.mubr.msk.f32.vlgmr.msra.gmra.mrb[40].mxu0 %vm4696_vm4, %v14091_v28  ;;  %v9457_v28 = vld [vmem:[%s14949_s8 + $0x3c0] sm:$0xff] }
 0x7b0   : > { %11482 = vmatpush3.bf16.msra.mxu0 %v11479_v21  ;;  %10815 = vmatprep.mubr.msk.f32.mxu0 %vm4696_vm4, %v14103_v18  ;;  %v9458_v18 = vld [vmem:[%s14949_s8 + $0x3c8] sm:$0xff]  ;;  %v9485_v21 = vld [vmem:[%s14952_s11 + $0x18] sm:$0xff]  ;;  %s14765_s8 = sshll.u32 %s14918_s1, 4  ;;  %s14798_s8 = int_to_ptr.vmem [resolvable:$true] %s14765_s8 }
 0x7b1   : > { %11484 = vmatprep.subr.bf16.mxu0 %v11483_v11  ;;  %v11495_v49 = vpack.c.bf16 %v9458_v18, %v9457_v28  ;;  %v6641_v28 = vld [vmem:[%s14950_s10 + $0x40] sm:$0xff]  ;;  %v6642_v18 = vld [vmem:[%s14950_s10 + $0x48] sm:$0xff] }
 0x7b4   : > { %11486 = vmatpush3.bf16.msra.mxu0 %v11483_v11  ;;  %v11516_v11 = vpack.c.bf16 %v9485_v21, %v9484_v50  ;;  %v9509_v21 = vld [vmem:[%s14952_s11 + $0x90] sm:$0xff] }
 0x7b5   : > { %11488 = vmatprep.subr.bf16.mxu0 %v11487_v29 }
 0x7b8   : > { %11490 = vmatpush3.bf16.msra.mxu0 %v11487_v29  ;;  %v6637_v29 = vld [vmem:[%s14950_s10 + $0x20] sm:$0xff] }
 0x7b9   : > { %11492 = vmatprep.subr.bf16.mxu0 %v11491_v38 }
 0x7bc   : > { %11494 = vmatpush3.bf16.msra.mxu0 %v11491_v38  ;;  %v6640_v38 = vld [vmem:[%s14950_s10 + $0x38] sm:$0xff] }
 0x7bd   : > { %11496 = vmatprep.subr.bf16.mxu0 %v11495_v49 }
 0x7bf   : > { %10816 = vmatmul.mubr.msk.f32.vlgmr.msra.gmra.mrb[40].mxu0 %vm4696_vm4, %v14101_v9  ;;  %v6633_v9 = vld [vmem:[%s14950_s10] sm:$0xff] }
 0x7c0   : > { %11498 = vmatpush3.bf16.msra.mxu0 %v11495_v49  ;;  %10834 = vmatprep.mubr.msk.f32.mxu0 %vm4696_vm4, %v14121_v56  ;;  %v6647_v56 = vld [vmem:[%s14950_s10 + $0x70] sm:$0xff] }
 0x7c1   : > { %11500 = vmatprep.subr.bf16.mxu0 %v11499_v23  ;;  %10862 = vmatprep.mubr.msk.f32.mxu1 %vm6603_vm13, %v6647_v56  ;;  %v6643_v49 = vld [vmem:[%s14950_s10 + $0x50] sm:$0xff]  ;;  %v9488_v56 = vld [vmem:[%s14952_s11 + $0x20] sm:$0xff] }
 0x7c4   : > { %11502 = vmatpush3.bf16.msra.mxu0 %v11499_v23  ;;  %v6646_v23 = vld [vmem:[%s14950_s10 + $0x68] sm:$0xff] }
 0x7c5   : > { %11504 = vmatprep.subr.bf16.mxu0 %v11503_v53 }
 0x7c8   : > { %11506 = vmatpush3.bf16.msra.mxu0 %v11503_v53  ;;  %v9507_v53 = vld [vmem:[%s14952_s11 + $0x88] sm:$0xff] }
 0x7c9   : > { %11508 = vmatprep.subr.bf16.mxu0 %v11507_v37  ;;  %v11540_v20 = vpack.c.bf16 %v9507_v53, %v9506_v36  ;;  %v8106_v36 = vld [vmem:[%s14892_s13 + $0x8] sm:$0xff] }
 0x7cc   : > { %11510 = vmatpush3.bf16.msra.mxu0 %v11507_v37  ;;  %v6843_v37 = vld [vmem:[%s14952_s11 + $0x8] sm:$0xff] }
 0x7cf   : > { %10835 = vmatmul.mubr.msk.f32.vlgmr.msra.gmra.mrb[40].mxu0 %vm4696_vm4, %v14117_v55 }
 0x7d0   : > { %10841 = vmatprep.mubr.msk.f32.mxu0 %vm6603_vm13, %v6633_v9  ;;  %v11519_v9 = vpack.c.bf16 %v6843_v37, %v6842_v59  ;;  %v8191_v59 = vld [vmem:[%s14894_s15 + $0x8] sm:$0xff] }
 0x8a2   : > { %v10836_v26 = vpop.f32.mrb[40].mxu0 }
 0x8a3   : > { %v6596_v61 = vadd.f32 %v10836_v26, %v9467_v60  ;;  %v6577_v55 = vpop.f32.mrb[41].mxu0 }
 0x8a4   : > { %v6595_v13 = vadd.f32 %v9467_v60, %v6577_v55  ;;  %v9489_v60 = vld [vmem:[%s14952_s11 + $0x28] sm:$0xff] }
 0x8a5   : > { %vm6598_vm14 = vcmp.gt.f32.partialorder %v6596_v61, 0.0  ;;  %v6600_v6 = vmul.f32 0.2, %v6596_v61 }
 0x8a6   : > { %vm6597_vm15 = vcmp.gt.f32.partialorder %v6595_v13, 0.0  ;;  %v6599_v48 = vmul.f32 0.2, %v6595_v13 }
 0x8a7   : > { %v6602_v46 = vsel %vm6598_vm14, %v6596_v61, %v6600_v6  ;;  %v11522_v6 = vpack.c.bf16 %v9489_v60, %v9488_v56 }
 0x8a8   : > { %v6605_v39 = vsel %vm6603_vm13, %v6602_v46, 0.0  ;;  %v6601_v43 = vsel %vm6597_vm15, %v6595_v13, %v6599_v48  ;;  %v9491_v48 = vld [vmem:[%s14952_s11 + $0x30] sm:$0xff] }
 0x8a9   : > { %v6604_v44 = vsel %vm6603_vm13, %v6601_v43, 0.0 }
 0x8aa   : > { %v6606_v40 = vadd.f32 %v6605_v39, %v6604_v44 }
 0x8ac   : > { %v6607_v0 = vrot.slane %v6606_v40, 4 }
 0x8ae   : > { %v6608_v27 = vadd.f32 %v6607_v0, %v6606_v40  ;;  %v9494_v40 = vld [vmem:[%s14952_s11 + $0x40] sm:$0xff]  ;;  %v9495_v0 = vld [vmem:[%s14952_s11 + $0x48] sm:$0xff] }
 0x8b0   : > { %v6609_v12 = vrot.slane %v6608_v27, 2 }
 0x8b2   : > { %v6610_v58 = vadd.f32 %v6609_v12, %v6608_v27 }
 0x8b4   : > { %v6611_v57 = vrot.slane %v6610_v58, 1 }
 0x8b6   : > { %v6612_v1 = vadd.f32 %v6611_v57, %v6610_v58  ;;  %v11528_v58 = vpack.c.bf16 %v9495_v0, %v9494_v40  ;;  %v9497_v57 = vld [vmem:[%s14952_s11 + $0x50] sm:$0xff] }
 0x8b8   : > { %v6614_v52 = vmul.f32 0.0625, %v6612_v1  ;;  %v9498_v1 = vld [vmem:[%s14952_s11 + $0x58] sm:$0xff] }
 0x8ba   : > { %v6615_v32 = vsub.f32 %v6601_v43, %v6614_v52  ;;  %v6616_v41 = vsub.f32 %v6602_v46, %v6614_v52  ;;  %v9492_v46 = vld [vmem:[%s14952_s11 + $0x38] sm:$0xff] }
 0x8bb   : > { %v11525_v44 = vpack.c.bf16 %v9492_v46, %v9491_v48 }
 0x8bc   : > { %v6617_v63 = vmul.f32 %v6615_v32, %v6615_v32  ;;  %v6618_v4 = vmul.f32 %v6616_v41, %v6616_v41 }
 0x8be   : > { %v6619_v5 = vsel %vm6603_vm13, %v6617_v63, 0.0  ;;  %v6620_v42 = vsel %vm6603_vm13, %v6618_v4, 0.0  ;;  %v9513_v63 = vld [vmem:[%s14952_s11 + $0xa8] sm:$0xff]  ;;  %v11531_v4 = vpack.c.bf16 %v9498_v1, %v9497_v57 }
 0x8bf   : > { %v6621_v2 = vadd.f32 %v6620_v42, %v6619_v5  ;;  %v9500_v5 = vld [vmem:[%s14952_s11 + $0x60] sm:$0xff]  ;;  %v9501_v42 = vld [vmem:[%s14952_s11 + $0x68] sm:$0xff] }
 0x8c1   : > { %v6622_v25 = vrot.slane %v6621_v2, 4 }
 0x8c3   : > { %v6623_v10 = vadd.f32 %v6622_v25, %v6621_v2 }
 0x8c5   : > { %v6624_v8 = vrot.slane %v6623_v10, 2 }
 0x8c7   : > { %v6625_v15 = vadd.f32 %v6624_v8, %v6623_v10  ;;  %v9518_v8 = vld [vmem:[%s14952_s11 + $0xc0] sm:$0xff] }
 0x8c9   : > { %v6626_v51 = vrot.slane %v6625_v15, 1 }
 0x8cb   : > { %v6627_v16 = vadd.f32 %v6626_v51, %v6625_v15  ;;  %v9519_v15 = vld [vmem:[%s14952_s11 + $0xc8] sm:$0xff]  ;;  %v11534_v51 = vpack.c.bf16 %v9501_v42, %v9500_v5 }
 0x8cd   : > { %v6628_v22 = vmul.f32 0.0625, %v6627_v16  ;;  %v9503_v16 = vld [vmem:[%s14952_s11 + $0x70] sm:$0xff] }
 0x8cf   : > { %v6629_v54 = vadd.f32 1e-05, %v6628_v22  ;;  %v9504_v22 = vld [vmem:[%s14952_s11 + $0x78] sm:$0xff] }
 0x8d0   : > { %v11537_v50 = vpack.c.bf16 %v9504_v22, %v9503_v16 }
 0x8d1   : > { %11818 = vrsqrt.f32 %v6629_v54 }
 0x8db   : > { %v11819_v47 = vpop.eup %11818 }
 0x8dc   : > { %v6631_v19 = vmul.f32 %v11819_v47, %v6615_v32  ;;  %v6632_v62 = vmul.f32 %v11819_v47, %v6616_v41  ;;  %v9512_v41 = vld [vmem:[%s14952_s11 + $0xa0] sm:$0xff]  ;;  %v11552_v47 = vpack.c.bf16 %v9519_v15, %v9518_v8 }
 0x8dd   : > { %v11546_v25 = vpack.c.bf16 %v9513_v63, %v9512_v41 }
 0x8de   : > { %v11511_v14 = vpack.c.bf16 %v6632_v62, %v6631_v19  ;;  %v9524_v62 = vld [vmem:[%s14952_s11 + $0xe0] sm:$0xff] }
 0x8e0   : > { %11512 = vmatprep.subr.bf16.mxu0 %v11511_v14  ;;  %11596 = vmatprep.subr.bf16.mxu1 %v11511_v14 }
 0x8e1   : > { %11514 = vmatpush3.bf16.msra.mxu0 %v11511_v14  ;;  %11597 = vmatpush3.bf16.msra.mxu1 %v11511_v14  ;;  %v9525_v14 = vld [vmem:[%s14952_s11 + $0xe8] sm:$0xff] }
 0x8e2   : > { %11515 = vmatprep.subr.bf16.mxu1 %v11948_v35  ;;  %11539 = vmatprep.subr.bf16.mxu0 %v11948_v35 }
 0x8e4   : > { %10842 = vmatmul.mubr.msk.f32.vlgmr.msra.gmra.mrb[42].mxu0 %vm6603_vm13, %v6634_v7  ;;  %10863 = vmatmul.mubr.msk.f32.vlgmr.msra.gmra.mrb[32].mxu1 %vm6603_vm13, %v6648_v17  ;;  %v9510_v7 = vld [vmem:[%s14952_s11 + $0x98] sm:$0xff] }
 0x8e5   : > { %10844 = vmatprep.mubr.msk.f32.mxu0 %vm6603_vm13, %v6635_v30  ;;  %11517 = vmatpush3.bf16.msra.mxu1 %v11516_v11  ;;  %v11558_v11 = vpack.c.bf16 %v9525_v14, %v9524_v62 }
 0x8e6   : > { %11518 = vmatprep.subr.bf16.mxu1 %v11948_v35  ;;  %10869 = vmatprep.mubr.msk.f32.mxu1 %vm11949_vm0, %v11950_v45 }
 0x8e7   : > { %11541 = vmatpush3.bf16.msra.mxu0 %v11540_v20  ;;  %v8190_v20 = vld [vmem:[%s14894_s15] sm:$0xff] }
 0x8e8   : > { %10845 = vmatmul.mubr.msk.f32.gmra.mrb[44].mxu0 %vm6603_vm13, %v6636_v24  ;;  %11545 = vmatprep.subr.bf16.mxu0 %v11948_v35  ;;  %v11543_v24 = vpack.c.bf16 %v9510_v7, %v9509_v21  ;;  %v11567_v37 = vpack.c.bf16 %v8191_v59, %v8190_v20 }
 0x8e9   : > { %10847 = vmatprep.mubr.msk.f32.mxu0 %vm6603_vm13, %v6637_v29  ;;  %v9515_v29 = vld [vmem:[%s14952_s11 + $0xb0] sm:$0xff] }
 0x8ec   : > { %10848 = vmatmul.mubr.msk.f32.gmra.mrb[46].mxu0 %vm6603_vm13, %v6638_v3  ;;  %v9516_v3 = vld [vmem:[%s14952_s11 + $0xb8] sm:$0xff] }
 0x8ed   : > { %10850 = vmatprep.mubr.msk.f32.mxu0 %vm6603_vm13, %v6639_v33  ;;  %v11549_v33 = vpack.c.bf16 %v9516_v3, %v9515_v29 }
 0x8f0   : > { %10851 = vmatmul.mubr.msk.f32.gmra.mrb[48].mxu0 %vm6603_vm13, %v6640_v38  ;;  %v9521_v38 = vld [vmem:[%s14952_s11 + $0xd0] sm:$0xff] }
 0x8f1   : > { %10853 = vmatprep.mubr.msk.f32.mxu0 %vm6603_vm13, %v6641_v28  ;;  %v9522_v28 = vld [vmem:[%s14952_s11 + $0xd8] sm:$0xff] }
 0x8f4   : > { %10854 = vmatmul.mubr.msk.f32.gmra.mrb[50].mxu0 %vm6603_vm13, %v6642_v18  ;;  %v11555_v18 = vpack.c.bf16 %v9522_v28, %v9521_v38 }
 0x8f5   : > { %10856 = vmatprep.mubr.msk.f32.mxu0 %vm6603_vm13, %v6643_v49  ;;  %v9527_v49 = vld [vmem:[%s14952_s11 + $0xf0] sm:$0xff] }
 0x8f8   : > { %10857 = vmatmul.mubr.msk.f32.gmra.mrb[52].mxu0 %vm6603_vm13, %v6644_v34  ;;  %v9528_v34 = vld [vmem:[%s14952_s11 + $0xf8] sm:$0xff] }
 0x8f9   : > { %10859 = vmatprep.mubr.msk.f32.mxu0 %vm6603_vm13, %v6645_v31  ;;  %v11561_v31 = vpack.c.bf16 %v9528_v34, %v9527_v49 }
 0x8fc   : > { %10860 = vmatmul.mubr.msk.f32.gmra.mrb[54].mxu0 %vm6603_vm13, %v6646_v23  ;;  %v8105_v23 = vld [vmem:[%s14892_s13] sm:$0xff] }
 0x8fd   : > { %10925 = vmatprep.mubr.msk.f32.mxu0 %vm11949_vm0, %v11950_v45  ;;  %v11564_v53 = vpack.c.bf16 %v8106_v36, %v8105_v23 }
 0x9b7   : > { %v10843_v26 = vpop.f32.mrb[42].mxu0  ;;  %v14488_v61 = vpop.f32.mrb[32].mxu1 }
 0x9b8   : > { %10870 = vmatmul.mubr.msk.f32.vlgmr.msra.gmra.mrb[34].mxu1 %vm6603_vm13, %v10843_v26  ;;  %v6763_v55 = vpop.f32.mrb[43].mxu0  ;;  %v14491_v13 = vpop.f32.mrb[33].mxu1 }
 0x9b9   : > { %11520 = vmatpush3.bf16.msra.mxu1 %v11519_v9  ;;  %10876 = vmatprep.mubr.msk.f32.mxu1 %vm11949_vm0, %v11950_v45 }
 0x9ba   : > { %11521 = vmatprep.subr.bf16.mxu1 %v11948_v35 }
 0x9bb   : > { %v10846_v39 = vpop.f32.mrb[44].mxu0 }
 0x9bc   : > { %10877 = vmatmul.mubr.msk.f32.vlgmr.msra.gmra.mrb[36].mxu1 %vm6603_vm13, %v6763_v55  ;;  %v6773_v43 = vpop.f32.mrb[45].mxu0 }
 0x9bd   : > { %11523 = vmatpush3.bf16.msra.mxu1 %v11522_v6  ;;  %10883 = vmatprep.mubr.msk.f32.mxu1 %vm11949_vm0, %v11950_v45 }
 0x9be   : > { %11524 = vmatprep.subr.bf16.mxu1 %v11948_v35 }
 0x9bf   : > { %v10849_v27 = vpop.f32.mrb[46].mxu0 }
 0x9c0   : > { %10884 = vmatmul.mubr.msk.f32.vlgmr.msra.gmra.mrb[38].mxu1 %vm6603_vm13, %v6773_v43  ;;  %v6783_v12 = vpop.f32.mrb[47].mxu0 }
 0x9c1   : > { %11526 = vmatpush3.bf16.msra.mxu1 %v11525_v44  ;;  %10890 = vmatprep.mubr.msk.f32.mxu1 %vm11949_vm0, %v11950_v45 }
 0x9c2   : > { %11527 = vmatprep.subr.bf16.mxu1 %v11948_v35 }
 0x9c3   : > { %v10852_v52 = vpop.f32.mrb[48].mxu0 }
 0x9c4   : > { %10891 = vmatmul.mubr.msk.f32.vlgmr.msra.gmra.mrb[40].mxu1 %vm6603_vm13, %v10846_v39  ;;  %v6793_v32 = vpop.f32.mrb[49].mxu0 }
 0x9c5   : > { %11529 = vmatpush3.bf16.msra.mxu1 %v11528_v58  ;;  %10897 = vmatprep.mubr.msk.f32.mxu1 %vm11949_vm0, %v11950_v45 }
 0x9c6   : > { %11530 = vmatprep.subr.bf16.mxu1 %v11948_v35 }
 0x9c7   : > { %v10855_v2 = vpop.f32.mrb[50].mxu0 }
 0x9c8   : > { %10898 = vmatmul.mubr.msk.f32.vlgmr.msra.gmra.mrb[42].mxu1 %vm6603_vm13, %v6783_v12  ;;  %v6803_v10 = vpop.f32.mrb[51].mxu0 }
 0x9c9   : > { %11532 = vmatpush3.bf16.msra.mxu1 %v11531_v4  ;;  %10904 = vmatprep.mubr.msk.f32.mxu1 %vm11949_vm0, %v11950_v45 }
 0x9ca   : > { %11533 = vmatprep.subr.bf16.mxu1 %v11948_v35  ;;  %10926 = vmatmul.mubr.msk.f32.vlgmr.msra.gmra.mrb[56].mxu0 %vm6603_vm13, %v6803_v10 }
 0x9cb   : > { %11547 = vmatpush3.bf16.msra.mxu0 %v11546_v25  ;;  %v10858_v54 = vpop.f32.mrb[52].mxu0  ;;  %10939 = vmatprep.mubr.msk.f32.mxu0 %vm11949_vm0, %v11950_v45 }
 0x9cc   : > { %10905 = vmatmul.mubr.msk.f32.vlgmr.msra.gmra.mrb[44].mxu1 %vm6603_vm13, %v10849_v27  ;;  %v6813_v19 = vpop.f32.mrb[53].mxu0  ;;  %11551 = vmatprep.subr.bf16.mxu0 %v11948_v35 }
 0x9cd   : > { %11535 = vmatpush3.bf16.msra.mxu1 %v11534_v51  ;;  %10911 = vmatprep.mubr.msk.f32.mxu1 %vm11949_vm0, %v11950_v45 }
 0x9ce   : > { %11536 = vmatprep.subr.bf16.mxu1 %v11948_v35  ;;  %10940 = vmatmul.mubr.msk.f32.vlgmr.msra.gmra.mrb[58].mxu0 %vm6603_vm13, %v6813_v19 }
 0x9cf   : > { %11553 = vmatpush3.bf16.msra.mxu0 %v11552_v47  ;;  %v10861_v17 = vpop.f32.mrb[54].mxu0  ;;  %10953 = vmatprep.mubr.msk.f32.mxu0 %vm11949_vm0, %v11950_v45 }
 0x9d0   : > { %10912 = vmatmul.mubr.msk.f32.vlgmr.msra.gmra.mrb[46].mxu1 %vm6603_vm13, %v6793_v32  ;;  %v6823_v30 = vpop.f32.mrb[55].mxu0  ;;  %11557 = vmatprep.subr.bf16.mxu0 %v11948_v35 }
 0x9d1   : > { %11538 = vmatpush3.bf16.msra.mxu1 %v11537_v50  ;;  %10918 = vmatprep.mubr.msk.f32.mxu1 %vm11949_vm0, %v11950_v45 }
 0x9d2   : > { %11542 = vmatprep.subr.bf16.mxu1 %v11948_v35  ;;  %10954 = vmatmul.mubr.msk.f32.vlgmr.msra.gmra.mrb[60].mxu0 %vm6603_vm13, %v6823_v30  ;;  %v9530_v30 = vld [vmem:[%s14953_s12] ss:$0 sm:$0xff] }
 0x9d3   : > { %11559 = vmatpush3.bf16.msra.mxu0 %v11558_v11  ;;  %10967 = vmatprep.mubr.msk.f32.mxu0 %vm11949_vm0, %v11950_v45 }
 0x9d4   : > { %10919 = vmatmul.mubr.msk.f32.vlgmr.msra.gmra.mrb[48].mxu1 %vm6603_vm13, %v10852_v52  ;;  %11563 = vmatprep.subr.bf16.mxu0 %v11948_v35 }
 0x9d5   : > { %11544 = vmatpush3.bf16.msra.mxu1 %v11543_v24  ;;  %10932 = vmatprep.mubr.msk.f32.mxu1 %vm11949_vm0, %v11950_v45 }
 0x9d6   : > { %11548 = vmatprep.subr.bf16.mxu1 %v11948_v35  ;;  %10968 = vmatmul.mubr.msk.f32.vlgmr.msra.gmra.mrb[62].mxu0 %vm6603_vm13, %v14491_v13 }
 0x9d7   : > { %10981 = vmatprep.mubr.msk.f32.mxu0 %vm11949_vm0, %v11950_v45  ;;  %11565 = vmatpush3.bf16.msra.mxu0 %v11564_v53 }
 0x9d8   : > { %10933 = vmatmul.mubr.msk.f32.vlgmr.msra.gmra.mrb[50].mxu1 %vm6603_vm13, %v10855_v2  ;;  %11572 = vmatprep.subr.bf16.mxu0 %v11948_v35 }
 0x9d9   : > { %11550 = vmatpush3.bf16.msra.mxu1 %v11549_v33  ;;  %10946 = vmatprep.mubr.msk.f32.mxu1 %vm11949_vm0, %v11950_v45 }
 0x9da   : > { %11554 = vmatprep.subr.bf16.mxu1 %v11948_v35 }
 0x9dc   : > { %10947 = vmatmul.mubr.msk.f32.vlgmr.msra.gmra.mrb[52].mxu1 %vm6603_vm13, %v10858_v54 }
 0x9dd   : > { %11556 = vmatpush3.bf16.msra.mxu1 %v11555_v18  ;;  %10960 = vmatprep.mubr.msk.f32.mxu1 %vm11949_vm0, %v11950_v45 }
 0x9de   : > { %11560 = vmatprep.subr.bf16.mxu1 %v11948_v35 }
 0x9e0   : > { %10961 = vmatmul.mubr.msk.f32.vlgmr.msra.gmra.mrb[54].mxu1 %vm6603_vm13, %v10861_v17 }
 0x9e1   : > { %11562 = vmatpush3.bf16.msra.mxu1 %v11561_v31  ;;  %10974 = vmatprep.mubr.msk.f32.mxu1 %vm11949_vm0, %v11950_v45 }
 0x9e2   : > { %11566 = vmatprep.subr.bf16.mxu1 %v11948_v35 }
 0x9e4   : > { %10975 = vmatmul.mubr.msk.f32.vlgmr.msra.gmra.mrb[56].mxu1 %vm6603_vm13, %v14488_v61 }
 0x9e5   : > { %10992 = vmatprep.mubr.msk.f32.mxu1 %vm11949_vm0, %v11950_v45  ;;  %11568 = vmatpush3.bf16.msra.mxu1 %v11567_v37 }
 0x9e6   : > { %11569 = vmatprep.subr.bf16.mxu1 %v11948_v35 }
 0xa8b   : > { %v6916_v9 = vpop.f32.mrb[34].mxu1 }
 0xa8c   : > { %v10871_v56 = vpop.f32.mrb[35].mxu1 }
 0xa8f   : > { %v6989_v60 = vpop.f32.mrb[36].mxu1 }
 0xa90   : > { %v6990_v26 = vadd.f32 %v6989_v60, %v6916_v9  ;;  %v10878_v61 = vpop.f32.mrb[37].mxu1 }
 0xa93   : > { %v7065_v55 = vpop.f32.mrb[38].mxu1 }
 0xa94   : > { %v7069_v13 = vadd.f32 %v7065_v55, %v6990_v26  ;;  %v10885_v6 = vpop.f32.mrb[39].mxu1 }
 0xa97   : > { %v7142_v48 = vpop.f32.mrb[40].mxu1 }
 0xa98   : > { %v7146_v46 = vadd.f32 %v7142_v48, %v7069_v13  ;;  %v10892_v39 = vpop.f32.mrb[41].mxu1 }
 0xa99   : > { %v8192_v39 = vld [vmem:[%s14894_s15 + $0x10] sm:$0xff] }
 0xa9b   : > { %v7219_v43 = vpop.f32.mrb[42].mxu1 }
 0xa9c   : > { %v7223_v44 = vadd.f32 %v7219_v43, %v7146_v46  ;;  %v10899_v40 = vpop.f32.mrb[43].mxu1  ;;  %v8193_v43 = vld [vmem:[%s14894_s15 + $0x18] sm:$0xff] }
 0xa9d   : > { %v7527_v0 = vpop.f32.mrb[56].mxu0  ;;  %v9531_v40 = vld [vmem:[%s14893_s14] ss:$0 sm:$0xff] }
 0xa9e   : > { %v10927_v27 = vpop.f32.mrb[57].mxu0 }
 0xa9f   : > { %v7296_v12 = vpop.f32.mrb[44].mxu1 }
 0xaa0   : > { %v7300_v58 = vadd.f32 %v7296_v12, %v7223_v44  ;;  %v10906_v57 = vpop.f32.mrb[45].mxu1  ;;  %v11570_v44 = vpack.c.bf16 %v8193_v43, %v8192_v39 }
 0xaa1   : > { %v7681_v1 = vpop.f32.mrb[58].mxu0 }
 0xaa2   : > { %v10941_v52 = vpop.f32.mrb[59].mxu0  ;;  %11571 = vmatpush3.bf16.msra.mxu1 %v11570_v44 }
 0xaa3   : > { %v7373_v32 = vpop.f32.mrb[46].mxu1  ;;  %v8280_v52 = vld [vmem:[%s14896_s17 + $0x8] sm:$0xff] }
 0xaa4   : > { %v7377_v41 = vadd.f32 %v7373_v32, %v7300_v58  ;;  %v10913_v63 = vpop.f32.mrb[47].mxu1 }
 0xaa5   : > { %v7835_v4 = vpop.f32.mrb[60].mxu0 }
 0xaa6   : > { %v10955_v5 = vpop.f32.mrb[61].mxu0 }
 0xaa7   : > { %v7450_v42 = vpop.f32.mrb[48].mxu1  ;;  %v8356_v5 = vld [vmem:[%s14898_s19 + $0x8] sm:$0xff] }
 0xaa8   : > { %v7454_v2 = vadd.f32 %v7450_v42, %v7377_v41  ;;  %v10920_v25 = vpop.f32.mrb[49].mxu1  ;;  %v9533_v41 = vld [vmem:[%s14895_s16] ss:$0 sm:$0xff] }
 0xaa9   : > { %v7989_v10 = vpop.f32.mrb[62].mxu0 }
 0xaaa   : > { %v7531_v8 = vadd.f32 %v7527_v0, %v7454_v2  ;;  %v10969_v15 = vpop.f32.mrb[63].mxu0 }
 0xaab   : > { %v7604_v51 = vpop.f32.mrb[50].mxu1  ;;  %v9538_v15 = vld [vmem:[%s14896_s17 + $0x18] sm:$0xff] }
 0xaac   : > { %v7608_v16 = vadd.f32 %v7604_v51, %v7531_v8  ;;  %v10934_v22 = vpop.f32.mrb[51].mxu1  ;;  %v9537_v8 = vld [vmem:[%s14896_s17 + $0x10] sm:$0xff] }
 0xaad   : > { %v9540_v22 = vld [vmem:[%s14898_s19 + $0x10] sm:$0xff] }
 0xaae   : > { %v7685_v54 = vadd.f32 %v7681_v1, %v7608_v16  ;;  %v8279_v1 = vld [vmem:[%s14896_s17] sm:$0xff]  ;;  %v11579_v16 = vpack.c.bf16 %v9538_v15, %v9537_v8 }
 0xaaf   : > { %v7758_v47 = vpop.f32.mrb[52].mxu1  ;;  %v11573_v32 = vpack.c.bf16 %v8280_v52, %v8279_v1 }
 0xab0   : > { %v7762_v19 = vadd.f32 %v7758_v47, %v7685_v54  ;;  %v10948_v62 = vpop.f32.mrb[53].mxu1  ;;  %v9541_v54 = vld [vmem:[%s14898_s19 + $0x18] sm:$0xff] }
 0xab1   : > { %v11582_v47 = vpack.c.bf16 %v9541_v54, %v9540_v22  ;;  %v9543_v62 = vld [vmem:[%s14896_s17 + $0x20] sm:$0xff] }
 0xab2   : > { %v7839_v14 = vadd.f32 %v7835_v4, %v7762_v19  ;;  %v8355_v4 = vld [vmem:[%s14898_s19] sm:$0xff] }
 0xab3   : > { %v7912_v50 = vpop.f32.mrb[54].mxu1 }
 0xab4   : > { %v7916_v21 = vadd.f32 %v7912_v50, %v7839_v14  ;;  %v10962_v7 = vpop.f32.mrb[55].mxu1  ;;  %v9544_v14 = vld [vmem:[%s14896_s17 + $0x28] sm:$0xff] }
 0xab5   : > { %v11585_v50 = vpack.c.bf16 %v9544_v14, %v9543_v62  ;;  %v9547_v7 = vld [vmem:[%s14898_s19 + $0x28] sm:$0xff] }
 0xab6   : > { %v7993_v17 = vadd.f32 %v7989_v10, %v7916_v21  ;;  %v11576_v10 = vpack.c.bf16 %v8356_v5, %v8355_v4  ;;  %v9546_v21 = vld [vmem:[%s14898_s19 + $0x20] sm:$0xff] }
 0xab7   : > { %v8066_v11 = vpop.f32.mrb[56].mxu1 }
 0xab8   : > { %v8070_v24 = vadd.f32 %v8066_v11, %v7993_v17  ;;  %v10976_v29 = vpop.f32.mrb[57].mxu1  ;;  %v11588_v17 = vpack.c.bf16 %v9547_v7, %v9546_v21 }
 0xaba   : > { %v8078_v3 = vadd.f32 %v9530_v30, %v8070_v24  ;;  %v9549_v30 = vld [vmem:[%s14896_s17 + $0x30] sm:$0xff]  ;;  %v9550_v24 = vld [vmem:[%s14896_s17 + $0x38] sm:$0xff] }
 0xabb   : > { %v11591_v29 = vpack.c.bf16 %v9550_v24, %v9549_v30 }
 0xabc   : > { %vm8079_vm1 = vcmp.gt.f32.partialorder %v8078_v3, 0.0  ;;  %v8080_v33 = vmul.f32 0.2, %v8078_v3 }
 0xabe   : > { %v8081_v38 = vsel %vm8079_vm1, %v8078_v3, %v8080_v33  ;;  %v9552_v3 = vld [vmem:[%s14898_s19 + $0x30] sm:$0xff]  ;;  %v9553_v33 = vld [vmem:[%s14898_s19 + $0x38] sm:$0xff] }
 0xabf   : > { %v8083_v28 = vsel %vm8082_vm3, %v8081_v38, 0.0 }
 0xac0   : > { %v8084_v18 = vrot.slane %v8083_v28, 4 }
 0xac2   : > { %v8085_v49 = vadd.f32 %v8084_v18, %v8083_v28  ;;  %v8277_v18 = vld [vmem:[%s14897_s18] sm:$0x1] }
 0xac4   : > { %v8086_v34 = vrot.slane %v8085_v49, 2 }
 0xac6   : > { %v8087_v31 = vadd.f32 %v8086_v34, %v8085_v49  ;;  %v8278_v34 = vld [vmem:[%s14899_s20] sm:$0x1] }
 0xac8   : > { %v8088_v23 = vrot.slane %v8087_v31, 1 }
 0xaca   : > { %v8089_v36 = vadd.f32 %v8088_v23, %v8087_v31 }
 0xacc   : > { %v8091_v53 = vmul.f32 0.25, %v8089_v36 }
 0xace   : > { %v8092_v20 = vsub.f32 %v8081_v38, %v8091_v53  ;;  %v11594_v38 = vpack.c.bf16 %v9553_v33, %v9552_v3 }
 0xad0   : > { %v8093_v59 = vmul.f32 %v8092_v20, %v8092_v20 }
 0xad2   : > { %v8094_v37 = vsel %vm8082_vm3, %v8093_v59, 0.0 }
 0xad3   : > { %v8095_v9 = vrot.slane %v8094_v37, 4 }
 0xad5   : > { %v8096_v56 = vadd.f32 %v8095_v9, %v8094_v37 }
 0xad7   : > { %v8097_v60 = vrot.slane %v8096_v56, 2 }
 0xad9   : > { %v8098_v26 = vadd.f32 %v8097_v60, %v8096_v56 }
 0xadb   : > { %v8099_v61 = vrot.slane %v8098_v26, 1 }
 0xadd   : > { %v8100_v55 = vadd.f32 %v8099_v61, %v8098_v26 }
 0xadf   : > { %v8101_v13 = vmul.f32 0.25, %v8100_v55 }
 0xae1   : > { %v8102_v6 = vadd.f32 1e-05, %v8101_v13 }
 0xae3   : > { %11820 = vrsqrt.f32 %v8102_v6 }
 0xaed   : > { %v11821_v48 = vpop.eup %11820 }
 0xaee   : > { %v8104_v46 = vmul.f32 %v11821_v48, %v8092_v20 }
 0xaf0   : > { %10982 = vmatmul.mubr.msk.f32.vlgmr.msra.gmra.mrb[64].mxu0 %vm6603_vm13, %v8104_v46 }
 0xaf1   : > { %10999 = vmatprep.mubr.msk.f32.mxu0 %vm11949_vm0, %v11950_v45  ;;  %11574 = vmatpush3.bf16.msra.mxu0 %v11573_v32 }
 0xaf2   : > { %11575 = vmatprep.subr.bf16.mxu0 %v11948_v35 }
 0xbc3   : > { %v8183_v0 = vpop.f32.mrb[64].mxu0 }
 0xbc4   : > { %v8184_v27 = vadd.f32 %v9531_v40, %v8183_v0  ;;  %v10983_v12 = vpop.f32.mrb[65].mxu0 }
 0xbc6   : > { %vm8187_vm4 = vcmp.gt.f32.partialorder %v8184_v27, 0.0  ;;  %v8188_v58 = vmul.f32 0.2, %v8184_v27 }
 0xbc8   : > { %v8189_v57 = vsel %vm8187_vm4, %v8184_v27, %v8188_v58 }
 0xbc9   : > { %10993 = vmatmul.mubr.msk.f32.vlgmr.msra.gmra.mrb[58].mxu1 %vm1201_vm2, %v8189_v57 }
 0xc9c   : > { %v8270_v63 = vpop.f32.mrb[58].mxu1 }
 0xc9d   : > { %v8271_v42 = vadd.f32 %v9533_v41, %v8270_v63  ;;  %v10994_v2 = vpop.f32.mrb[59].mxu1 }
 0xc9f   : > { %vm8274_vm2 = vcmp.gt.f32.partialorder %v8271_v42, 0.0  ;;  %v8275_v25 = vmul.f32 0.2, %v8271_v42 }
 0xca1   : > { %v8276_v51 = vsel %vm8274_vm2, %v8271_v42, %v8275_v25 }
 0xca2   : > { %11000 = vmatmul.mubr.msk.f32.vlgmr.msra.gmra.mrb[66].mxu0 %vm6603_vm13, %v8276_v51  ;;  %v8431_v19 = vrot.slane %v8276_v51, 1  ;;  %v8582_v11 = vrot.slane %v8276_v51, 2  ;;  %v8733_v28 = vrot.slane %v8276_v51, 3 }
 0xca3   : > { %11577 = vmatpush3.bf16.msra.mxu0 %v11576_v10  ;;  %11006 = vmatprep.mubr.msk.f32.mxu0 %vm11949_vm0, %v11950_v45 }
 0xca4   : > { %11578 = vmatprep.subr.bf16.mxu0 %v11948_v35 }
 0xca6   : > { %11007 = vmatmul.mubr.msk.f32.vlgmr.msra.gmra.mrb[68].mxu0 %vm6603_vm13, %v8276_v51 }
 0xca7   : > { %11580 = vmatpush3.bf16.msra.mxu0 %v11579_v16  ;;  %11013 = vmatprep.mubr.msk.f32.mxu0 %vm11949_vm0, %v11950_v45 }
 0xca8   : > { %11581 = vmatprep.subr.bf16.mxu0 %v11948_v35 }
 0xcaa   : > { %11014 = vmatmul.mubr.msk.f32.vlgmr.msra.gmra.mrb[66].mxu0 %vm6603_vm13, %v8431_v19 }
 0xcab   : > { %11583 = vmatpush3.bf16.msra.mxu0 %v11582_v47  ;;  %11020 = vmatprep.mubr.msk.f32.mxu0 %vm11949_vm0, %v11950_v45 }
 0xcac   : > { %11584 = vmatprep.subr.bf16.mxu0 %v11948_v35 }
 0xcae   : > { %11021 = vmatmul.mubr.msk.f32.vlgmr.msra.gmra.mrb[68].mxu0 %vm6603_vm13, %v8431_v19 }
 0xcaf   : > { %11586 = vmatpush3.bf16.msra.mxu0 %v11585_v50  ;;  %11027 = vmatprep.mubr.msk.f32.mxu0 %vm11949_vm0, %v11950_v45 }
 0xcb0   : > { %11587 = vmatprep.subr.bf16.mxu0 %v11948_v35 }
 0xcb2   : > { %11028 = vmatmul.mubr.msk.f32.vlgmr.msra.gmra.mrb[66].mxu0 %vm6603_vm13, %v8582_v11 }
 0xcb3   : > { %11589 = vmatpush3.bf16.msra.mxu0 %v11588_v17  ;;  %11034 = vmatprep.mubr.msk.f32.mxu0 %vm11949_vm0, %v11950_v45 }
 0xcb4   : > { %11590 = vmatprep.subr.bf16.mxu0 %v11948_v35 }
 0xcb6   : > { %11035 = vmatmul.mubr.msk.f32.vlgmr.msra.gmra.mrb[68].mxu0 %vm6603_vm13, %v8582_v11 }
 0xcb7   : > { %11592 = vmatpush3.bf16.msra.mxu0 %v11591_v29  ;;  %11041 = vmatprep.mubr.msk.f32.mxu0 %vm11949_vm0, %v11950_v45 }
 0xcb8   : > { %11593 = vmatprep.subr.bf16.mxu0 %v11948_v35 }
 0xcba   : > { %11042 = vmatmul.mubr.msk.f32.vlgmr.msra.gmra.mrb[66].mxu0 %vm6603_vm13, %v8733_v28 }
 0xcbb   : > { %11595 = vmatpush3.bf16.msra.mxu0 %v11594_v38  ;;  %11048 = vmatprep.mubr.msk.f32.mxu0 %vm11949_vm0, %v11950_v45 }
 0xcbe   : > { %11049 = vmatmul.mubr.msk.f32.vlgmr.msra.gmra.mrb[68].mxu0 %vm6603_vm13, %v8733_v28 }
 0xd8d   : > { %v8802_v35 = vpop.f32.mrb[66].mxu0 }
 0xd8e   : > { %v14749_v45 = vadd.f32 %v8802_v35, %v8277_v18  ;;  %v11043_v49 = vpop.f32.mrb[67].mxu0 }
 0xd90   : > { %8882 = vst.msk [vmem:[%s717_s29] sm:$0x1] %vm8881_vm5, %v14749_v45 }
 0xd91   : > { %v8876_v31 = vpop.f32.mrb[68].mxu0 }
 0xd92   : > { %11837 = shalt.err (!%p11834_p3)
}
 0xd93   : > { %s11838_s29 = scalar_lea.hbm %s14755_s0, 16  ;;  %s11842_s9 = scalar_lea.hbm %s14900_s21, 64 }
 0xd94   : > { %p11839_p4 = scmp.ne.s32.totalorder %s14755_s0, %s11838_s29  ;;  %p11843_p9 = scmp.lt.u32.totalorder %s14755_s0, %s14900_s21 }
 0xd95   : > { %p11844_p10 = scmp.lt.u32.totalorder %s11842_s9, %s11838_s29  ;;  %p11846_p12 = scmp.lt.u32.totalorder %s11838_s29, %s14755_s0 }
 0xd96   : > { %p11840_p7 = pnand %p11839_p4, %p12114_p5 }
 0xd97   : > { %p11845_p11 = por %p11844_p10, %p11843_p9 }
 0xd98   : > { %p11841_p8 = pneg %p11840_p7 }
 0xd99   : > { %p11847_p13 = por %p11846_p12, %p11845_p11 }
 0xd9b   : > { %p11848_p0 = pnand %p11847_p13, %p11841_p8 }
 0xd9d   : > { %11851 = shalt.err (!%p11848_p0)
}
 0xd9e   : > { %11762 = dma.vmem_to_hbm [thread:$0]  (%p12114_p5), %s14757_s3, 16, %s14755_s0, %s8892_s24   ;;  %v11599_v23 = vadd.f32 %v8876_v31, %v8278_v34  ;;  %v11050_v36 = vpop.f32.mrb[69].mxu0 }
 0xd9f   : > { %s14795_s1 = scalar_lea.hbm %s14901_s22, %s14745_s28  ;;  %s14954_s25 = scalar_lea.vmem [#allocation4], %s14739_s23 }
 0xda0   : > { %v8885_v53 = vmul.f32 0.5, %v11599_v23  ;;  %8883 = vst.msk [vmem:[%s14954_s25] sm:$0x1] %vm8881_vm5, %v11599_v23  ;;  %s14955_s4 = sand.u32 1, %s12095_s5   ;;  %s11852_s3 = scalar_lea.vmem %s14798_s8, 16 }
 0xda1   : > { %s14805_s29 = scalar_lea.sflag [#allocation5], %s14955_s4  ;;  %p11853_p1 = scmp.ne.s32.totalorder %s14798_s8, %s11852_s3 }
 0xda2   : > { %s11952_s0 = smov [#allocation4]  }
 0xda3   : > { %p11854_p2 = pnand %p11853_p1, %p12114_p5  ;;  %s11856_s24 = sshll.u32 %s11952_s0, 4  ;;  %s11857_s24 = int_to_ptr.vmem [resolvable:$false] %s11856_s24 }
 0xda4   : > { %s11858_s9 = scalar_lea.vmem %s11857_s24, 32  ;;  %p11859_p4 = scmp.lt.s32.totalorder %s14798_s8, %s11857_s24 }
 0xda5   : > { %p11855_p3 = pneg %p11854_p2  ;;  %p11860_p7 = scmp.lt.s32.totalorder %s11858_s9, %s11852_s3 }
 0xda7   : > { %p11861_p8 = por %p11860_p7, %p11859_p4 }
 0xda9   : > { %p11862_p9 = pnand %p11861_p8, %p11855_p3 }
 0xdab   : > { %11865 = shalt.err (!%p11862_p9)
}
 0xdac   : > { %s11866_s5 = scalar_lea.hbm %s14795_s1, 16  ;;  %s11870_s11 = scalar_lea.hbm %s14901_s22, 64 }
 0xdad   : > { %p11867_p10 = scmp.ne.s32.totalorder %s14795_s1, %s11866_s5  ;;  %p11871_p13 = scmp.lt.u32.totalorder %s14795_s1, %s14901_s22 }
 0xdae   : > { %p11872_p0 = scmp.lt.u32.totalorder %s11870_s11, %s11866_s5  ;;  %p11874_p2 = scmp.lt.u32.totalorder %s11866_s5, %s14795_s1 }
 0xdaf   : > { %p11868_p11 = pnand %p11867_p10, %p12114_p5 }
 0xdb0   : > { %p11873_p1 = por %p11872_p0, %p11871_p13 }
 0xdb1   : > { %p11869_p12 = pneg %p11868_p11 }
 0xdb2   : > { %p11875_p3 = por %p11874_p2, %p11873_p1 }
 0xdb4   : > { %p11876_p4 = pnand %p11875_p3, %p11869_p12 }
 0xdb6   : > { %11879 = shalt.err (!%p11876_p4)
}
 0xdb7   : > { %11763 = dma.vmem_to_hbm [thread:$0]  (%p12114_p5), %s14798_s8, 16, %s14795_s1, %s14805_s29   ;;  %v8886_v20 = vmul.f32 1.442695, %v8885_v53 }
 0xdb8   : > { %s14956_s24 = sld [smem:[#allocation16_spill]]  ;;  %s729_s5 = scalar_lea.vmem [#allocation6], %s14739_s23 }
 0xdb9   : > { %11822 = vpow2.f32 %v8886_v20  ;;  %s8938_s6 = sshll.u32 %s729_s5, 4  ;;  %s14957_s25 = sld [smem:[#allocation28_spill]]  ;;  %s8939_s6 = int_to_ptr.vmem [resolvable:$true] %s8938_s6 }
 0xdba   : > { %s11880_s8 = scalar_lea.vmem %s8939_s6, 16 }
 0xdbb   : > { %p11881_p7 = scmp.ne.s32.totalorder %s8939_s6, %s11880_s8 }
 0xdbd   : > { %p11882_p8 = pnand %p11881_p7, %p12114_p5 }
 0xdbe   : > { %s737_s9 = scalar_lea.vmem %s14956_s24, %s12144_s2  ;;  %s11953_s2 = smov [#allocation6]  }
 0xdbf   : > { %v8884_v59 = vld [vmem:[%s737_s9] sm:$0x1]  ;;  %s14958_s12 = smov %s14957_s25  ;;  %s14839_s4 = scalar_lea.hbm %s14957_s25, %s14745_s28 }
 0xdc0   : > { %p11883_p9 = pneg %p11882_p8  ;;  %s11884_s1 = sshll.u32 %s11953_s2, 4  ;;  %s11885_s1 = int_to_ptr.vmem [resolvable:$false] %s11884_s1 }
 0xdc1   : > { %s11886_s23 = scalar_lea.vmem %s11885_s1, 32  ;;  %p11887_p10 = scmp.lt.s32.totalorder %s8939_s6, %s11885_s1 }
 0xdc2   : > { %p11888_p11 = scmp.lt.s32.totalorder %s11886_s23, %s11880_s8 }
 0xdc3   : > { %v11823_v37 = vpop.eup %11822 }
 0xdc4   : > { %v8888_v9 = vmul.f32 %v11823_v37, %v8884_v59  ;;  %p11889_p12 = por %p11888_p11, %p11887_p10 }
 0xdc6   : > { %v8889_v56 = vadd.f32 %v14749_v45, %v8888_v9  ;;  %p11890_p13 = pnand %p11889_p12, %p11883_p9 }
 0xdc8   : > { %8890 = vst.msk [vmem:[%s729_s5] sm:$0x1] %vm8881_vm5, %v8889_v56 }
 0xdc9   : > { %11893 = shalt.err (!%p11890_p13)
}
 0xdca   : > { %s11894_s28 = scalar_lea.hbm %s14839_s4, 16  ;;  %s11898_s24 = scalar_lea.hbm %s14958_s12, 64 }
 0xdcb   : > { %p11895_p0 = scmp.ne.s32.totalorder %s14839_s4, %s11894_s28  ;;  %p11899_p3 = scmp.lt.u32.totalorder %s14839_s4, %s14958_s12 }
 0xdcc   : > { %p11900_p4 = scmp.lt.u32.totalorder %s11898_s24, %s11894_s28  ;;  %p11902_p8 = scmp.lt.u32.totalorder %s11894_s28, %s14839_s4 }
 0xdcd   : > { %p11896_p1 = pnand %p11895_p0, %p12114_p5 }
 0xdce   : > { %p11901_p7 = por %p11900_p4, %p11899_p3 }
 0xdcf   : > { %p11897_p2 = pneg %p11896_p1 }
 0xdd0   : > { %p11903_p9 = por %p11902_p8, %p11901_p7 }
 0xdd2   : > { %p11904_p10 = pnand %p11903_p9, %p11897_p2 }
 0xdd4   : > { %11907 = shalt.err (!%p11904_p10)
}
 0xdd5   : > { %11764 = dma.vmem_to_hbm [thread:$0]  (%p12114_p5), %s8939_s6, 16, %s14839_s4, %s14805_s29  }
 0xdd6 PF: > { %s14959_s10 = sld [smem:[#allocation11_spill]]  ;;  %s14960_s11 = sld [smem:[#allocation9_spill]] }
 0xddc   : > { %p11778_p11 = scmp.ge.s32.totalorder %s14959_s10, 2  ;;  %s8950_s8 = sand.u32 1, %s14960_s11  }
 0xddd   : > { %s8951_s2 = scalar_lea.sflag [#allocation3], %s8950_s8 }
 0xdde   : > { %p11769_p12 = pnand %p11778_p11, %p12118_p6 }
 0xde0   : > { %11925 = dma.done.wait (!%p11769_p12), %s8951_s2, 16  }
 0xde1   : > { %11927 = vsyncadd (!%p11769_p12), %s8951_s2, 4294967280  ;;  %s14962_s1 = sadd.s32 4294967294, %s14959_s10  }
 0xde2   : > { %s8958_s23 = sand.u32 1, %s14962_s1  }
 0xde3   : > { %s8959_s28 = scalar_lea.sflag [#allocation5], %s8958_s23 }
 0xde4   : > { %11929 = dma.done.wait (!%p11769_p12), %s8959_s28, 32  }
 0xde5   : > { %11931 = vsyncadd (!%p11769_p12), %s8959_s28, 4294967264  ;;  %s14963_s25 = sld [smem:[#allocation12_spill]]  ;;  %s14964_s7 = sld [smem:[#allocation10_spill]] }
 0xde6   : > { %s14965_s24 = sld [smem:[#allocation13_spill]]  ;;  %s14966_s4 = smov %s11938_s30 }
 0xdeb   : > { %p37_p5 = scmp.ge.s32.totalorder %s14963_s25, 6   ;;  %s14967_s30 = smov %s14964_s7 }
 0xded   :  { %39 = sbr.rel (!%p37_p5) target bundleno = 20 (0x14), region = 225 }
 0xdf4   :  { %8971 = vsyncpa [#allocation3], 1 }
 0xdf5   :  { %8973 = vsyncpa [#allocation3 + $0x1], 1 }
 0xdf6   :  { %8974 = vsyncpa [#allocation5], 1 }
 0xdf7   :  { %8976 = vsyncpa [#allocation5 + $0x1], 1 }

</bundles_post_ra>
